<compile_context>
chip_gen: v7x
topology: tpu7x:2x2x1
jax: 0.10.0
libtpu: 0.0.40
codegen_flags: <defaults>
</compile_context>

<pallas_src>
import functools

import numpy as np

import jax
import jax.numpy as jnp
from jax.experimental import pallas as pl
from jax.experimental.pallas import tpu as pltpu

A_VAL, B_VAL = 2.0, 0.3
BN_EPS = 1e-5
BLOCK_PADS = (1, 1, 1, 0)    # spatial padding of the 4 residual blocks
KSIZE = 4                    # residual-block conv kernel size
NTAPS = KSIZE * KSIZE


# ----------------------------- fused residual-block kernel -----------------


def fused_res_block(px, ymask, aff, w1bd, w2, wds, sdvec, bias,
                    *, w0bd=None, wcomp=None, bcomp=None, b_val=B_VAL):
    """One pallas_call for a full residual block.

    px    : (M, Kin) f32   tap-major patch rows of the (zero padded) block
                           input (for block 1: patch-of-patch rows of image,
                           turned into conv1 output by w0bd inside the kernel)
    ymask : (M, K)   f32   1 at valid taps, 0 at conv zero-padding taps
    aff   : (3, K)   f32   rows = [s1, t1, t2] BN affines tiled over the taps
    w1bd  : (K, K)   bf16  kron(I_16, w1 * s2)   (1x1 conv, BN2 scale folded)
    w2    : (K, Cout) bf16 conv2 weight matrix (raw)
    wds   : (K, Cout) bf16 downsample conv weight matrix (raw)
    sdvec : (1, Cout) f32  A_VAL * downsample BN scale
    bias  : (1, Cout) f32  A_VAL * (BN_ds scale * conv_ds bias + BN_ds shift)
    w0bd  : (Kin, K) bf16  (block 1 only) kron(I_16, conv1 weight matrix)
    wcomp : (Cout, Nh) f32 (block 4 only) fused Linear-head weights
    bcomp : (1, Nh)   f32  (block 4 only) fused Linear-head biases
    """
    M, Kin = px.shape
    K = ymask.shape[1]
    cout = w2.shape[1]
    has_conv1 = w0bd is not None
    has_comp = wcomp is not None
    nout = wcomp.shape[1] if has_comp else cout

    # Only the big (512-row) call gets 2 parallel grid steps (v7x megacore);
    # tiny calls stay single-step so v5e/v6e pay no extra pipeline overhead.
    nsteps = 2 if (M >= 512 and M % 16 == 0) else 1
    tm = M // nsteps

    def kernel(*refs):
        it = iter(refs)
        px_ref = next(it)
        ym_ref = next(it)
        aff_ref = next(it)
        w0_ref = next(it) if has_conv1 else None
        w1_ref = next(it)
        w2_ref = next(it)
        wds_ref = next(it)
        sd_ref = next(it)
        b_ref = next(it)
        wc_ref = next(it) if has_comp else None
        bc_ref = next(it) if has_comp else None
        o_ref = next(it)

        x = px_ref[...]
        if has_conv1:
            # in-kernel conv1: block-diagonal matmul on patch-of-patch rows.
            x = jnp.dot(x.astype(jnp.bfloat16), w0_ref[...],
                        preferred_element_type=jnp.float32)
        # x: (tm, K) f32, exactly zero at padded taps (convs have no bias).

        affv = aff_ref[...]
        s1 = affv[0:1, :]
        t1 = affv[1:2, :]
        t2 = affv[2:3, :]

        # head: relu(bn1(x)) -> 1x1 conv (BN2 scale folded) -> +t2 -> relu
        e = jnp.maximum(x * s1 + t1, 0.0)
        y = jnp.dot(e.astype(jnp.bfloat16), w1_ref[...],
                    preferred_element_type=jnp.float32)
        # padded taps must contribute exactly zero (head(0) != 0) -> mask.
        y = jnp.maximum(y + t2, 0.0) * ym_ref[...]

        # conv2 on head output, downsample conv on raw block input.
        r2 = jnp.dot(y.astype(jnp.bfloat16), w2_ref[...],
                     preferred_element_type=jnp.float32)
        rds = jnp.dot(x.astype(jnp.bfloat16), wds_ref[...],
                      preferred_element_type=jnp.float32)

        # fp32 epilogue: out = b*conv2 + a*bn_ds(conv_ds + bias_ds)
        out = b_val * r2 + sd_ref[...] * rds + b_ref[...]

        if has_comp:
            # fused LinearFeatureCompressor heads (fp32 matmul, tiny).
            out = jnp.dot(out, wc_ref[...],
                          preferred_element_type=jnp.float32) + bc_ref[...]

        o_ref[...] = out.astype(o_ref.dtype)

    def row_spec(cols):
        return pl.BlockSpec((tm, cols), lambda i: (i, 0))

    def full_spec(arr):
        r, c = arr.shape
        return pl.BlockSpec((r, c), lambda i: (0, 0))

    operands = [px, ymask, aff]
    in_specs = [row_spec(Kin), row_spec(K), full_spec(aff)]
    if has_conv1:
        operands.append(w0bd)
        in_specs.append(full_spec(w0bd))
    operands += [w1bd, w2, wds, sdvec, bias]
    in_specs += [full_spec(w1bd), full_spec(w2), full_spec(wds),
                 full_spec(sdvec), full_spec(bias)]
    if has_comp:
        operands += [wcomp, bcomp]
        in_specs += [full_spec(wcomp), full_spec(bcomp)]

    return pl.pallas_call(
        kernel,
        out_shape=jax.ShapeDtypeStruct((M, nout), jnp.float32),
        grid=(nsteps,),
        in_specs=in_specs,
        out_specs=pl.BlockSpec((tm, nout), lambda i: (i, 0)),
        compiler_params=pltpu.CompilerParams(
            dimension_semantics=("parallel",)),
    )(*operands)


# ----------------------------- XLA glue (tiny, between pallas_calls) --------

# TODO(synk): patch extraction between blocks stays as a handful of XLA
# strided slices on <=72 KB activations; folding it into the kernels would
# need in-kernel strided gathers for no measurable gain at these sizes.


def _extract_patches(x, k, stride, pad):
    """(B,H,W,C) -> (B,Ho,Wo,k*k*C) tap-major (i,j), channel-minor patches."""
    B, H, W, C = x.shape
    if pad:
        x = jnp.pad(x, ((0, 0), (pad, pad), (pad, pad), (0, 0)))
    Hp, Wp = H + 2 * pad, W + 2 * pad
    Ho = (Hp - k) // stride + 1
    Wo = (Wp - k) // stride + 1
    taps = [x[:, i:i + stride * (Ho - 1) + 1:stride,
              j:j + stride * (Wo - 1) + 1:stride, :]
            for i in range(k) for j in range(k)]
    return jnp.concatenate(taps, axis=-1), Ho, Wo


def _valid_mask(B, H, W, k, stride, pad):
    """Trace-time constant (B*Ho*Wo, k*k) {0,1} mask of non-padding taps."""
    Ho = (H + 2 * pad - k) // stride + 1
    Wo = (W + 2 * pad - k) // stride + 1
    r = stride * np.arange(Ho)[:, None] + np.arange(k)[None, :] - pad
    c = stride * np.arange(Wo)[:, None] + np.arange(k)[None, :] - pad
    rv = (r >= 0) & (r < H)
    cv = (c >= 0) & (c < W)
    v = (rv[:, None, :, None] & cv[None, :, None, :]).astype(np.float32)
    v = np.broadcast_to(v.reshape(1, Ho, Wo, k * k), (B, Ho, Wo, k * k))
    return v.reshape(B * Ho * Wo, k * k)


def _conv_w_matrix(w):
    """torch (Cout, Cin, kh, kw) -> (kh*kw*Cin, Cout) tap-major matrix."""
    cout, cin, kh, kw = w.shape
    return w.transpose(2, 3, 1, 0).reshape(kh * kw * cin, cout)


def _bn_affine(gamma, beta, mean, var):
    scale = gamma * jax.lax.rsqrt(var + BN_EPS)
    return scale, beta - mean * scale


# ----------------------------- parameters -----------------------------


def init_params(key, image_channels, dim_img, class_dim, style_dim):
    keys = iter(jax.random.split(key, 128))

    def nrm(shape, scale=0.1):
        return scale * jax.random.normal(next(keys), shape, jnp.float32)

    p = {"conv1_w": nrm((dim_img, image_channels, 3, 3))}
    specs = [(dim_img, 2 * dim_img), (2 * dim_img, 3 * dim_img),
             (3 * dim_img, 4 * dim_img), (4 * dim_img, 5 * dim_img)]
    blocks = []
    for cin, cout in specs:
        blocks.append(dict(
            bn1_gamma=1.0 + nrm((cin,)), bn1_beta=nrm((cin,)),
            bn1_mean=jnp.zeros((cin,), jnp.float32),
            bn1_var=jnp.ones((cin,), jnp.float32),
            conv1_w=nrm((cin, cin, 1, 1)),
            bn2_gamma=1.0 + nrm((cin,)), bn2_beta=nrm((cin,)),
            bn2_mean=jnp.zeros((cin,), jnp.float32),
            bn2_var=jnp.ones((cin,), jnp.float32),
            conv2_w=nrm((cout, cin, KSIZE, KSIZE)),
            ds_conv_w=nrm((cout, cin, KSIZE, KSIZE)), ds_conv_b=nrm((cout,)),
            ds_bn_gamma=1.0 + nrm((cout,)), ds_bn_beta=nrm((cout,)),
            ds_bn_mean=jnp.zeros((cout,), jnp.float32),
            ds_bn_var=jnp.ones((cout,), jnp.float32),
        ))
    p["blocks"] = blocks

    feat = 5 * dim_img
    p["content_mu_w"] = nrm((class_dim, feat)); p["content_mu_b"] = nrm((class_dim,))
    p["content_logvar_w"] = nrm((class_dim, feat)); p["content_logvar_b"] = nrm((class_dim,))
    if style_dim:
        p["style_mu_w"] = nrm((style_dim, feat)); p["style_mu_b"] = nrm((style_dim,))
        p["style_logvar_w"] = nrm((style_dim, feat)); p["style_logvar_b"] = nrm((style_dim,))
    return p


def prepare_params(params):
    """One-time (outside jit) conversion to kernel-ready folded weights."""
    eye = jnp.eye(NTAPS, dtype=jnp.float32)
    prep = {}

    # conv1 fused into block 1 as a block-diagonal matmul on patch-of-patches.
    wc1 = _conv_w_matrix(params["conv1_w"])                      # (9*Cimg, D)
    prep["w0bd"] = jnp.kron(eye, wc1).astype(jnp.bfloat16)       # (144*Cimg, 16*D)

    blocks = []
    for blk in params["blocks"]:
        cin = blk["conv1_w"].shape[0]
        cout = blk["conv2_w"].shape[0]
        s1, t1 = _bn_affine(blk["bn1_gamma"], blk["bn1_beta"],
                            blk["bn1_mean"], blk["bn1_var"])
        s2, t2 = _bn_affine(blk["bn2_gamma"], blk["bn2_beta"],
                            blk["bn2_mean"], blk["bn2_var"])
        sd, td = _bn_affine(blk["ds_bn_gamma"], blk["ds_bn_beta"],
                            blk["ds_bn_mean"], blk["ds_bn_var"])
        w1 = blk["conv1_w"].reshape(cin, cin).T                  # (in, out)
        w1s2 = w1 * s2[None, :]                                  # fold BN2 scale (fp32)
        aff = jnp.stack([jnp.tile(s1, NTAPS), jnp.tile(t1, NTAPS),
                         jnp.tile(t2, NTAPS)], axis=0).astype(jnp.float32)
        blocks.append(dict(
            aff=aff,                                             # (3, 16*cin)
            w1bd=jnp.kron(eye, w1s2).astype(jnp.bfloat16),       # (16*cin, 16*cin)
            w2=_conv_w_matrix(blk["conv2_w"]).astype(jnp.bfloat16),
            wds=_conv_w_matrix(blk["ds_conv_w"]).astype(jnp.bfloat16),
            sdvec=(A_VAL * sd).reshape(1, cout).astype(jnp.float32),
            bias=(A_VAL * (sd * blk["ds_conv_b"] + td)
                  ).reshape(1, cout).astype(jnp.float32),
        ))
    prep["blocks"] = blocks

    # Linear feature compressor heads fused into one weight matrix.
    ws = [params["content_mu_w"], params["content_logvar_w"]]
    bs = [params["content_mu_b"], params["content_logvar_b"]]
    if "style_mu_w" in params:
        ws += [params["style_mu_w"], params["style_logvar_w"]]
        bs += [params["style_mu_b"], params["style_logvar_b"]]
    prep["wcomp"] = jnp.concatenate([w.T for w in ws], axis=1).astype(jnp.float32)
    prep["bcomp"] = jnp.concatenate(bs).reshape(1, -1).astype(jnp.float32)
    return prep


# ----------------------------- forward pass -----------------------------

# TODO(synk): Dropout2d(p=0.5) treated as eval-mode identity (no RNG), and
# BatchNorm uses running statistics (eval mode) -- training mode not modeled.
# TODO(synk): only the 'resnet' feature extractor branch is implemented
# ('densenet' branch of get_feature_extractor_img has no Pallas equivalent here).


def encoder_img_forward(prep, x_img, class_dim, style_dim):
    # Single layout transpose at the boundary: NCHW -> NHWC (lane-major C).
    x = x_img.transpose(0, 2, 3, 1).astype(jnp.float32)
    B = x.shape[0]

    # conv1 patch rows, kept spatial; conv1 itself runs inside block 1's kernel.
    h, _, _ = _extract_patches(x, 3, 2, 2)           # (B, 33, 33, 9*Cimg)

    y = None
    n_blocks = len(prep["blocks"])
    for bi, (blk, pad) in enumerate(zip(prep["blocks"], BLOCK_PADS)):
        Hcur, Wcur = h.shape[1], h.shape[2]
        px, Ho, Wo = _extract_patches(h, KSIZE, 2, pad)
        M = B * Ho * Wo
        px = px.reshape(M, -1)

        cin_y = blk["aff"].shape[1] // NTAPS         # head channel count
        vmask = _valid_mask(B, Hcur, Wcur, KSIZE, 2, pad)           # numpy const
        ymask = jnp.asarray(np.repeat(vmask, cin_y, axis=1),
                            dtype=jnp.float32)                      # (M, 16*cin_y)

        is_first = bi == 0
        is_last = bi == n_blocks - 1
        out = fused_res_block(
            px, ymask, blk["aff"], blk["w1bd"], blk["w2"], blk["wds"],
            blk["sdvec"], blk["bias"],
            w0bd=prep["w0bd"] if is_first else None,
            wcomp=prep["wcomp"] if is_last else None,
            bcomp=prep["bcomp"] if is_last else None)

        if is_last:
            y = out                                   # (B, 2*class + 2*style)
        else:
            cout = blk["w2"].shape[1]
            h = out.reshape(B, Ho, Wo, cout)

    mu_content = y[:, :class_dim]
    logvar_content = y[:, class_dim:2 * class_dim]
    if style_dim > 0:
        mu_style = y[:, 2 * class_dim:2 * class_dim + style_dim]
        logvar_style = y[:, 2 * class_dim + style_dim:
                            2 * class_dim + 2 * style_dim]
        return mu_content, logvar_content, mu_style, logvar_style
    return mu_content, logvar_content


# ----------------------------- main -----------------------------

if __name__ == "__main__":
    BATCH, IMG_CH, IMG_SIZE = 2, 1, 64      # 64x64 -> 1x1 after 5 downsamples
    DIM_IMG, CLASS_DIM, STYLE_DIM = 8, 16, 8

    key = jax.random.PRNGKey(0)
    kp, kx = jax.random.split(key)
    params = init_params(kp, IMG_CH, DIM_IMG, CLASS_DIM, STYLE_DIM)
    prep = prepare_params(params)           # one-time folding, outside jit
    x_img = jax.random.normal(kx, (BATCH, IMG_CH, IMG_SIZE, IMG_SIZE),
                              jnp.float32)

    forward = jax.jit(functools.partial(
        encoder_img_forward, class_dim=CLASS_DIM, style_dim=STYLE_DIM))
    outs = forward(prep, x_img)
    outs = jax.block_until_ready(outs)

    assert outs[0].shape == (BATCH, CLASS_DIM)       # mu_content
    assert outs[1].shape == (BATCH, CLASS_DIM)       # logvar_content
    assert outs[2].shape == (BATCH, STYLE_DIM)       # mu_style
    assert outs[3].shape == (BATCH, STYLE_DIM)       # logvar_style
    print("KERNEL_OK")
</pallas_src>

<mosaic_0001>
module attributes {stable_mosaic.version = 11 : i64} {
  func.func @kernel(%arg0: i32, %arg1: memref<256x144xf32, #tpu.memory_space<vmem>>, %arg2: memref<256x128xf32, #tpu.memory_space<vmem>>, %arg3: memref<3x128xf32, #tpu.memory_space<vmem>>, %arg4: memref<144x128xbf16, #tpu.memory_space<vmem>>, %arg5: memref<128x128xbf16, #tpu.memory_space<vmem>>, %arg6: memref<128x16xbf16, #tpu.memory_space<vmem>>, %arg7: memref<128x16xbf16, #tpu.memory_space<vmem>>, %arg8: memref<1x16xf32, #tpu.memory_space<vmem>>, %arg9: memref<1x16xf32, #tpu.memory_space<vmem>>, %arg10: memref<256x16xf32, #tpu.memory_space<vmem>>) attributes {dimension_semantics = [#tpu.dimension_semantics<parallel>], iteration_bounds = array<i64: 2>, scalar_prefetch = 0 : i64, scratch_operands = 0 : i64, tpu.core_type = #tpu.core_type<tc>, window_params = [{transform_indices = @transform_0, window_bounds = array<i64: 256, 144>}, {transform_indices = @transform_1, window_bounds = array<i64: 256, 128>}, {pipeline_mode = #tpu.pipeline_mode<synchronous>, transform_indices = @transform_2, window_bounds = array<i64: 3, 128>}, {pipeline_mode = #tpu.pipeline_mode<synchronous>, transform_indices = @transform_3, window_bounds = array<i64: 144, 128>}, {pipeline_mode = #tpu.pipeline_mode<synchronous>, transform_indices = @transform_4, window_bounds = array<i64: 128, 128>}, {pipeline_mode = #tpu.pipeline_mode<synchronous>, transform_indices = @transform_5, window_bounds = array<i64: 128, 16>}, {pipeline_mode = #tpu.pipeline_mode<synchronous>, transform_indices = @transform_6, window_bounds = array<i64: 128, 16>}, {pipeline_mode = #tpu.pipeline_mode<synchronous>, transform_indices = @transform_7, window_bounds = array<i64: 1, 16>}, {pipeline_mode = #tpu.pipeline_mode<synchronous>, transform_indices = @transform_8, window_bounds = array<i64: 1, 16>}, {transform_indices = @transform_9, window_bounds = array<i64: 256, 16>}]} {
    %c0 = arith.constant 0 : index
    %c0_0 = arith.constant 0 : index
    %0 = vector.load %arg1[%c0, %c0_0] : memref<256x144xf32, #tpu.memory_space<vmem>>, vector<256x144xf32>
    %1 = arith.truncf %0 : vector<256x144xf32> to vector<256x144xbf16>
    %c0_1 = arith.constant 0 : index
    %c0_2 = arith.constant 0 : index
    %2 = vector.load %arg4[%c0_1, %c0_2] : memref<144x128xbf16, #tpu.memory_space<vmem>>, vector<144x128xbf16>
    %cst = arith.constant dense<0.000000e+00> : vector<256x128xf32>
    %3 = tpu.matmul %1, %2, %cst {dimension_numbers = #tpu.dot_dimension_numbers<[1], [0], [0], [1], [0, 0, 1, 1], [], []>} : vector<256x144xbf16>, vector<144x128xbf16>, vector<256x128xf32> -> vector<256x128xf32>
    %c0_3 = arith.constant 0 : index
    %c0_4 = arith.constant 0 : index
    %4 = vector.load %arg3[%c0_3, %c0_4] : memref<3x128xf32, #tpu.memory_space<vmem>>, vector<3x128xf32>
    %5 = vector.extract_strided_slice %4 {offsets = [0, 0], sizes = [1, 128], strides = [1, 1]} : vector<3x128xf32> to vector<1x128xf32>
    %6 = vector.extract_strided_slice %4 {offsets = [1, 0], sizes = [1, 128], strides = [1, 1]} : vector<3x128xf32> to vector<1x128xf32>
    %7 = vector.extract_strided_slice %4 {offsets = [2, 0], sizes = [1, 128], strides = [1, 1]} : vector<3x128xf32> to vector<1x128xf32>
    %8 = vector.broadcast %5 : vector<1x128xf32> to vector<256x128xf32>
    %9 = arith.mulf %3, %8 : vector<256x128xf32>
    %10 = vector.broadcast %6 : vector<1x128xf32> to vector<256x128xf32>
    %11 = arith.addf %9, %10 : vector<256x128xf32>
    %cst_5 = arith.constant 0.000000e+00 : f32
    %12 = vector.broadcast %cst_5 : f32 to vector<256x128xf32>
    %13 = arith.maximumf %11, %12 : vector<256x128xf32>
    %14 = arith.truncf %13 : vector<256x128xf32> to vector<256x128xbf16>
    %c0_6 = arith.constant 0 : index
    %c0_7 = arith.constant 0 : index
    %15 = vector.load %arg5[%c0_6, %c0_7] : memref<128x128xbf16, #tpu.memory_space<vmem>>, vector<128x128xbf16>
    %cst_8 = arith.constant dense<0.000000e+00> : vector<256x128xf32>
    %16 = tpu.matmul %14, %15, %cst_8 {dimension_numbers = #tpu.dot_dimension_numbers<[1], [0], [0], [1], [0, 0, 1, 1], [], []>} : vector<256x128xbf16>, vector<128x128xbf16>, vector<256x128xf32> -> vector<256x128xf32>
    %17 = vector.broadcast %7 : vector<1x128xf32> to vector<256x128xf32>
    %18 = arith.addf %16, %17 : vector<256x128xf32>
    %cst_9 = arith.constant 0.000000e+00 : f32
    %19 = vector.broadcast %cst_9 : f32 to vector<256x128xf32>
    %20 = arith.maximumf %18, %19 : vector<256x128xf32>
    %c0_10 = arith.constant 0 : index
    %c0_11 = arith.constant 0 : index
    %21 = vector.load %arg2[%c0_10, %c0_11] : memref<256x128xf32, #tpu.memory_space<vmem>>, vector<256x128xf32>
    %22 = arith.mulf %20, %21 : vector<256x128xf32>
    %23 = arith.truncf %22 : vector<256x128xf32> to vector<256x128xbf16>
    %c0_12 = arith.constant 0 : index
    %c0_13 = arith.constant 0 : index
    %24 = vector.load %arg6[%c0_12, %c0_13] : memref<128x16xbf16, #tpu.memory_space<vmem>>, vector<128x16xbf16>
    %cst_14 = arith.constant dense<0.000000e+00> : vector<256x16xf32>
    %25 = tpu.matmul %23, %24, %cst_14 {dimension_numbers = #tpu.dot_dimension_numbers<[1], [0], [0], [1], [0, 0, 1, 1], [], []>} : vector<256x128xbf16>, vector<128x16xbf16>, vector<256x16xf32> -> vector<256x16xf32>
    %26 = arith.truncf %3 : vector<256x128xf32> to vector<256x128xbf16>
    %c0_15 = arith.constant 0 : index
    %c0_16 = arith.constant 0 : index
    %27 = vector.load %arg7[%c0_15, %c0_16] : memref<128x16xbf16, #tpu.memory_space<vmem>>, vector<128x16xbf16>
    %cst_17 = arith.constant dense<0.000000e+00> : vector<256x16xf32>
    %28 = tpu.matmul %26, %27, %cst_17 {dimension_numbers = #tpu.dot_dimension_numbers<[1], [0], [0], [1], [0, 0, 1, 1], [], []>} : vector<256x128xbf16>, vector<128x16xbf16>, vector<256x16xf32> -> vector<256x16xf32>
    %cst_18 = arith.constant 3.000000e-01 : f32
    %29 = vector.broadcast %cst_18 : f32 to vector<256x16xf32>
    %30 = arith.mulf %29, %25 : vector<256x16xf32>
    %c0_19 = arith.constant 0 : index
    %c0_20 = arith.constant 0 : index
    %31 = vector.load %arg8[%c0_19, %c0_20] : memref<1x16xf32, #tpu.memory_space<vmem>>, vector<1x16xf32>
    %32 = vector.broadcast %31 : vector<1x16xf32> to vector<256x16xf32>
    %33 = arith.mulf %32, %28 : vector<256x16xf32>
    %34 = arith.addf %30, %33 : vector<256x16xf32>
    %c0_21 = arith.constant 0 : index
    %c0_22 = arith.constant 0 : index
    %35 = vector.load %arg9[%c0_21, %c0_22] : memref<1x16xf32, #tpu.memory_space<vmem>>, vector<1x16xf32>
    %36 = vector.broadcast %35 : vector<1x16xf32> to vector<256x16xf32>
    %37 = arith.addf %34, %36 : vector<256x16xf32>
    %c0_23 = arith.constant 0 : index
    %c0_24 = arith.constant 0 : index
    %38 = vector.load %arg10[%c0_23, %c0_24] : memref<256x16xf32, #tpu.memory_space<vmem>>, vector<256x16xf32>
    tpu.vector_store %arg10[%c0_23, %c0_24], %37 {strides = array<i32>} : memref<256x16xf32, #tpu.memory_space<vmem>>, vector<256x16xf32>,
    return
  }
  func.func @transform_0(%arg0: i32) -> (i32, i32) {
    %c0_i32 = arith.constant 0 : i32
    %c0_i32_0 = arith.constant 0 : i32
    return %arg0, %c0_i32 : i32, i32
  }
  func.func @transform_1(%arg0: i32) -> (i32, i32) {
    %c0_i32 = arith.constant 0 : i32
    %c0_i32_0 = arith.constant 0 : i32
    return %arg0, %c0_i32 : i32, i32
  }
  func.func @transform_2(%arg0: i32) -> (i32, i32) {
    %c0_i32 = arith.constant 0 : i32
    %c0_i32_0 = arith.constant 0 : i32
    %c0_i32_1 = arith.constant 0 : i32
    return %c0_i32, %c0_i32_0 : i32, i32
  }
  func.func @transform_3(%arg0: i32) -> (i32, i32) {
    %c0_i32 = arith.constant 0 : i32
    %c0_i32_0 = arith.constant 0 : i32
    %c0_i32_1 = arith.constant 0 : i32
    return %c0_i32, %c0_i32_0 : i32, i32
  }
  func.func @transform_4(%arg0: i32) -> (i32, i32) {
    %c0_i32 = arith.constant 0 : i32
    %c0_i32_0 = arith.constant 0 : i32
    %c0_i32_1 = arith.constant 0 : i32
    return %c0_i32, %c0_i32_0 : i32, i32
  }
  func.func @transform_5(%arg0: i32) -> (i32, i32) {
    %c0_i32 = arith.constant 0 : i32
    %c0_i32_0 = arith.constant 0 : i32
    %c0_i32_1 = arith.constant 0 : i32
    return %c0_i32, %c0_i32_0 : i32, i32
  }
  func.func @transform_6(%arg0: i32) -> (i32, i32) {
    %c0_i32 = arith.constant 0 : i32
    %c0_i32_0 = arith.constant 0 : i32
    %c0_i32_1 = arith.constant 0 : i32
    return %c0_i32, %c0_i32_0 : i32, i32
  }
  func.func @transform_7(%arg0: i32) -> (i32, i32) {
    %c0_i32 = arith.constant 0 : i32
    %c0_i32_0 = arith.constant 0 : i32
    %c0_i32_1 = arith.constant 0 : i32
    return %c0_i32, %c0_i32_0 : i32, i32
  }
  func.func @transform_8(%arg0: i32) -> (i32, i32) {
    %c0_i32 = arith.constant 0 : i32
    %c0_i32_0 = arith.constant 0 : i32
    %c0_i32_1 = arith.constant 0 : i32
    return %c0_i32, %c0_i32_0 : i32, i32
  }
  func.func @transform_9(%arg0: i32) -> (i32, i32) {
    %c0_i32 = arith.constant 0 : i32
    %c0_i32_0 = arith.constant 0 : i32
    return %arg0, %c0_i32 : i32, i32
  }
}

module attributes {stable_mosaic.version = 11 : i64} {
  func.func @kernel(%arg0: i32, %arg1: memref<128x256xf32, #tpu.memory_space<vmem>>, %arg2: memref<128x256xf32, #tpu.memory_space<vmem>>, %arg3: memref<3x256xf32, #tpu.memory_space<vmem>>, %arg4: memref<256x256xbf16, #tpu.memory_space<vmem>>, %arg5: memref<256x24xbf16, #tpu.memory_space<vmem>>, %arg6: memref<256x24xbf16, #tpu.memory_space<vmem>>, %arg7: memref<1x24xf32, #tpu.memory_space<vmem>>, %arg8: memref<1x24xf32, #tpu.memory_space<vmem>>, %arg9: memref<128x24xf32, #tpu.memory_space<vmem>>) attributes {dimension_semantics = [#tpu.dimension_semantics<parallel>], iteration_bounds = array<i64: 1>, scalar_prefetch = 0 : i64, scratch_operands = 0 : i64, tpu.core_type = #tpu.core_type<tc>, window_params = [{transform_indices = @transform_0, window_bounds = array<i64: 128, 256>}, {transform_indices = @transform_1, window_bounds = array<i64: 128, 256>}, {pipeline_mode = #tpu.pipeline_mode<synchronous>, transform_indices = @transform_2, window_bounds = array<i64: 3, 256>}, {pipeline_mode = #tpu.pipeline_mode<synchronous>, transform_indices = @transform_3, window_bounds = array<i64: 256, 256>}, {pipeline_mode = #tpu.pipeline_mode<synchronous>, transform_indices = @transform_4, window_bounds = array<i64: 256, 24>}, {pipeline_mode = #tpu.pipeline_mode<synchronous>, transform_indices = @transform_5, window_bounds = array<i64: 256, 24>}, {pipeline_mode = #tpu.pipeline_mode<synchronous>, transform_indices = @transform_6, window_bounds = array<i64: 1, 24>}, {pipeline_mode = #tpu.pipeline_mode<synchronous>, transform_indices = @transform_7, window_bounds = array<i64: 1, 24>}, {transform_indices = @transform_8, window_bounds = array<i64: 128, 24>}]} {
    %c0 = arith.constant 0 : index
    %c0_0 = arith.constant 0 : index
    %0 = vector.load %arg1[%c0, %c0_0] : memref<128x256xf32, #tpu.memory_space<vmem>>, vector<128x256xf32>
    %c0_1 = arith.constant 0 : index
    %c0_2 = arith.constant 0 : index
    %1 = vector.load %arg3[%c0_1, %c0_2] : memref<3x256xf32, #tpu.memory_space<vmem>>, vector<3x256xf32>
    %2 = vector.extract_strided_slice %1 {offsets = [0, 0], sizes = [1, 256], strides = [1, 1]} : vector<3x256xf32> to vector<1x256xf32>
    %3 = vector.extract_strided_slice %1 {offsets = [1, 0], sizes = [1, 256], strides = [1, 1]} : vector<3x256xf32> to vector<1x256xf32>
    %4 = vector.extract_strided_slice %1 {offsets = [2, 0], sizes = [1, 256], strides = [1, 1]} : vector<3x256xf32> to vector<1x256xf32>
    %5 = vector.broadcast %2 : vector<1x256xf32> to vector<128x256xf32>
    %6 = arith.mulf %0, %5 : vector<128x256xf32>
    %7 = vector.broadcast %3 : vector<1x256xf32> to vector<128x256xf32>
    %8 = arith.addf %6, %7 : vector<128x256xf32>
    %cst = arith.constant 0.000000e+00 : f32
    %9 = vector.broadcast %cst : f32 to vector<128x256xf32>
    %10 = arith.maximumf %8, %9 : vector<128x256xf32>
    %11 = arith.truncf %10 : vector<128x256xf32> to vector<128x256xbf16>
    %c0_3 = arith.constant 0 : index
    %c0_4 = arith.constant 0 : index
    %12 = vector.load %arg4[%c0_3, %c0_4] : memref<256x256xbf16, #tpu.memory_space<vmem>>, vector<256x256xbf16>
    %cst_5 = arith.constant dense<0.000000e+00> : vector<128x256xf32>
    %13 = tpu.matmul %11, %12, %cst_5 {dimension_numbers = #tpu.dot_dimension_numbers<[1], [0], [0], [1], [0, 0, 1, 1], [], []>} : vector<128x256xbf16>, vector<256x256xbf16>, vector<128x256xf32> -> vector<128x256xf32>
    %14 = vector.broadcast %4 : vector<1x256xf32> to vector<128x256xf32>
    %15 = arith.addf %13, %14 : vector<128x256xf32>
    %cst_6 = arith.constant 0.000000e+00 : f32
    %16 = vector.broadcast %cst_6 : f32 to vector<128x256xf32>
    %17 = arith.maximumf %15, %16 : vector<128x256xf32>
    %c0_7 = arith.constant 0 : index
    %c0_8 = arith.constant 0 : index
    %18 = vector.load %arg2[%c0_7, %c0_8] : memref<128x256xf32, #tpu.memory_space<vmem>>, vector<128x256xf32>
    %19 = arith.mulf %17, %18 : vector<128x256xf32>
    %20 = arith.truncf %19 : vector<128x256xf32> to vector<128x256xbf16>
    %c0_9 = arith.constant 0 : index
    %c0_10 = arith.constant 0 : index
    %21 = vector.load %arg5[%c0_9, %c0_10] : memref<256x24xbf16, #tpu.memory_space<vmem>>, vector<256x24xbf16>
    %cst_11 = arith.constant dense<0.000000e+00> : vector<128x24xf32>
    %22 = tpu.matmul %20, %21, %cst_11 {dimension_numbers = #tpu.dot_dimension_numbers<[1], [0], [0], [1], [0, 0, 1, 1], [], []>} : vector<128x256xbf16>, vector<256x24xbf16>, vector<128x24xf32> -> vector<128x24xf32>
    %23 = arith.truncf %0 : vector<128x256xf32> to vector<128x256xbf16>
    %c0_12 = arith.constant 0 : index
    %c0_13 = arith.constant 0 : index
    %24 = vector.load %arg6[%c0_12, %c0_13] : memref<256x24xbf16, #tpu.memory_space<vmem>>, vector<256x24xbf16>
    %cst_14 = arith.constant dense<0.000000e+00> : vector<128x24xf32>
    %25 = tpu.matmul %23, %24, %cst_14 {dimension_numbers = #tpu.dot_dimension_numbers<[1], [0], [0], [1], [0, 0, 1, 1], [], []>} : vector<128x256xbf16>, vector<256x24xbf16>, vector<128x24xf32> -> vector<128x24xf32>
    %cst_15 = arith.constant 3.000000e-01 : f32
    %26 = vector.broadcast %cst_15 : f32 to vector<128x24xf32>
    %27 = arith.mulf %26, %22 : vector<128x24xf32>
    %c0_16 = arith.constant 0 : index
    %c0_17 = arith.constant 0 : index
    %28 = vector.load %arg7[%c0_16, %c0_17] : memref<1x24xf32, #tpu.memory_space<vmem>>, vector<1x24xf32>
    %29 = vector.broadcast %28 : vector<1x24xf32> to vector<128x24xf32>
    %30 = arith.mulf %29, %25 : vector<128x24xf32>
    %31 = arith.addf %27, %30 : vector<128x24xf32>
    %c0_18 = arith.constant 0 : index
    %c0_19 = arith.constant 0 : index
    %32 = vector.load %arg8[%c0_18, %c0_19] : memref<1x24xf32, #tpu.memory_space<vmem>>, vector<1x24xf32>
    %33 = vector.broadcast %32 : vector<1x24xf32> to vector<128x24xf32>
    %34 = arith.addf %31, %33 : vector<128x24xf32>
    %c0_20 = arith.constant 0 : index
    %c0_21 = arith.constant 0 : index
    %35 = vector.load %arg9[%c0_20, %c0_21] : memref<128x24xf32, #tpu.memory_space<vmem>>, vector<128x24xf32>
    tpu.vector_store %arg9[%c0_20, %c0_21], %34 {strides = array<i32>} : memref<128x24xf32, #tpu.memory_space<vmem>>, vector<128x24xf32>,
    return
  }
  func.func @transform_0(%arg0: i32) -> (i32, i32) {
    %c0_i32 = arith.constant 0 : i32
    %c0_i32_0 = arith.constant 0 : i32
    return %arg0, %c0_i32 : i32, i32
  }
  func.func @transform_1(%arg0: i32) -> (i32, i32) {
    %c0_i32 = arith.constant 0 : i32
    %c0_i32_0 = arith.constant 0 : i32
    return %arg0, %c0_i32 : i32, i32
  }
  func.func @transform_2(%arg0: i32) -> (i32, i32) {
    %c0_i32 = arith.constant 0 : i32
    %c0_i32_0 = arith.constant 0 : i32
    %c0_i32_1 = arith.constant 0 : i32
    return %c0_i32, %c0_i32_0 : i32, i32
  }
  func.func @transform_3(%arg0: i32) -> (i32, i32) {
    %c0_i32 = arith.constant 0 : i32
    %c0_i32_0 = arith.constant 0 : i32
    %c0_i32_1 = arith.constant 0 : i32
    return %c0_i32, %c0_i32_0 : i32, i32
  }
  func.func @transform_4(%arg0: i32) -> (i32, i32) {
    %c0_i32 = arith.constant 0 : i32
    %c0_i32_0 = arith.constant 0 : i32
    %c0_i32_1 = arith.constant 0 : i32
    return %c0_i32, %c0_i32_0 : i32, i32
  }
  func.func @transform_5(%arg0: i32) -> (i32, i32) {
    %c0_i32 = arith.constant 0 : i32
    %c0_i32_0 = arith.constant 0 : i32
    %c0_i32_1 = arith.constant 0 : i32
    return %c0_i32, %c0_i32_0 : i32, i32
  }
  func.func @transform_6(%arg0: i32) -> (i32, i32) {
    %c0_i32 = arith.constant 0 : i32
    %c0_i32_0 = arith.constant 0 : i32
    %c0_i32_1 = arith.constant 0 : i32
    return %c0_i32, %c0_i32_0 : i32, i32
  }
  func.func @transform_7(%arg0: i32) -> (i32, i32) {
    %c0_i32 = arith.constant 0 : i32
    %c0_i32_0 = arith.constant 0 : i32
    %c0_i32_1 = arith.constant 0 : i32
    return %c0_i32, %c0_i32_0 : i32, i32
  }
  func.func @transform_8(%arg0: i32) -> (i32, i32) {
    %c0_i32 = arith.constant 0 : i32
    %c0_i32_0 = arith.constant 0 : i32
    return %arg0, %c0_i32 : i32, i32
  }
}

module attributes {stable_mosaic.version = 11 : i64} {
  func.func @kernel(%arg0: i32, %arg1: memref<32x384xf32, #tpu.memory_space<vmem>>, %arg2: memref<32x384xf32, #tpu.memory_space<vmem>>, %arg3: memref<3x384xf32, #tpu.memory_space<vmem>>, %arg4: memref<384x384xbf16, #tpu.memory_space<vmem>>, %arg5: memref<384x32xbf16, #tpu.memory_space<vmem>>, %arg6: memref<384x32xbf16, #tpu.memory_space<vmem>>, %arg7: memref<1x32xf32, #tpu.memory_space<vmem>>, %arg8: memref<1x32xf32, #tpu.memory_space<vmem>>, %arg9: memref<32x32xf32, #tpu.memory_space<vmem>>) attributes {dimension_semantics = [#tpu.dimension_semantics<parallel>], iteration_bounds = array<i64: 1>, scalar_prefetch = 0 : i64, scratch_operands = 0 : i64, tpu.core_type = #tpu.core_type<tc>, window_params = [{transform_indices = @transform_0, window_bounds = array<i64: 32, 384>}, {transform_indices = @transform_1, window_bounds = array<i64: 32, 384>}, {pipeline_mode = #tpu.pipeline_mode<synchronous>, transform_indices = @transform_2, window_bounds = array<i64: 3, 384>}, {pipeline_mode = #tpu.pipeline_mode<synchronous>, transform_indices = @transform_3, window_bounds = array<i64: 384, 384>}, {pipeline_mode = #tpu.pipeline_mode<synchronous>, transform_indices = @transform_4, window_bounds = array<i64: 384, 32>}, {pipeline_mode = #tpu.pipeline_mode<synchronous>, transform_indices = @transform_5, window_bounds = array<i64: 384, 32>}, {pipeline_mode = #tpu.pipeline_mode<synchronous>, transform_indices = @transform_6, window_bounds = array<i64: 1, 32>}, {pipeline_mode = #tpu.pipeline_mode<synchronous>, transform_indices = @transform_7, window_bounds = array<i64: 1, 32>}, {transform_indices = @transform_8, window_bounds = array<i64: 32, 32>}]} {
    %c0 = arith.constant 0 : index
    %c0_0 = arith.constant 0 : index
    %0 = vector.load %arg1[%c0, %c0_0] : memref<32x384xf32, #tpu.memory_space<vmem>>, vector<32x384xf32>
    %c0_1 = arith.constant 0 : index
    %c0_2 = arith.constant 0 : index
    %1 = vector.load %arg3[%c0_1, %c0_2] : memref<3x384xf32, #tpu.memory_space<vmem>>, vector<3x384xf32>
    %2 = vector.extract_strided_slice %1 {offsets = [0, 0], sizes = [1, 384], strides = [1, 1]} : vector<3x384xf32> to vector<1x384xf32>
    %3 = vector.extract_strided_slice %1 {offsets = [1, 0], sizes = [1, 384], strides = [1, 1]} : vector<3x384xf32> to vector<1x384xf32>
    %4 = vector.extract_strided_slice %1 {offsets = [2, 0], sizes = [1, 384], strides = [1, 1]} : vector<3x384xf32> to vector<1x384xf32>
    %5 = vector.broadcast %2 : vector<1x384xf32> to vector<32x384xf32>
    %6 = arith.mulf %0, %5 : vector<32x384xf32>
    %7 = vector.broadcast %3 : vector<1x384xf32> to vector<32x384xf32>
    %8 = arith.addf %6, %7 : vector<32x384xf32>
    %cst = arith.constant 0.000000e+00 : f32
    %9 = vector.broadcast %cst : f32 to vector<32x384xf32>
    %10 = arith.maximumf %8, %9 : vector<32x384xf32>
    %11 = arith.truncf %10 : vector<32x384xf32> to vector<32x384xbf16>
    %c0_3 = arith.constant 0 : index
    %c0_4 = arith.constant 0 : index
    %12 = vector.load %arg4[%c0_3, %c0_4] : memref<384x384xbf16, #tpu.memory_space<vmem>>, vector<384x384xbf16>
    %cst_5 = arith.constant dense<0.000000e+00> : vector<32x384xf32>
    %13 = tpu.matmul %11, %12, %cst_5 {dimension_numbers = #tpu.dot_dimension_numbers<[1], [0], [0], [1], [0, 0, 1, 1], [], []>} : vector<32x384xbf16>, vector<384x384xbf16>, vector<32x384xf32> -> vector<32x384xf32>
    %14 = vector.broadcast %4 : vector<1x384xf32> to vector<32x384xf32>
    %15 = arith.addf %13, %14 : vector<32x384xf32>
    %cst_6 = arith.constant 0.000000e+00 : f32
    %16 = vector.broadcast %cst_6 : f32 to vector<32x384xf32>
    %17 = arith.maximumf %15, %16 : vector<32x384xf32>
    %c0_7 = arith.constant 0 : index
    %c0_8 = arith.constant 0 : index
    %18 = vector.load %arg2[%c0_7, %c0_8] : memref<32x384xf32, #tpu.memory_space<vmem>>, vector<32x384xf32>
    %19 = arith.mulf %17, %18 : vector<32x384xf32>
    %20 = arith.truncf %19 : vector<32x384xf32> to vector<32x384xbf16>
    %c0_9 = arith.constant 0 : index
    %c0_10 = arith.constant 0 : index
    %21 = vector.load %arg5[%c0_9, %c0_10] : memref<384x32xbf16, #tpu.memory_space<vmem>>, vector<384x32xbf16>
    %cst_11 = arith.constant dense<0.000000e+00> : vector<32x32xf32>
    %22 = tpu.matmul %20, %21, %cst_11 {dimension_numbers = #tpu.dot_dimension_numbers<[1], [0], [0], [1], [0, 0, 1, 1], [], []>} : vector<32x384xbf16>, vector<384x32xbf16>, vector<32x32xf32> -> vector<32x32xf32>
    %23 = arith.truncf %0 : vector<32x384xf32> to vector<32x384xbf16>
    %c0_12 = arith.constant 0 : index
    %c0_13 = arith.constant 0 : index
    %24 = vector.load %arg6[%c0_12, %c0_13] : memref<384x32xbf16, #tpu.memory_space<vmem>>, vector<384x32xbf16>
    %cst_14 = arith.constant dense<0.000000e+00> : vector<32x32xf32>
    %25 = tpu.matmul %23, %24, %cst_14 {dimension_numbers = #tpu.dot_dimension_numbers<[1], [0], [0], [1], [0, 0, 1, 1], [], []>} : vector<32x384xbf16>, vector<384x32xbf16>, vector<32x32xf32> -> vector<32x32xf32>
    %cst_15 = arith.constant 3.000000e-01 : f32
    %26 = vector.broadcast %cst_15 : f32 to vector<32x32xf32>
    %27 = arith.mulf %26, %22 : vector<32x32xf32>
    %c0_16 = arith.constant 0 : index
    %c0_17 = arith.constant 0 : index
    %28 = vector.load %arg7[%c0_16, %c0_17] : memref<1x32xf32, #tpu.memory_space<vmem>>, vector<1x32xf32>
    %29 = vector.broadcast %28 : vector<1x32xf32> to vector<32x32xf32>
    %30 = arith.mulf %29, %25 : vector<32x32xf32>
    %31 = arith.addf %27, %30 : vector<32x32xf32>
    %c0_18 = arith.constant 0 : index
    %c0_19 = arith.constant 0 : index
    %32 = vector.load %arg8[%c0_18, %c0_19] : memref<1x32xf32, #tpu.memory_space<vmem>>, vector<1x32xf32>
    %33 = vector.broadcast %32 : vector<1x32xf32> to vector<32x32xf32>
    %34 = arith.addf %31, %33 : vector<32x32xf32>
    %c0_20 = arith.constant 0 : index
    %c0_21 = arith.constant 0 : index
    %35 = vector.load %arg9[%c0_20, %c0_21] : memref<32x32xf32, #tpu.memory_space<vmem>>, vector<32x32xf32>
    tpu.vector_store %arg9[%c0_20, %c0_21], %34 {strides = array<i32>} : memref<32x32xf32, #tpu.memory_space<vmem>>, vector<32x32xf32>,
    return
  }
  func.func @transform_0(%arg0: i32) -> (i32, i32) {
    %c0_i32 = arith.constant 0 : i32
    %c0_i32_0 = arith.constant 0 : i32
    return %arg0, %c0_i32 : i32, i32
  }
  func.func @transform_1(%arg0: i32) -> (i32, i32) {
    %c0_i32 = arith.constant 0 : i32
    %c0_i32_0 = arith.constant 0 : i32
    return %arg0, %c0_i32 : i32, i32
  }
  func.func @transform_2(%arg0: i32) -> (i32, i32) {
    %c0_i32 = arith.constant 0 : i32
    %c0_i32_0 = arith.constant 0 : i32
    %c0_i32_1 = arith.constant 0 : i32
    return %c0_i32, %c0_i32_0 : i32, i32
  }
  func.func @transform_3(%arg0: i32) -> (i32, i32) {
    %c0_i32 = arith.constant 0 : i32
    %c0_i32_0 = arith.constant 0 : i32
    %c0_i32_1 = arith.constant 0 : i32
    return %c0_i32, %c0_i32_0 : i32, i32
  }
  func.func @transform_4(%arg0: i32) -> (i32, i32) {
    %c0_i32 = arith.constant 0 : i32
    %c0_i32_0 = arith.constant 0 : i32
    %c0_i32_1 = arith.constant 0 : i32
    return %c0_i32, %c0_i32_0 : i32, i32
  }
  func.func @transform_5(%arg0: i32) -> (i32, i32) {
    %c0_i32 = arith.constant 0 : i32
    %c0_i32_0 = arith.constant 0 : i32
    %c0_i32_1 = arith.constant 0 : i32
    return %c0_i32, %c0_i32_0 : i32, i32
  }
  func.func @transform_6(%arg0: i32) -> (i32, i32) {
    %c0_i32 = arith.constant 0 : i32
    %c0_i32_0 = arith.constant 0 : i32
    %c0_i32_1 = arith.constant 0 : i32
    return %c0_i32, %c0_i32_0 : i32, i32
  }
  func.func @transform_7(%arg0: i32) -> (i32, i32) {
    %c0_i32 = arith.constant 0 : i32
    %c0_i32_0 = arith.constant 0 : i32
    %c0_i32_1 = arith.constant 0 : i32
    return %c0_i32, %c0_i32_0 : i32, i32
  }
  func.func @transform_8(%arg0: i32) -> (i32, i32) {
    %c0_i32 = arith.constant 0 : i32
    %c0_i32_0 = arith.constant 0 : i32
    return %arg0, %c0_i32 : i32, i32
  }
}

module attributes {stable_mosaic.version = 11 : i64} {
  func.func @kernel(%arg0: i32, %arg1: memref<2x512xf32, #tpu.memory_space<vmem>>, %arg2: memref<2x512xf32, #tpu.memory_space<vmem>>, %arg3: memref<3x512xf32, #tpu.memory_space<vmem>>, %arg4: memref<512x512xbf16, #tpu.memory_space<vmem>>, %arg5: memref<512x40xbf16, #tpu.memory_space<vmem>>, %arg6: memref<512x40xbf16, #tpu.memory_space<vmem>>, %arg7: memref<1x40xf32, #tpu.memory_space<vmem>>, %arg8: memref<1x40xf32, #tpu.memory_space<vmem>>, %arg9: memref<40x48xf32, #tpu.memory_space<vmem>>, %arg10: memref<1x48xf32, #tpu.memory_space<vmem>>, %arg11: memref<2x48xf32, #tpu.memory_space<vmem>>) attributes {dimension_semantics = [#tpu.dimension_semantics<parallel>], iteration_bounds = array<i64: 1>, scalar_prefetch = 0 : i64, scratch_operands = 0 : i64, tpu.core_type = #tpu.core_type<tc>, window_params = [{transform_indices = @transform_0, window_bounds = array<i64: 2, 512>}, {transform_indices = @transform_1, window_bounds = array<i64: 2, 512>}, {pipeline_mode = #tpu.pipeline_mode<synchronous>, transform_indices = @transform_2, window_bounds = array<i64: 3, 512>}, {pipeline_mode = #tpu.pipeline_mode<synchronous>, transform_indices = @transform_3, window_bounds = array<i64: 512, 512>}, {pipeline_mode = #tpu.pipeline_mode<synchronous>, transform_indices = @transform_4, window_bounds = array<i64: 512, 40>}, {pipeline_mode = #tpu.pipeline_mode<synchronous>, transform_indices = @transform_5, window_bounds = array<i64: 512, 40>}, {pipeline_mode = #tpu.pipeline_mode<synchronous>, transform_indices = @transform_6, window_bounds = array<i64: 1, 40>}, {pipeline_mode = #tpu.pipeline_mode<synchronous>, transform_indices = @transform_7, window_bounds = array<i64: 1, 40>}, {pipeline_mode = #tpu.pipeline_mode<synchronous>, transform_indices = @transform_8, window_bounds = array<i64: 40, 48>}, {pipeline_mode = #tpu.pipeline_mode<synchronous>, transform_indices = @transform_9, window_bounds = array<i64: 1, 48>}, {transform_indices = @transform_10, window_bounds = array<i64: 2, 48>}]} {
    %c0 = arith.constant 0 : index
    %c0_0 = arith.constant 0 : index
    %0 = vector.load %arg1[%c0, %c0_0] : memref<2x512xf32, #tpu.memory_space<vmem>>, vector<2x512xf32>
    %c0_1 = arith.constant 0 : index
    %c0_2 = arith.constant 0 : index
    %1 = vector.load %arg3[%c0_1, %c0_2] : memref<3x512xf32, #tpu.memory_space<vmem>>, vector<3x512xf32>
    %2 = vector.extract_strided_slice %1 {offsets = [0, 0], sizes = [1, 512], strides = [1, 1]} : vector<3x512xf32> to vector<1x512xf32>
    %3 = vector.extract_strided_slice %1 {offsets = [1, 0], sizes = [1, 512], strides = [1, 1]} : vector<3x512xf32> to vector<1x512xf32>
    %4 = vector.extract_strided_slice %1 {offsets = [2, 0], sizes = [1, 512], strides = [1, 1]} : vector<3x512xf32> to vector<1x512xf32>
    %5 = vector.broadcast %2 : vector<1x512xf32> to vector<2x512xf32>
    %6 = arith.mulf %0, %5 : vector<2x512xf32>
    %7 = vector.broadcast %3 : vector<1x512xf32> to vector<2x512xf32>
    %8 = arith.addf %6, %7 : vector<2x512xf32>
    %cst = arith.constant 0.000000e+00 : f32
    %9 = vector.broadcast %cst : f32 to vector<2x512xf32>
    %10 = arith.maximumf %8, %9 : vector<2x512xf32>
    %11 = arith.truncf %10 : vector<2x512xf32> to vector<2x512xbf16>
    %c0_3 = arith.constant 0 : index
    %c0_4 = arith.constant 0 : index
    %12 = vector.load %arg4[%c0_3, %c0_4] : memref<512x512xbf16, #tpu.memory_space<vmem>>, vector<512x512xbf16>
    %cst_5 = arith.constant dense<0.000000e+00> : vector<2x512xf32>
    %13 = tpu.matmul %11, %12, %cst_5 {dimension_numbers = #tpu.dot_dimension_numbers<[1], [0], [0], [1], [0, 0, 1, 1], [], []>} : vector<2x512xbf16>, vector<512x512xbf16>, vector<2x512xf32> -> vector<2x512xf32>
    %14 = vector.broadcast %4 : vector<1x512xf32> to vector<2x512xf32>
    %15 = arith.addf %13, %14 : vector<2x512xf32>
    %cst_6 = arith.constant 0.000000e+00 : f32
    %16 = vector.broadcast %cst_6 : f32 to vector<2x512xf32>
    %17 = arith.maximumf %15, %16 : vector<2x512xf32>
    %c0_7 = arith.constant 0 : index
    %c0_8 = arith.constant 0 : index
    %18 = vector.load %arg2[%c0_7, %c0_8] : memref<2x512xf32, #tpu.memory_space<vmem>>, vector<2x512xf32>
    %19 = arith.mulf %17, %18 : vector<2x512xf32>
    %20 = arith.truncf %19 : vector<2x512xf32> to vector<2x512xbf16>
    %c0_9 = arith.constant 0 : index
    %c0_10 = arith.constant 0 : index
    %21 = vector.load %arg5[%c0_9, %c0_10] : memref<512x40xbf16, #tpu.memory_space<vmem>>, vector<512x40xbf16>
    %cst_11 = arith.constant dense<0.000000e+00> : vector<2x40xf32>
    %22 = tpu.matmul %20, %21, %cst_11 {dimension_numbers = #tpu.dot_dimension_numbers<[1], [0], [0], [1], [0, 0, 1, 1], [], []>} : vector<2x512xbf16>, vector<512x40xbf16>, vector<2x40xf32> -> vector<2x40xf32>
    %23 = arith.truncf %0 : vector<2x512xf32> to vector<2x512xbf16>
    %c0_12 = arith.constant 0 : index
    %c0_13 = arith.constant 0 : index
    %24 = vector.load %arg6[%c0_12, %c0_13] : memref<512x40xbf16, #tpu.memory_space<vmem>>, vector<512x40xbf16>
    %cst_14 = arith.constant dense<0.000000e+00> : vector<2x40xf32>
    %25 = tpu.matmul %23, %24, %cst_14 {dimension_numbers = #tpu.dot_dimension_numbers<[1], [0], [0], [1], [0, 0, 1, 1], [], []>} : vector<2x512xbf16>, vector<512x40xbf16>, vector<2x40xf32> -> vector<2x40xf32>
    %cst_15 = arith.constant 3.000000e-01 : f32
    %26 = vector.broadcast %cst_15 : f32 to vector<2x40xf32>
    %27 = arith.mulf %26, %22 : vector<2x40xf32>
    %c0_16 = arith.constant 0 : index
    %c0_17 = arith.constant 0 : index
    %28 = vector.load %arg7[%c0_16, %c0_17] : memref<1x40xf32, #tpu.memory_space<vmem>>, vector<1x40xf32>
    %29 = vector.broadcast %28 : vector<1x40xf32> to vector<2x40xf32>
    %30 = arith.mulf %29, %25 : vector<2x40xf32>
    %31 = arith.addf %27, %30 : vector<2x40xf32>
    %c0_18 = arith.constant 0 : index
    %c0_19 = arith.constant 0 : index
    %32 = vector.load %arg8[%c0_18, %c0_19] : memref<1x40xf32, #tpu.memory_space<vmem>>, vector<1x40xf32>
    %33 = vector.broadcast %32 : vector<1x40xf32> to vector<2x40xf32>
    %34 = arith.addf %31, %33 : vector<2x40xf32>
    %c0_20 = arith.constant 0 : index
    %c0_21 = arith.constant 0 : index
    %35 = vector.load %arg9[%c0_20, %c0_21] : memref<40x48xf32, #tpu.memory_space<vmem>>, vector<40x48xf32>
    %cst_22 = arith.constant dense<0.000000e+00> : vector<2x48xf32>
    %36 = tpu.matmul %34, %35, %cst_22 {dimension_numbers = #tpu.dot_dimension_numbers<[1], [0], [0], [1], [0, 0, 1, 1], [], []>} : vector<2x40xf32>, vector<40x48xf32>, vector<2x48xf32> -> vector<2x48xf32>
    %c0_23 = arith.constant 0 : index
    %c0_24 = arith.constant 0 : index
    %37 = vector.load %arg10[%c0_23, %c0_24] : memref<1x48xf32, #tpu.memory_space<vmem>>, vector<1x48xf32>
    %38 = vector.broadcast %37 : vector<1x48xf32> to vector<2x48xf32>
    %39 = arith.addf %36, %38 : vector<2x48xf32>
    %c0_25 = arith.constant 0 : index
    %c0_26 = arith.constant 0 : index
    %40 = vector.load %arg11[%c0_25, %c0_26] : memref<2x48xf32, #tpu.memory_space<vmem>>, vector<2x48xf32>
    tpu.vector_store %arg11[%c0_25, %c0_26], %39 {strides = array<i32>} : memref<2x48xf32, #tpu.memory_space<vmem>>, vector<2x48xf32>,
    return
  }
  func.func @transform_0(%arg0: i32) -> (i32, i32) {
    %c0_i32 = arith.constant 0 : i32
    %c0_i32_0 = arith.constant 0 : i32
    return %arg0, %c0_i32 : i32, i32
  }
  func.func @transform_1(%arg0: i32) -> (i32, i32) {
    %c0_i32 = arith.constant 0 : i32
    %c0_i32_0 = arith.constant 0 : i32
    return %arg0, %c0_i32 : i32, i32
  }
  func.func @transform_2(%arg0: i32) -> (i32, i32) {
    %c0_i32 = arith.constant 0 : i32
    %c0_i32_0 = arith.constant 0 : i32
    %c0_i32_1 = arith.constant 0 : i32
    return %c0_i32, %c0_i32_0 : i32, i32
  }
  func.func @transform_3(%arg0: i32) -> (i32, i32) {
    %c0_i32 = arith.constant 0 : i32
    %c0_i32_0 = arith.constant 0 : i32
    %c0_i32_1 = arith.constant 0 : i32
    return %c0_i32, %c0_i32_0 : i32, i32
  }
  func.func @transform_4(%arg0: i32) -> (i32, i32) {
    %c0_i32 = arith.constant 0 : i32
    %c0_i32_0 = arith.constant 0 : i32
    %c0_i32_1 = arith.constant 0 : i32
    return %c0_i32, %c0_i32_0 : i32, i32
  }
  func.func @transform_5(%arg0: i32) -> (i32, i32) {
    %c0_i32 = arith.constant 0 : i32
    %c0_i32_0 = arith.constant 0 : i32
    %c0_i32_1 = arith.constant 0 : i32
    return %c0_i32, %c0_i32_0 : i32, i32
  }
  func.func @transform_6(%arg0: i32) -> (i32, i32) {
    %c0_i32 = arith.constant 0 : i32
    %c0_i32_0 = arith.constant 0 : i32
    %c0_i32_1 = arith.constant 0 : i32
    return %c0_i32, %c0_i32_0 : i32, i32
  }
  func.func @transform_7(%arg0: i32) -> (i32, i32) {
    %c0_i32 = arith.constant 0 : i32
    %c0_i32_0 = arith.constant 0 : i32
    %c0_i32_1 = arith.constant 0 : i32
    return %c0_i32, %c0_i32_0 : i32, i32
  }
  func.func @transform_8(%arg0: i32) -> (i32, i32) {
    %c0_i32 = arith.constant 0 : i32
    %c0_i32_0 = arith.constant 0 : i32
    %c0_i32_1 = arith.constant 0 : i32
    return %c0_i32, %c0_i32_0 : i32, i32
  }
  func.func @transform_9(%arg0: i32) -> (i32, i32) {
    %c0_i32 = arith.constant 0 : i32
    %c0_i32_0 = arith.constant 0 : i32
    %c0_i32_1 = arith.constant 0 : i32
    return %c0_i32, %c0_i32_0 : i32, i32
  }
  func.func @transform_10(%arg0: i32) -> (i32, i32) {
    %c0_i32 = arith.constant 0 : i32
    %c0_i32_0 = arith.constant 0 : i32
    return %arg0, %c0_i32 : i32, i32
  }
}

</mosaic_0001>

<bundles_post_ra>
// kernel: encoder_img_forward.4
= control target key start
LH: loop header
LB: loop body
LE: loop exit
PB: predicated region body
PF: predicated region fallthrough
CT: control target
= control target key end

     0   :  { %s2309_s30 = smov 0   ;;  %s3059_s0 = inlined_call_operand.vmem [shape: f32[512,144], index: 0, kind: input, shape index: {}]   ;;  %s3060_s1 = inlined_call_operand.vmem [shape: f32[512,128], index: 1, kind: input, shape index: {}]   ;;  %s3061_s2 = inlined_call_operand.vmem [shape: f32[3,128], index: 2, kind: input, shape index: {}]   ;;  %s3062_s3 = inlined_call_operand.vmem [shape: bf16[144,128], index: 3, kind: input, shape index: {}]   ;;  %s3063_s4 = inlined_call_operand.vmem [shape: bf16[128,128], index: 4, kind: input, shape index: {}]   ;;  %s3064_s5 = inlined_call_operand.vmem [shape: bf16[128,16], index: 5, kind: input, shape index: {}]   ;;  %s3065_s6 = inlined_call_operand.vmem [shape: bf16[128,16], index: 6, kind: input, shape index: {}]   ;;  %s3066_s7 = inlined_call_operand.vmem [shape: f32[1,16], index: 7, kind: input, shape index: {}]   ;;  %s3067_s8 = inlined_call_operand.vmem [shape: f32[1,16], index: 8, kind: input, shape index: {}]   ;;  %s3068_s9 = inlined_call_operand.vmem [shape: f32[512,16], index: 9, kind: output, shape index: {}]  }
   0x1 LB: > { %s1910_s10 = sadd.s32 4294967295, %s2256_s30   ;;  %p1914_p0 = scmp.ge.s32.totalorder %s2256_s30, 1  ;;  %s2256_s30 = sphi %s2309_s30, %s19_s30  }
   0x2   : > { %p300_p1 = scmp.lt.s32.totalorder %s2256_s30, 3 }
   0x4   : > { %p301_p2 = pnand %p1914_p0, %p300_p1 }
   0x5   : > { %v2217_v0 = vld [vmem:[%s3062_s3] sm:$0xff] (!%p301_p2)   ;;  %v2258_v1 = vmov (!%p301_p2), 0   ;;  %s1915_s13 = sshll.u32 (!%p301_p2), %s1910_s10, 5  ;;  %v2218_v2 = vld [vmem:[%s3062_s3 + $0x8] sm:$0xff] (!%p301_p2)   ;;  %v2219_v3 = vld [vmem:[%s3062_s3 + $0x10] sm:$0xff] (!%p301_p2)   ;;  %vm530_vm0 = vcmask (!%p301_p2), 130048  }
   0x6   : > { %304 = sbr.rel (%p301_p2) target bundleno = 894 (0x37e), region = 56  ;;  %579 = vmatprep.subr.bf16.mxu0 (!%p301_p2), %v2258_v1  ;;  %p343_p3 = scmp.lt.s32.totalorder (!%p301_p2), %s1915_s13, 63  ;;  %v2220_v6 = vld [vmem:[%s3062_s3 + $0x18] sm:$0xff] (!%p301_p2)   ;;  %v2221_v8 = vld [vmem:[%s3062_s3 + $0x20] sm:$0xff] (!%p301_p2)   ;;  %v2222_v9 = vld [vmem:[%s3062_s3 + $0x28] sm:$0xff] (!%p301_p2)  }
   0x7   : > { %580 = vmatpush1.bf16.msra.mxu0 (!%p301_p2), %v2217_v0  ;;  %v2223_v10 = vld [vmem:[%s3062_s3 + $0x30] sm:$0xff] (!%p301_p2)   ;;  %v2224_v11 = vld [vmem:[%s3062_s3 + $0x38] sm:$0xff] (!%p301_p2)   ;;  %v2225_v12 = vld [vmem:[%s3062_s3 + $0x40] sm:$0xff] (!%p301_p2)  }
   0x8   : > { %581 = vmatprep.subr.bf16.mxu0 (!%p301_p2), %v2258_v1  ;;  %v2226_v17 = vld [vmem:[%s3063_s4] sm:$0xff] (!%p301_p2)   ;;  %v2227_v19 = vld [vmem:[%s3063_s4 + $0x8] sm:$0xff] (!%p301_p2)   ;;  %v2228_v23 = vld [vmem:[%s3063_s4 + $0x10] sm:$0xff] (!%p301_p2)  }
   0x9   : > { %2192 = vmatprep.subr.bf16.mxu1 (!%p301_p2), %v2226_v17  ;;  %v2229_v26 = vld [vmem:[%s3063_s4 + $0x18] sm:$0xff] (!%p301_p2)  }
   0xa   : > { %2200 = vmatpush3.bf16.msra.mxu1 (!%p301_p2), %v2226_v17 }
   0xb   : > { %582 = vmatpush1.bf16.msra.mxu0 (!%p301_p2), %v2218_v2  ;;  %2193 = vmatprep.subr.bf16.mxu1 (!%p301_p2), %v2227_v19 }
   0xc   : > { %583 = vmatprep.subr.bf16.mxu0 (!%p301_p2), %v2258_v1 }
   0xd   : > { %s3076_s13 = smov (!%p343_p3, %s1915_s13), 63 }
   0xe   : > { %s1975_s18 = sshll.u32 %s3076_s13, 4  ;;  %2201 = vmatpush3.bf16.msra.mxu1 %v2227_v19  ;;  %s1919_s14 = sshll.u32 %s3076_s13, 3 }
   0xf   : > { %s2332_s21 = scalar_lea.vmem %s3059_s0, %s1975_s18  ;;  %584 = vmatpush1.bf16.msra.mxu0 %v2219_v3  ;;  %2194 = vmatprep.subr.bf16.mxu1 %v2228_v23  ;;  %s2704_s16 = scalar_lea.vmem %s3060_s1, %s1919_s14 }
  0x10   : > { %v363_v4 = vld [vmem:[%s2332_s21 + $0x8] sm:$0xff]  ;;  %v365_v5 = vld [vmem:[%s2332_s21 + $0x18] sm:$0xff]  ;;  %585 = vmatprep.subr.bf16.mxu0 %v2258_v1  ;;  %v362_v13 = vld [vmem:[%s2332_s21] sm:$0xff]  ;;  %s2905_s19 = scalar_lea.vmem %s3068_s9, %s1919_s14 }
  0x11   : > { %v427_v7 = vpack.c.bf16 %v365_v5, %v363_v4  ;;  %v364_v14 = vld [vmem:[%s2332_s21 + $0x10] sm:$0xff]  ;;  %v367_v15 = vld [vmem:[%s2332_s21 + $0x28] sm:$0xff]  ;;  %v369_v16 = vld [vmem:[%s2332_s21 + $0x38] sm:$0xff] }
  0x12   : > { %v426_v18 = vpack.c.bf16 %v364_v14, %v362_v13  ;;  %v429_v20 = vpack.c.bf16 %v369_v16, %v367_v15  ;;  %v366_v21 = vld [vmem:[%s2332_s21 + $0x20] sm:$0xff]  ;;  %v368_v22 = vld [vmem:[%s2332_s21 + $0x30] sm:$0xff]  ;;  %v371_v24 = vld [vmem:[%s2332_s21 + $0x48] sm:$0xff]  ;;  %2202 = vmatpush3.bf16.msra.mxu1 %v2228_v23 }
  0x13   : > { %1931 = vmatprep.mubr.msk.bf16.mxu0 %vm530_vm0, %v427_v7  ;;  %586 = vmatpush1.bf16.msra.mxu0 %v2220_v6  ;;  %v373_v25 = vld [vmem:[%s2332_s21 + $0x58] sm:$0xff]  ;;  %v428_v27 = vpack.c.bf16 %v368_v22, %v366_v21  ;;  %v370_v29 = vld [vmem:[%s2332_s21 + $0x40] sm:$0xff]  ;;  %v372_v30 = vld [vmem:[%s2332_s21 + $0x50] sm:$0xff] }
  0x14   : > { %587 = vmatprep.subr.bf16.mxu0 %v2258_v1  ;;  %v431_v28 = vpack.c.bf16 %v373_v25, %v371_v24  ;;  %2195 = vmatprep.subr.bf16.mxu1 %v2229_v26  ;;  %v375_v31 = vld [vmem:[%s2332_s21 + $0x68] sm:$0xff]  ;;  %v377_v32 = vld [vmem:[%s2332_s21 + $0x78] sm:$0xff]  ;;  %v430_v33 = vpack.c.bf16 %v372_v30, %v370_v29  ;;  %v374_v35 = vld [vmem:[%s2332_s21 + $0x60] sm:$0xff] }
  0x15   : > { %v433_v34 = vpack.c.bf16 %v377_v32, %v375_v31  ;;  %v376_v36 = vld [vmem:[%s2332_s21 + $0x70] sm:$0xff]  ;;  %v379_v37 = vld [vmem:[%s2332_s21 + $0x88] sm:$0xff]  ;;  %v381_v38 = vld [vmem:[%s2332_s21 + $0x98] sm:$0xff] }
  0x16   : > { %2203 = vmatpush3.bf16.msra.mxu1 %v2229_v26  ;;  %v432_v39 = vpack.c.bf16 %v376_v36, %v374_v35  ;;  %v435_v40 = vpack.c.bf16 %v381_v38, %v379_v37  ;;  %v378_v41 = vld [vmem:[%s2332_s21 + $0x80] sm:$0xff]  ;;  %v380_v42 = vld [vmem:[%s2332_s21 + $0x90] sm:$0xff]  ;;  %v383_v43 = vld [vmem:[%s2332_s21 + $0xa8] sm:$0xff] }
  0x17   : > { %588 = vmatpush1.bf16.msra.mxu0 %v2221_v8  ;;  %v385_v44 = vld [vmem:[%s2332_s21 + $0xb8] sm:$0xff]  ;;  %v434_v45 = vpack.c.bf16 %v380_v42, %v378_v41  ;;  %v382_v47 = vld [vmem:[%s2332_s21 + $0xa0] sm:$0xff]  ;;  %v384_v48 = vld [vmem:[%s2332_s21 + $0xb0] sm:$0xff] }
  0x18   : > { %589 = vmatprep.subr.bf16.mxu0 %v2258_v1  ;;  %v437_v46 = vpack.c.bf16 %v385_v44, %v383_v43  ;;  %v387_v49 = vld [vmem:[%s2332_s21 + $0xc8] sm:$0xff]  ;;  %v389_v50 = vld [vmem:[%s2332_s21 + $0xd8] sm:$0xff]  ;;  %v436_v51 = vpack.c.bf16 %v384_v48, %v382_v47  ;;  %v386_v53 = vld [vmem:[%s2332_s21 + $0xc0] sm:$0xff] }
  0x19   : > { %v439_v52 = vpack.c.bf16 %v389_v50, %v387_v49  ;;  %v388_v54 = vld [vmem:[%s2332_s21 + $0xd0] sm:$0xff]  ;;  %v391_v55 = vld [vmem:[%s2332_s21 + $0xe8] sm:$0xff]  ;;  %v393_v56 = vld [vmem:[%s2332_s21 + $0xf8] sm:$0xff]  ;;  %v741_v50 = vlaneseq }
  0x1a   : > { %v438_v57 = vpack.c.bf16 %v388_v54, %v386_v53  ;;  %v441_v58 = vpack.c.bf16 %v393_v56, %v391_v55  ;;  %v390_v59 = vld [vmem:[%s2332_s21 + $0xe0] sm:$0xff]  ;;  %v392_v60 = vld [vmem:[%s2332_s21 + $0xf0] sm:$0xff]  ;;  %v395_v61 = vld [vmem:[%s2332_s21 + $0x108] sm:$0xff] }
  0x1b   : > { %590 = vmatpush1.bf16.msra.mxu0 %v2222_v9  ;;  %v397_v62 = vld [vmem:[%s2332_s21 + $0x118] sm:$0xff]  ;;  %v440_v63 = vpack.c.bf16 %v392_v60, %v390_v59  ;;  %v396_v2 = vld [vmem:[%s2332_s21 + $0x110] sm:$0xff]  ;;  %v399_v3 = vld [vmem:[%s2332_s21 + $0x128] sm:$0xff] }
  0x1c   : > { %591 = vmatprep.subr.bf16.mxu0 %v2258_v1  ;;  %v443_v0 = vpack.c.bf16 %v397_v62, %v395_v61  ;;  %v401_v4 = vld [vmem:[%s2332_s21 + $0x138] sm:$0xff]  ;;  %v398_v7 = vld [vmem:[%s2332_s21 + $0x120] sm:$0xff]  ;;  %v400_v8 = vld [vmem:[%s2332_s21 + $0x130] sm:$0xff] }
  0x1d   : > { %v445_v6 = vpack.c.bf16 %v401_v4, %v399_v3  ;;  %v403_v9 = vld [vmem:[%s2332_s21 + $0x148] sm:$0xff]  ;;  %v402_v13 = vld [vmem:[%s2332_s21 + $0x140] sm:$0xff]  ;;  %v404_v14 = vld [vmem:[%s2332_s21 + $0x150] sm:$0xff] }
  0x1e   : > { %v407_v15 = vld [vmem:[%s2332_s21 + $0x168] sm:$0xff]  ;;  %v409_v16 = vld [vmem:[%s2332_s21 + $0x178] sm:$0xff]  ;;  %v2230_v24 = vld [vmem:[%s3063_s4 + $0x20] sm:$0xff]  }
  0x1f   : > { %592 = vmatpush1.bf16.msra.mxu0 %v2223_v10  ;;  %v405_v10 = vld [vmem:[%s2332_s21 + $0x158] sm:$0xff]  ;;  %v411_v21 = vld [vmem:[%s2332_s21 + $0x188] sm:$0xff]  ;;  %2196 = vmatprep.subr.bf16.mxu1 %v2230_v24  ;;  %v2232_v32 = vld [vmem:[%s3063_s4 + $0x30] sm:$0xff]  }
  0x20   : > { %593 = vmatprep.subr.bf16.mxu0 %v2258_v1  ;;  %v413_v22 = vld [vmem:[%s2332_s21 + $0x198] sm:$0xff]  ;;  %2204 = vmatpush3.bf16.msra.mxu1 %v2230_v24  ;;  %v415_v29 = vld [vmem:[%s2332_s21 + $0x1a8] sm:$0xff]  ;;  %v414_v35 = vld [vmem:[%s2332_s21 + $0x1a0] sm:$0xff] }
  0x21   : > { %v451_v25 = vpack.c.bf16 %v413_v22, %v411_v21  ;;  %v417_v30 = vld [vmem:[%s2332_s21 + $0x1b8] sm:$0xff]  ;;  %v416_v36 = vld [vmem:[%s2332_s21 + $0x1b0] sm:$0xff]  ;;  %v419_v37 = vld [vmem:[%s2332_s21 + $0x1c8] sm:$0xff] }
  0x22   : > { %v421_v38 = vld [vmem:[%s2332_s21 + $0x1d8] sm:$0xff]  ;;  %v418_v41 = vld [vmem:[%s2332_s21 + $0x1c0] sm:$0xff]  ;;  %v420_v42 = vld [vmem:[%s2332_s21 + $0x1d0] sm:$0xff] }
  0x23   : > { %594 = vmatpush1.bf16.msra.mxu0 %v2224_v11  ;;  %v444_v11 = vpack.c.bf16 %v400_v8, %v398_v7  ;;  %v423_v43 = vld [vmem:[%s2332_s21 + $0x1e8] sm:$0xff]  ;;  %v425_v44 = vld [vmem:[%s2332_s21 + $0x1f8] sm:$0xff]  ;;  %v422_v47 = vld [vmem:[%s2332_s21 + $0x1e0] sm:$0xff] }
  0x24   : > { %595 = vmatprep.subr.bf16.mxu0 %v2258_v1  ;;  %v394_v1 = vld [vmem:[%s2332_s21 + $0x100] sm:$0xff]  ;;  %v424_v48 = vld [vmem:[%s2332_s21 + $0x1f0] sm:$0xff] }
  0x25   : > { %v442_v5 = vpack.c.bf16 %v396_v2, %v394_v1  ;;  %v456_v49 = vpack.c.bf16 %v424_v48, %v422_v47  ;;  %v2462_v53 = vld [vmem:[%s3061_s2] sm:$0x7] }
  0x26   : > { %v2485_v1 = vld [vmem:[%s3064_s5] sm:$0xff]  }
  0x27   : > { %596 = vmatpush1.bf16.msra.mxu0 %v2225_v12  ;;  %v447_v12 = vpack.c.bf16 %v405_v10, %v403_v9 }
  0x28   : > { %2048 = vmatprep.subr.bf16.mxu0 %v2226_v17 }
  0x2a   : > { %612 = vmatmul.mubr.bf16.vlgmr.msra.gmra.mrb[0].mxu0 %v426_v18  ;;  %v449_v18 = vpack.c.bf16 %v409_v16, %v407_v15 }
  0x2b   : > { %1932 = vmatprep.mubr.msk.bf16.mxu0 %vm530_vm0, %v429_v20  ;;  %2049 = vmatpush3.bf16.msra.mxu0 %v2226_v17  ;;  %v446_v17 = vpack.c.bf16 %v404_v14, %v402_v13  ;;  %v408_v20 = vld [vmem:[%s2332_s21 + $0x170] sm:$0xff] }
  0x2c   : > { %2050 = vmatprep.subr.bf16.mxu0 %v2227_v19 }
  0x2f   : > { %2051 = vmatpush3.bf16.msra.mxu0 %v2227_v19  ;;  %v406_v19 = vld [vmem:[%s2332_s21 + $0x160] sm:$0xff] }
  0x30   : > { %2052 = vmatprep.subr.bf16.mxu0 %v2228_v23 }
  0x32   : > { %620 = vmatmul.mubr.bf16.gmra.mrb[4].mxu0 %v428_v27  ;;  %v410_v27 = vld [vmem:[%s2332_s21 + $0x180] sm:$0xff] }
  0x33   : > { %1933 = vmatprep.mubr.msk.bf16.mxu0 %vm530_vm0, %v431_v28  ;;  %2053 = vmatpush3.bf16.msra.mxu0 %v2228_v23  ;;  %v448_v23 = vpack.c.bf16 %v408_v20, %v406_v19  ;;  %v412_v28 = vld [vmem:[%s2332_s21 + $0x190] sm:$0xff] }
  0x34   : > { %2054 = vmatprep.subr.bf16.mxu0 %v2229_v26  ;;  %v450_v31 = vpack.c.bf16 %v412_v28, %v410_v27 }
  0x37   : > { %2055 = vmatpush3.bf16.msra.mxu0 %v2229_v26  ;;  %v2231_v26 = vld [vmem:[%s3063_s4 + $0x28] sm:$0xff]  }
  0x38   : > { %2056 = vmatprep.subr.bf16.mxu0 %v2230_v24  ;;  %2197 = vmatprep.subr.bf16.mxu1 %v2231_v26 }
  0x39   : > { %2205 = vmatpush3.bf16.msra.mxu1 %v2231_v26 }
  0x3a   : > { %628 = vmatmul.mubr.bf16.gmra.mrb[8].mxu0 %v430_v33  ;;  %v453_v33 = vpack.c.bf16 %v417_v30, %v415_v29  ;;  %2198 = vmatprep.subr.bf16.mxu1 %v2232_v32 }
  0x3b   : > { %1934 = vmatprep.mubr.msk.bf16.mxu0 %vm530_vm0, %v433_v34  ;;  %2057 = vmatpush3.bf16.msra.mxu0 %v2230_v24  ;;  %v2233_v34 = vld [vmem:[%s3063_s4 + $0x38] sm:$0xff]  }
  0x3c   : > { %2058 = vmatprep.subr.bf16.mxu0 %v2231_v26 }
  0x3d   : > { %2206 = vmatpush3.bf16.msra.mxu1 %v2232_v32 }
  0x3e   : > { %2199 = vmatprep.subr.bf16.mxu1 %v2233_v34 }
  0x3f   : > { %2059 = vmatpush3.bf16.msra.mxu0 %v2231_v26 }
  0x40   : > { %2060 = vmatprep.subr.bf16.mxu0 %v2232_v32 }
  0x41   : > { %2207 = vmatpush3.bf16.msra.mxu1 %v2233_v34 }
  0x42   : > { %636 = vmatmul.mubr.bf16.gmra.mrb[12].mxu0 %v432_v39  ;;  %v452_v39 = vpack.c.bf16 %v416_v36, %v414_v35  ;;  %2096 = vmatprep.subr.bf16.mxu1 %v2485_v1 }
  0x43   : > { %1935 = vmatprep.mubr.msk.bf16.mxu0 %vm530_vm0, %v435_v40  ;;  %2061 = vmatpush3.bf16.msra.mxu0 %v2232_v32  ;;  %v455_v40 = vpack.c.bf16 %v421_v38, %v419_v37 }
  0x44   : > { %2062 = vmatprep.subr.bf16.mxu0 %v2233_v34 }
  0x47   : > { %2063 = vmatpush3.bf16.msra.mxu0 %v2233_v34 }
  0x4a   : > { %644 = vmatmul.mubr.bf16.gmra.mrb[16].mxu0 %v434_v45  ;;  %v454_v45 = vpack.c.bf16 %v420_v42, %v418_v41 }
  0x4b   : > { %1936 = vmatprep.mubr.msk.bf16.mxu0 %vm530_vm0, %v437_v46  ;;  %v457_v46 = vpack.c.bf16 %v425_v44, %v423_v43 }
  0x52   : > { %652 = vmatmul.mubr.bf16.gmra.mrb[20].mxu0 %v436_v51  ;;  %v2456_v51 = vshrl.u32 %v741_v50, 7 }
  0x53   : > { %1937 = vmatprep.mubr.msk.bf16.mxu0 %vm530_vm0, %v439_v52 }
  0x54   : > { %v743_v52 = vsub.s32 0, %v2456_v51  ;;  %v779_v54 = vsub.s32 1, %v2456_v51 }
  0x56   : > { %v2466_v55 = vrot.slane %v2462_v53, %v743_v52  ;;  %v2469_v56 = vrot.slane %v2462_v53, %v779_v54 }
  0x5a   : > { %660 = vmatmul.mubr.bf16.gmra.mrb[24].mxu0 %v438_v57 }
  0x5b   : > { %1938 = vmatprep.mubr.msk.bf16.mxu0 %vm530_vm0, %v441_v58 }
  0x62   : > { %668 = vmatmul.mubr.bf16.gmra.mrb[28].mxu0 %v440_v63 }
  0x63   : > { %1939 = vmatprep.mubr.msk.bf16.mxu0 %vm530_vm0, %v443_v0 }
  0x6a   : > { %676 = vmatmul.mubr.bf16.gmra.mrb[32].mxu0 %v442_v5 }
  0x6b   : > { %1940 = vmatprep.mubr.msk.bf16.mxu0 %vm530_vm0, %v445_v6 }
  0x72   : > { %684 = vmatmul.mubr.bf16.gmra.mrb[36].mxu0 %v444_v11 }
  0x73   : > { %1941 = vmatprep.mubr.msk.bf16.mxu0 %vm530_vm0, %v447_v12 }
  0x7a   : > { %692 = vmatmul.mubr.bf16.gmra.mrb[40].mxu0 %v446_v17 }
  0x7b   : > { %1942 = vmatprep.mubr.msk.bf16.mxu0 %vm530_vm0, %v449_v18 }
  0x82   : > { %700 = vmatmul.mubr.bf16.gmra.mrb[44].mxu0 %v448_v23 }
  0x83   : > { %1943 = vmatprep.mubr.msk.bf16.mxu0 %vm530_vm0, %v451_v25 }
  0x8a   : > { %708 = vmatmul.mubr.bf16.gmra.mrb[48].mxu0 %v450_v31 }
  0x8b   : > { %1944 = vmatprep.mubr.msk.bf16.mxu0 %vm530_vm0, %v453_v33 }
  0x92   : > { %716 = vmatmul.mubr.bf16.gmra.mrb[52].mxu0 %v452_v39 }
  0x93   : > { %1945 = vmatprep.mubr.msk.bf16.mxu0 %vm530_vm0, %v455_v40 }
  0x9a   : > { %724 = vmatmul.mubr.bf16.gmra.mrb[56].mxu0 %v454_v45 }
  0x9b   : > { %1946 = vmatprep.mubr.msk.bf16.mxu0 %vm530_vm0, %v457_v46 }
  0xa2   : > { %732 = vmatmul.mubr.bf16.gmra.mrb[60].mxu0 %v456_v49 }
  0xfd   : > { %v2471_v57 = vpop.f32.mrb[0].mxu0 }
  0xfe   : > { %v745_v58 = vmul.f32 %v2466_v55, %v2471_v57  ;;  %v615_v59 = vpop.f32.mrb[1].mxu0 }
  0xff   : > { %v2475_v60 = vpop.f32.mrb[2].mxu0 }
 0x100   : > { %v781_v61 = vadd.f32 %v2469_v56, %v745_v58  ;;  %v746_v62 = vmul.f32 %v2466_v55, %v2475_v60  ;;  %v1427_v63 = vpack.c.bf16 %v2475_v60, %v2471_v57  ;;  %v618_v0 = vpop.f32.mrb[3].mxu0 }
 0x102   : > { %v782_v2 = vadd.f32 %v2469_v56, %v746_v62  ;;  %v813_v3 = vmax.f32 %v781_v61, 0.0 }
 0x104   : > { %v814_v4 = vmax.f32 %v782_v2, 0.0 }
 0x105   : > { %v2489_v5 = vpop.f32.mrb[4].mxu0 }
 0x106   : > { %v747_v6 = vmul.f32 %v2466_v55, %v2489_v5  ;;  %v623_v7 = vpop.f32.mrb[5].mxu0  ;;  %v845_v8 = vpack.c.bf16 %v814_v4, %v813_v3 }
 0x107   : > { %v2493_v9 = vpop.f32.mrb[6].mxu0 }
 0x108   : > { %v783_v10 = vadd.f32 %v2469_v56, %v747_v6  ;;  %v748_v11 = vmul.f32 %v2466_v55, %v2493_v9  ;;  %v1428_v12 = vpack.c.bf16 %v2493_v9, %v2489_v5  ;;  %v626_v13 = vpop.f32.mrb[7].mxu0  ;;  %2064 = vmatprep.mubr.bf16.mxu0 %v845_v8 }
 0x10a   : > { %v784_v14 = vadd.f32 %v2469_v56, %v748_v11  ;;  %v815_v15 = vmax.f32 %v783_v10, 0.0 }
 0x10c   : > { %v816_v16 = vmax.f32 %v784_v14, 0.0 }
 0x10d   : > { %v2501_v17 = vpop.f32.mrb[8].mxu0 }
 0x10e   : > { %v846_v18 = vpack.c.bf16 %v816_v16, %v815_v15  ;;  %v749_v19 = vmul.f32 %v2466_v55, %v2501_v17  ;;  %v631_v20 = vpop.f32.mrb[9].mxu0 }
 0x10f   : > { %v2505_v21 = vpop.f32.mrb[10].mxu0 }
 0x110   : > { %v785_v22 = vadd.f32 %v2469_v56, %v749_v19  ;;  %v750_v23 = vmul.f32 %v2466_v55, %v2505_v21  ;;  %v1429_v24 = vpack.c.bf16 %v2505_v21, %v2501_v17  ;;  %v634_v25 = vpop.f32.mrb[11].mxu0  ;;  %2065 = vmatmul.mubr.bf16.vlgmr.msra.gmra.mrb[64].mxu0 %v846_v18 }
 0x112   : > { %v786_v26 = vadd.f32 %v2469_v56, %v750_v23  ;;  %v817_v27 = vmax.f32 %v785_v22, 0.0 }
 0x114   : > { %v818_v28 = vmax.f32 %v786_v26, 0.0 }
 0x115   : > { %v2513_v29 = vpop.f32.mrb[12].mxu0 }
 0x116   : > { %v751_v30 = vmul.f32 %v2466_v55, %v2513_v29  ;;  %v639_v31 = vpop.f32.mrb[13].mxu0  ;;  %v847_v32 = vpack.c.bf16 %v818_v28, %v817_v27 }
 0x117   : > { %v2517_v33 = vpop.f32.mrb[14].mxu0 }
 0x118   : > { %v787_v34 = vadd.f32 %v2469_v56, %v751_v30  ;;  %v752_v35 = vmul.f32 %v2466_v55, %v2517_v33  ;;  %v1430_v36 = vpack.c.bf16 %v2517_v33, %v2513_v29  ;;  %v642_v37 = vpop.f32.mrb[15].mxu0  ;;  %2068 = vmatprep.mubr.bf16.mxu0 %v847_v32 }
 0x11a   : > { %v788_v38 = vadd.f32 %v2469_v56, %v752_v35  ;;  %v819_v39 = vmax.f32 %v787_v34, 0.0 }
 0x11c   : > { %v820_v40 = vmax.f32 %v788_v38, 0.0 }
 0x11d   : > { %v2525_v41 = vpop.f32.mrb[16].mxu0 }
 0x11e   : > { %v753_v42 = vmul.f32 %v2466_v55, %v2525_v41  ;;  %v647_v43 = vpop.f32.mrb[17].mxu0  ;;  %v848_v44 = vpack.c.bf16 %v820_v40, %v819_v39 }
 0x11f   : > { %v2529_v45 = vpop.f32.mrb[18].mxu0 }
 0x120   : > { %v789_v46 = vadd.f32 %v2469_v56, %v753_v42  ;;  %v754_v47 = vmul.f32 %v2466_v55, %v2529_v45  ;;  %v1431_v48 = vpack.c.bf16 %v2529_v45, %v2525_v41  ;;  %v650_v49 = vpop.f32.mrb[19].mxu0  ;;  %2069 = vmatmul.mubr.bf16.gmra.mrb[68].mxu0 %v848_v44 }
 0x122   : > { %v790_v50 = vadd.f32 %v2469_v56, %v754_v47  ;;  %v821_v52 = vmax.f32 %v789_v46, 0.0 }
 0x124   : > { %v822_v54 = vmax.f32 %v790_v50, 0.0 }
 0x125   : > { %v2537_v58 = vpop.f32.mrb[20].mxu0 }
 0x126   : > { %v755_v59 = vmul.f32 %v2466_v55, %v2537_v58  ;;  %v655_v61 = vpop.f32.mrb[21].mxu0  ;;  %v849_v62 = vpack.c.bf16 %v822_v54, %v821_v52 }
 0x127   : > { %v2541_v0 = vpop.f32.mrb[22].mxu0 }
 0x128   : > { %v791_v2 = vadd.f32 %v2469_v56, %v755_v59  ;;  %v756_v3 = vmul.f32 %v2466_v55, %v2541_v0  ;;  %v1432_v4 = vpack.c.bf16 %v2541_v0, %v2537_v58  ;;  %v658_v6 = vpop.f32.mrb[23].mxu0  ;;  %2072 = vmatprep.mubr.bf16.mxu0 %v849_v62 }
 0x12a   : > { %v792_v7 = vadd.f32 %v2469_v56, %v756_v3  ;;  %v823_v8 = vmax.f32 %v791_v2, 0.0 }
 0x12c   : > { %v824_v10 = vmax.f32 %v792_v7, 0.0 }
 0x12d   : > { %v2549_v11 = vpop.f32.mrb[24].mxu0 }
 0x12e   : > { %v757_v13 = vmul.f32 %v2466_v55, %v2549_v11  ;;  %v663_v14 = vpop.f32.mrb[25].mxu0  ;;  %v850_v15 = vpack.c.bf16 %v824_v10, %v823_v8 }
 0x12f   : > { %v2553_v16 = vpop.f32.mrb[26].mxu0 }
 0x130   : > { %v793_v18 = vadd.f32 %v2469_v56, %v757_v13  ;;  %v758_v19 = vmul.f32 %v2466_v55, %v2553_v16  ;;  %v1433_v20 = vpack.c.bf16 %v2553_v16, %v2549_v11  ;;  %v666_v22 = vpop.f32.mrb[27].mxu0  ;;  %2073 = vmatmul.mubr.bf16.gmra.mrb[72].mxu0 %v850_v15 }
 0x132   : > { %v794_v23 = vadd.f32 %v2469_v56, %v758_v19  ;;  %v825_v25 = vmax.f32 %v793_v18, 0.0 }
 0x134   : > { %v826_v26 = vmax.f32 %v794_v23, 0.0 }
 0x135   : > { %v2561_v27 = vpop.f32.mrb[28].mxu0 }
 0x136   : > { %v759_v28 = vmul.f32 %v2466_v55, %v2561_v27  ;;  %v671_v30 = vpop.f32.mrb[29].mxu0  ;;  %v851_v31 = vpack.c.bf16 %v826_v26, %v825_v25 }
 0x137   : > { %v2565_v32 = vpop.f32.mrb[30].mxu0 }
 0x138   : > { %v795_v34 = vadd.f32 %v2469_v56, %v759_v28  ;;  %v760_v35 = vmul.f32 %v2466_v55, %v2565_v32  ;;  %v1434_v37 = vpack.c.bf16 %v2565_v32, %v2561_v27  ;;  %v674_v38 = vpop.f32.mrb[31].mxu0  ;;  %2076 = vmatprep.mubr.bf16.mxu0 %v851_v31  ;;  %v2235_v31 = vld [vmem:[%s3064_s5 + $0x8] sm:$0xff]  }
 0x13a   : > { %v796_v39 = vadd.f32 %v2469_v56, %v760_v35  ;;  %v827_v40 = vmax.f32 %v795_v34, 0.0 }
 0x13c   : > { %v828_v42 = vmax.f32 %v796_v39, 0.0 }
 0x13d   : > { %v2573_v43 = vpop.f32.mrb[32].mxu0 }
 0x13e   : > { %v761_v44 = vmul.f32 %v2466_v55, %v2573_v43  ;;  %v679_v46 = vpop.f32.mrb[33].mxu0  ;;  %v852_v47 = vpack.c.bf16 %v828_v42, %v827_v40 }
 0x13f   : > { %v2577_v49 = vpop.f32.mrb[34].mxu0 }
 0x140   : > { %v762_v50 = vmul.f32 %v2466_v55, %v2577_v49  ;;  %v1435_v52 = vpack.c.bf16 %v2577_v49, %v2573_v43  ;;  %v682_v54 = vpop.f32.mrb[35].mxu0  ;;  %2077 = vmatmul.mubr.bf16.gmra.mrb[76].mxu0 %v852_v47  ;;  %v797_v59 = vadd.f32 %v2469_v56, %v761_v44  ;;  %v2236_v44 = vld [vmem:[%s3064_s5 + $0x10] sm:$0xff]  }
 0x142   : > { %v798_v61 = vadd.f32 %v2469_v56, %v762_v50  ;;  %v829_v62 = vmax.f32 %v797_v59, 0.0 }
 0x144   : > { %v830_v2 = vmax.f32 %v798_v61, 0.0 }
 0x145   : > { %v2585_v3 = vpop.f32.mrb[36].mxu0 }
 0x146   : > { %v763_v6 = vmul.f32 %v2466_v55, %v2585_v3  ;;  %v687_v7 = vpop.f32.mrb[37].mxu0  ;;  %v853_v8 = vpack.c.bf16 %v830_v2, %v829_v62 }
 0x147   : > { %v2589_v10 = vpop.f32.mrb[38].mxu0 }
 0x148   : > { %v799_v13 = vadd.f32 %v2469_v56, %v763_v6  ;;  %v764_v14 = vmul.f32 %v2466_v55, %v2589_v10  ;;  %v1436_v15 = vpack.c.bf16 %v2589_v10, %v2585_v3  ;;  %v690_v18 = vpop.f32.mrb[39].mxu0  ;;  %2080 = vmatprep.mubr.bf16.mxu1 %v853_v8 }
 0x14a   : > { %v800_v19 = vadd.f32 %v2469_v56, %v764_v14  ;;  %v831_v22 = vmax.f32 %v799_v13, 0.0  ;;  %v2238_v14 = vld [vmem:[%s3064_s5 + $0x20] sm:$0xff]  }
 0x14c   : > { %v832_v23 = vmax.f32 %v800_v19, 0.0 }
 0x14d   : > { %v2597_v25 = vpop.f32.mrb[40].mxu0 }
 0x14e   : > { %v765_v26 = vmul.f32 %v2466_v55, %v2597_v25  ;;  %v695_v28 = vpop.f32.mrb[41].mxu0  ;;  %v854_v30 = vpack.c.bf16 %v832_v23, %v831_v22 }
 0x14f   : > { %v2604_v34 = vpop.f32.mrb[42].mxu0 }
 0x150   : > { %v801_v35 = vadd.f32 %v2469_v56, %v765_v26  ;;  %v766_v38 = vmul.f32 %v2466_v55, %v2604_v34  ;;  %v698_v40 = vpop.f32.mrb[43].mxu0  ;;  %2081 = vmatmul.mubr.bf16.vlgmr.msra.gmra.mrb[0].mxu1 %v854_v30  ;;  %v3069_v57 = vpack.c.bf16 %v2604_v34, %v2597_v25 }
 0x151   : > { %2097 = vmatpush3.bf16.msra.mxu1 %v2485_v1  ;;  %v2237_v1 = vld [vmem:[%s3064_s5 + $0x18] sm:$0xff]  }
 0x152   : > { %v802_v42 = vadd.f32 %v2469_v56, %v766_v38  ;;  %2098 = vmatprep.subr.bf16.mxu1 %v2235_v31  ;;  %v833_v46 = vmax.f32 %v801_v35, 0.0 }
 0x154   : > { %v834_v47 = vmax.f32 %v802_v42, 0.0 }
 0x155   : > { %v2616_v50 = vpop.f32.mrb[44].mxu0  ;;  %2099 = vmatpush3.bf16.msra.mxu1 %v2235_v31 }
 0x156   : > { %v767_v54 = vmul.f32 %v2466_v55, %v2616_v50  ;;  %v703_v59 = vpop.f32.mrb[45].mxu0  ;;  %v855_v61 = vpack.c.bf16 %v834_v47, %v833_v46  ;;  %2100 = vmatprep.subr.bf16.mxu1 %v2236_v44 }
 0x157   : > { %v2623_v62 = vpop.f32.mrb[46].mxu0 }
 0x158   : > { %v803_v2 = vadd.f32 %v2469_v56, %v767_v54  ;;  %v768_v6 = vmul.f32 %v2466_v55, %v2623_v62  ;;  %v706_v8 = vpop.f32.mrb[47].mxu0  ;;  %2084 = vmatprep.mubr.bf16.mxu1 %v855_v61  ;;  %v3070_v60 = vpack.c.bf16 %v2623_v62, %v2616_v50 }
 0x159   : > { %2101 = vmatpush3.bf16.msra.mxu1 %v2236_v44  ;;  %v2239_v44 = vld [vmem:[%s3064_s5 + $0x28] sm:$0xff]  }
 0x15a   : > { %v804_v13 = vadd.f32 %v2469_v56, %v768_v6  ;;  %2102 = vmatprep.subr.bf16.mxu1 %v2237_v1  ;;  %v835_v18 = vmax.f32 %v803_v2, 0.0  ;;  %v2240_v2 = vld [vmem:[%s3064_s5 + $0x30] sm:$0xff]  }
 0x15c   : > { %v836_v19 = vmax.f32 %v804_v13, 0.0 }
 0x15d   : > { %v2634_v22 = vpop.f32.mrb[48].mxu0  ;;  %2103 = vmatpush3.bf16.msra.mxu1 %v2237_v1 }
 0x15e   : > { %v769_v23 = vmul.f32 %v2466_v55, %v2634_v22  ;;  %v711_v26 = vpop.f32.mrb[49].mxu0  ;;  %v856_v28 = vpack.c.bf16 %v836_v19, %v835_v18  ;;  %2104 = vmatprep.subr.bf16.mxu1 %v2238_v14 }
 0x15f   : > { %v2638_v30 = vpop.f32.mrb[50].mxu0 }
 0x160   : > { %v805_v31 = vadd.f32 %v2469_v56, %v769_v23  ;;  %v770_v35 = vmul.f32 %v2466_v55, %v2638_v30  ;;  %v714_v40 = vpop.f32.mrb[51].mxu0  ;;  %2085 = vmatmul.mubr.bf16.gmra.mrb[4].mxu1 %v856_v28  ;;  %v2241_v23 = vld [vmem:[%s3064_s5 + $0x38] sm:$0xff]  }
 0x161   : > { %2105 = vmatpush3.bf16.msra.mxu1 %v2238_v14 }
 0x162   : > { %v806_v42 = vadd.f32 %v2469_v56, %v770_v35  ;;  %v837_v46 = vmax.f32 %v805_v31, 0.0  ;;  %2106 = vmatprep.subr.bf16.mxu1 %v2239_v44 }
 0x164   : > { %v838_v47 = vmax.f32 %v806_v42, 0.0 }
 0x165   : > { %v2649_v54 = vpop.f32.mrb[52].mxu0  ;;  %2107 = vmatpush3.bf16.msra.mxu1 %v2239_v44 }
 0x166   : > { %v771_v59 = vmul.f32 %v2466_v55, %v2649_v54  ;;  %v719_v61 = vpop.f32.mrb[53].mxu0  ;;  %v857_v1 = vpack.c.bf16 %v838_v47, %v837_v46  ;;  %2108 = vmatprep.subr.bf16.mxu1 %v2240_v2 }
 0x167   : > { %v2656_v6 = vpop.f32.mrb[54].mxu0 }
 0x168   : > { %v807_v8 = vadd.f32 %v2469_v56, %v771_v59  ;;  %v772_v13 = vmul.f32 %v2466_v55, %v2656_v6  ;;  %v722_v18 = vpop.f32.mrb[55].mxu0  ;;  %2088 = vmatprep.mubr.bf16.mxu1 %v857_v1  ;;  %v3072_v5 = vpack.c.bf16 %v2656_v6, %v2649_v54 }
 0x169   : > { %2109 = vmatpush3.bf16.msra.mxu1 %v2240_v2 }
 0x16a   : > { %v808_v19 = vadd.f32 %v2469_v56, %v772_v13  ;;  %v839_v26 = vmax.f32 %v807_v8, 0.0  ;;  %2110 = vmatprep.subr.bf16.mxu1 %v2241_v23 }
 0x16c   : > { %v840_v28 = vmax.f32 %v808_v19, 0.0 }
 0x16d   : > { %v2667_v31 = vpop.f32.mrb[56].mxu0  ;;  %2111 = vmatpush3.bf16.msra.mxu1 %v2241_v23 }
 0x16e   : > { %v773_v35 = vmul.f32 %v2466_v55, %v2667_v31  ;;  %v727_v40 = vpop.f32.mrb[57].mxu0  ;;  %v858_v42 = vpack.c.bf16 %v840_v28, %v839_v26 }
 0x16f   : > { %v2671_v44 = vpop.f32.mrb[58].mxu0  ;;  %v1123_v40 = vld [vmem:[%s2704_s16 + $0x8] sm:$0xff] }
 0x170   : > { %v809_v46 = vadd.f32 %v2469_v56, %v773_v35  ;;  %v774_v47 = vmul.f32 %v2466_v55, %v2671_v44  ;;  %v730_v61 = vpop.f32.mrb[59].mxu0  ;;  %2089 = vmatmul.mubr.bf16.gmra.mrb[8].mxu1 %v858_v42  ;;  %v3073_v9 = vpack.c.bf16 %v2671_v44, %v2667_v31  ;;  %v2890_v31 = vld [vmem:[%s3066_s7] ss:$0 sm:$0xff] }
 0x172   : > { %v810_v1 = vadd.f32 %v2469_v56, %v774_v47  ;;  %v841_v2 = vmax.f32 %v809_v46, 0.0 }
 0x174   : > { %v842_v8 = vmax.f32 %v810_v1, 0.0 }
 0x175   : > { %v2679_v13 = vpop.f32.mrb[60].mxu0 }
 0x176   : > { %v775_v18 = vmul.f32 %v2466_v55, %v2679_v13  ;;  %v735_v19 = vpop.f32.mrb[61].mxu0  ;;  %v859_v23 = vpack.c.bf16 %v842_v8, %v841_v2  ;;  %v2242_v2 = vld [vmem:[%s3065_s6] sm:$0xff]   ;;  %v879_v8 = vsub.s32 2, %v2456_v51 }
 0x177   : > { %v2683_v26 = vpop.f32.mrb[62].mxu0  ;;  %2144 = vmatprep.subr.bf16.mxu1 %v2242_v2 }
 0x178   : > { %v811_v28 = vadd.f32 %v2469_v56, %v775_v18  ;;  %v776_v35 = vmul.f32 %v2466_v55, %v2683_v26  ;;  %v738_v42 = vpop.f32.mrb[63].mxu0  ;;  %2092 = vmatprep.mubr.bf16.mxu1 %v859_v23  ;;  %v2696_v55 = vrot.slane %v2462_v53, %v879_v8 }
 0x179   : > { %v1124_v42 = vld [vmem:[%s2704_s16 + $0x10] sm:$0xff] }
 0x17a   : > { %v812_v46 = vadd.f32 %v2469_v56, %v776_v35  ;;  %v843_v47 = vmax.f32 %v811_v28, 0.0 }
 0x17c   : > { %v844_v61 = vmax.f32 %v812_v46, 0.0 }
 0x17e   : > { %v860_v1 = vpack.c.bf16 %v844_v61, %v843_v47  ;;  %v1125_v47 = vld [vmem:[%s2704_s16 + $0x18] sm:$0xff] }
 0x180   : > { %2093 = vmatmul.mubr.bf16.gmra.mrb[12].mxu1 %v860_v1  ;;  %v1122_v1 = vld [vmem:[%s2704_s16] sm:$0xff] }
 0x1e3   : > { %v2066_v18 = vpop.f32.mrb[64].mxu0 }
 0x1e4   : > { %v972_v56 = vadd.f32 %v2066_v18, %v2696_v55  ;;  %v963_v19 = vpop.f32.mrb[65].mxu0 }
 0x1e5   : > { %v964_v51 = vadd.f32 %v963_v19, %v2696_v55  ;;  %v2067_v23 = vpop.f32.mrb[66].mxu0 }
 0x1e6   : > { %v1092_v53 = vmax.f32 %v972_v56, 0.0  ;;  %v975_v28 = vadd.f32 %v2067_v23, %v2696_v55  ;;  %v966_v35 = vpop.f32.mrb[67].mxu0  ;;  %v2243_v56 = vld [vmem:[%s3065_s6 + $0x8] sm:$0xff]  }
 0x1e7   : > { %v1090_v46 = vmax.f32 %v964_v51, 0.0  ;;  %v967_v61 = vadd.f32 %v966_v35, %v2696_v55  ;;  %v2244_v51 = vld [vmem:[%s3065_s6 + $0x10] sm:$0xff]  }
 0x1e8   : > { %v1093_v8 = vmax.f32 %v975_v28, 0.0  ;;  %v1156_v14 = vmul.f32 %v1124_v42, %v1092_v53  ;;  %v2245_v53 = vld [vmem:[%s3065_s6 + $0x18] sm:$0xff]   ;;  %v1128_v28 = vld [vmem:[%s2704_s16 + $0x30] sm:$0xff] }
 0x1e9   : > { %v1091_v59 = vmax.f32 %v967_v61, 0.0  ;;  %v1154_v18 = vmul.f32 %v1122_v1, %v1090_v46  ;;  %v1129_v42 = vld [vmem:[%s2704_s16 + $0x38] sm:$0xff]  ;;  %v1127_v1 = vld [vmem:[%s2704_s16 + $0x28] sm:$0xff] }
 0x1ea   : > { %v1157_v38 = vmul.f32 %v1125_v47, %v1093_v8  ;;  %v1126_v47 = vld [vmem:[%s2704_s16 + $0x20] sm:$0xff] }
 0x1eb   : > { %v1155_v7 = vmul.f32 %v1123_v40, %v1091_v59 }
 0x1ec   : > { %v1187_v39 = vpack.c.bf16 %v1157_v38, %v1156_v14 }
 0x1ed   : > { %v1186_v19 = vpack.c.bf16 %v1155_v7, %v1154_v18 }
 0x1ef   : > { %2112 = vmatprep.mubr.bf16.mxu1 %v1186_v19 }
 0x1f0   : > { %2113 = vmatmul.mubr.bf16.vlgmr.msra.gmra.mrb[16].mxu1 %v1187_v39 }
 0x1f1   : > { %2145 = vmatpush3.bf16.msra.mxu1 %v2242_v2 }
 0x1f2   : > { %2146 = vmatprep.subr.bf16.mxu1 %v2243_v56 }
 0x1f3   : > { %v2070_v23 = vpop.f32.mrb[68].mxu0 }
 0x1f4   : > { %v988_v59 = vadd.f32 %v2070_v23, %v2696_v55  ;;  %v979_v7 = vpop.f32.mrb[69].mxu0 }
 0x1f5   : > { %v980_v38 = vadd.f32 %v979_v7, %v2696_v55  ;;  %v2071_v14 = vpop.f32.mrb[70].mxu0  ;;  %2147 = vmatpush3.bf16.msra.mxu1 %v2243_v56  ;;  %v2246_v56 = vld [vmem:[%s3065_s6 + $0x20] sm:$0xff]  }
 0x1f6   : > { %v1096_v40 = vmax.f32 %v988_v59, 0.0  ;;  %v991_v39 = vadd.f32 %v2071_v14, %v2696_v55  ;;  %v982_v2 = vpop.f32.mrb[71].mxu0  ;;  %2148 = vmatprep.subr.bf16.mxu1 %v2244_v51 }
 0x1f7   : > { %v1094_v35 = vmax.f32 %v980_v38, 0.0  ;;  %v983_v46 = vadd.f32 %v982_v2, %v2696_v55  ;;  %v2247_v38 = vld [vmem:[%s3065_s6 + $0x28] sm:$0xff]  }
 0x1f8   : > { %v1097_v61 = vmax.f32 %v991_v39, 0.0  ;;  %v1160_v18 = vmul.f32 %v1128_v28, %v1096_v40 }
 0x1f9   : > { %v1095_v8 = vmax.f32 %v983_v46, 0.0  ;;  %2149 = vmatpush3.bf16.msra.mxu1 %v2244_v51  ;;  %v1158_v23 = vmul.f32 %v1126_v47, %v1094_v35  ;;  %v2248_v51 = vld [vmem:[%s3065_s6 + $0x30] sm:$0xff]   ;;  %v2249_v47 = vld [vmem:[%s3065_s6 + $0x38] sm:$0xff]  }
 0x1fa   : > { %v1161_v19 = vmul.f32 %v1129_v42, %v1097_v61  ;;  %2150 = vmatprep.subr.bf16.mxu1 %v2245_v53  ;;  %v1132_v61 = vld [vmem:[%s2704_s16 + $0x50] sm:$0xff] }
 0x1fb   : > { %v1159_v59 = vmul.f32 %v1127_v1, %v1095_v8  ;;  %v1133_v8 = vld [vmem:[%s2704_s16 + $0x58] sm:$0xff] }
 0x1fc   : > { %v1189_v7 = vpack.c.bf16 %v1161_v19, %v1160_v18  ;;  %v1130_v19 = vld [vmem:[%s2704_s16 + $0x40] sm:$0xff] }
 0x1fd   : > { %v1188_v14 = vpack.c.bf16 %v1159_v59, %v1158_v23  ;;  %2151 = vmatpush3.bf16.msra.mxu1 %v2245_v53  ;;  %v1131_v23 = vld [vmem:[%s2704_s16 + $0x48] sm:$0xff] }
 0x1fe   : > { %2152 = vmatprep.subr.bf16.mxu1 %v2246_v56 }
 0x1ff   : > { %2116 = vmatprep.mubr.bf16.mxu1 %v1188_v14 }
 0x200   : > { %2117 = vmatmul.mubr.bf16.gmra.mrb[20].mxu1 %v1189_v7 }
 0x201   : > { %2153 = vmatpush3.bf16.msra.mxu1 %v2246_v56 }
 0x202   : > { %2154 = vmatprep.subr.bf16.mxu1 %v2247_v38 }
 0x203   : > { %v2074_v40 = vpop.f32.mrb[72].mxu0 }
 0x204   : > { %v1004_v39 = vadd.f32 %v2074_v40, %v2696_v55  ;;  %v995_v2 = vpop.f32.mrb[73].mxu0 }
 0x205   : > { %v996_v53 = vadd.f32 %v995_v2, %v2696_v55  ;;  %v2075_v28 = vpop.f32.mrb[74].mxu0  ;;  %2155 = vmatpush3.bf16.msra.mxu1 %v2247_v38 }
 0x206   : > { %v1100_v35 = vmax.f32 %v1004_v39, 0.0  ;;  %v1007_v42 = vadd.f32 %v2075_v28, %v2696_v55  ;;  %v998_v46 = vpop.f32.mrb[75].mxu0  ;;  %2156 = vmatprep.subr.bf16.mxu1 %v2248_v51 }
 0x207   : > { %v1098_v1 = vmax.f32 %v996_v53, 0.0  ;;  %v999_v18 = vadd.f32 %v998_v46, %v2696_v55 }
 0x208   : > { %v1101_v56 = vmax.f32 %v1007_v42, 0.0  ;;  %v1164_v7 = vmul.f32 %v1132_v61, %v1100_v35 }
 0x209   : > { %v1099_v59 = vmax.f32 %v999_v18, 0.0  ;;  %2157 = vmatpush3.bf16.msra.mxu1 %v2248_v51  ;;  %v1162_v38 = vmul.f32 %v1130_v19, %v1098_v1  ;;  %v1137_v19 = vld [vmem:[%s2704_s16 + $0x78] sm:$0xff] }
 0x20a   : > { %v1165_v14 = vmul.f32 %v1133_v8, %v1101_v56  ;;  %2158 = vmatprep.subr.bf16.mxu1 %v2249_v47  ;;  %v1136_v8 = vld [vmem:[%s2704_s16 + $0x70] sm:$0xff] }
 0x20b   : > { %v1163_v40 = vmul.f32 %v1131_v23, %v1099_v59  ;;  %v1135_v59 = vld [vmem:[%s2704_s16 + $0x68] sm:$0xff] }
 0x20c   : > { %v1191_v39 = vpack.c.bf16 %v1165_v14, %v1164_v7 }
 0x20d   : > { %v1190_v2 = vpack.c.bf16 %v1163_v40, %v1162_v38  ;;  %2159 = vmatpush3.bf16.msra.mxu1 %v2249_v47  ;;  %v1134_v47 = vld [vmem:[%s2704_s16 + $0x60] sm:$0xff] }
 0x20f   : > { %2120 = vmatprep.mubr.bf16.mxu1 %v1190_v2 }
 0x210   : > { %2121 = vmatmul.mubr.bf16.gmra.mrb[24].mxu1 %v1191_v39 }
 0x213   : > { %v2078_v53 = vpop.f32.mrb[76].mxu0 }
 0x214   : > { %v1020_v28 = vadd.f32 %v2078_v53, %v2696_v55  ;;  %v1011_v42 = vpop.f32.mrb[77].mxu0 }
 0x215   : > { %v1012_v51 = vadd.f32 %v1011_v42, %v2696_v55  ;;  %v2079_v35 = vpop.f32.mrb[78].mxu0 }
 0x216   : > { %v1104_v46 = vmax.f32 %v1020_v28, 0.0  ;;  %v1023_v61 = vadd.f32 %v2079_v35, %v2696_v55  ;;  %v1014_v1 = vpop.f32.mrb[79].mxu0 }
 0x217   : > { %v1102_v18 = vmax.f32 %v1012_v51, 0.0  ;;  %v1015_v56 = vadd.f32 %v1014_v1, %v2696_v55 }
 0x218   : > { %v1105_v23 = vmax.f32 %v1023_v61, 0.0  ;;  %v1168_v14 = vmul.f32 %v1136_v8, %v1104_v46 }
 0x219   : > { %v1103_v7 = vmax.f32 %v1015_v56, 0.0  ;;  %v1166_v40 = vmul.f32 %v1134_v47, %v1102_v18  ;;  %v1140_v18 = vld [vmem:[%s2704_s16 + $0x90] sm:$0xff]  ;;  %v1141_v56 = vld [vmem:[%s2704_s16 + $0x98] sm:$0xff] }
 0x21a   : > { %v1169_v38 = vmul.f32 %v1137_v19, %v1105_v23  ;;  %v1138_v23 = vld [vmem:[%s2704_s16 + $0x80] sm:$0xff] }
 0x21b   : > { %v1167_v39 = vmul.f32 %v1135_v59, %v1103_v7  ;;  %v1139_v7 = vld [vmem:[%s2704_s16 + $0x88] sm:$0xff] }
 0x21c   : > { %v1193_v2 = vpack.c.bf16 %v1169_v38, %v1168_v14 }
 0x21d   : > { %v1192_v53 = vpack.c.bf16 %v1167_v39, %v1166_v40 }
 0x21f   : > { %2124 = vmatprep.mubr.bf16.mxu1 %v1192_v53 }
 0x220   : > { %2125 = vmatmul.mubr.bf16.gmra.mrb[28].mxu1 %v1193_v2 }
 0x223   : > { %v2082_v28 = vpop.f32.mrb[0].mxu1 }
 0x224   : > { %v1036_v42 = vadd.f32 %v2082_v28, %v2696_v55  ;;  %v1027_v51 = vpop.f32.mrb[1].mxu1 }
 0x225   : > { %v1028_v35 = vadd.f32 %v1027_v51, %v2696_v55  ;;  %v2083_v61 = vpop.f32.mrb[2].mxu1 }
 0x226   : > { %v1108_v1 = vmax.f32 %v1036_v42, 0.0  ;;  %v1039_v46 = vadd.f32 %v2083_v61, %v2696_v55  ;;  %v1030_v8 = vpop.f32.mrb[3].mxu1 }
 0x227   : > { %v1106_v19 = vmax.f32 %v1028_v35, 0.0  ;;  %v1031_v47 = vadd.f32 %v1030_v8, %v2696_v55 }
 0x228   : > { %v1109_v59 = vmax.f32 %v1039_v46, 0.0  ;;  %v1172_v38 = vmul.f32 %v1140_v18, %v1108_v1 }
 0x229   : > { %v1107_v14 = vmax.f32 %v1031_v47, 0.0  ;;  %v1170_v39 = vmul.f32 %v1138_v23, %v1106_v19  ;;  %v1144_v19 = vld [vmem:[%s2704_s16 + $0xb0] sm:$0xff]  ;;  %v1145_v47 = vld [vmem:[%s2704_s16 + $0xb8] sm:$0xff] }
 0x22a   : > { %v1173_v40 = vmul.f32 %v1141_v56, %v1109_v59  ;;  %v1142_v59 = vld [vmem:[%s2704_s16 + $0xa0] sm:$0xff] }
 0x22b   : > { %v1171_v2 = vmul.f32 %v1139_v7, %v1107_v14  ;;  %v1143_v14 = vld [vmem:[%s2704_s16 + $0xa8] sm:$0xff] }
 0x22c   : > { %v1195_v53 = vpack.c.bf16 %v1173_v40, %v1172_v38 }
 0x22d   : > { %v1194_v28 = vpack.c.bf16 %v1171_v2, %v1170_v39 }
 0x22f   : > { %2128 = vmatprep.mubr.bf16.mxu1 %v1194_v28 }
 0x230   : > { %2129 = vmatmul.mubr.bf16.gmra.mrb[32].mxu1 %v1195_v53 }
 0x233   : > { %v2086_v42 = vpop.f32.mrb[4].mxu1 }
 0x234   : > { %v1052_v51 = vadd.f32 %v2086_v42, %v2696_v55  ;;  %v1043_v35 = vpop.f32.mrb[5].mxu1 }
 0x235   : > { %v1044_v61 = vadd.f32 %v1043_v35, %v2696_v55  ;;  %v2087_v46 = vpop.f32.mrb[6].mxu1 }
 0x236   : > { %v1112_v8 = vmax.f32 %v1052_v51, 0.0  ;;  %v1055_v1 = vadd.f32 %v2087_v46, %v2696_v55  ;;  %v1046_v18 = vpop.f32.mrb[7].mxu1 }
 0x237   : > { %v1110_v56 = vmax.f32 %v1044_v61, 0.0  ;;  %v1047_v23 = vadd.f32 %v1046_v18, %v2696_v55 }
 0x238   : > { %v1113_v7 = vmax.f32 %v1055_v1, 0.0  ;;  %v1176_v40 = vmul.f32 %v1144_v19, %v1112_v8 }
 0x239   : > { %v1111_v38 = vmax.f32 %v1047_v23, 0.0  ;;  %v1174_v2 = vmul.f32 %v1142_v59, %v1110_v56  ;;  %v1148_v56 = vld [vmem:[%s2704_s16 + $0xd0] sm:$0xff]  ;;  %v1149_v23 = vld [vmem:[%s2704_s16 + $0xd8] sm:$0xff] }
 0x23a   : > { %v1177_v39 = vmul.f32 %v1145_v47, %v1113_v7  ;;  %v1146_v7 = vld [vmem:[%s2704_s16 + $0xc0] sm:$0xff] }
 0x23b   : > { %v1175_v53 = vmul.f32 %v1143_v14, %v1111_v38  ;;  %v1147_v38 = vld [vmem:[%s2704_s16 + $0xc8] sm:$0xff] }
 0x23c   : > { %v1197_v28 = vpack.c.bf16 %v1177_v39, %v1176_v40 }
 0x23d   : > { %v1196_v42 = vpack.c.bf16 %v1175_v53, %v1174_v2 }
 0x23f   : > { %2132 = vmatprep.mubr.bf16.mxu1 %v1196_v42 }
 0x240   : > { %2133 = vmatmul.mubr.bf16.gmra.mrb[36].mxu1 %v1197_v28 }
 0x243   : > { %v2090_v51 = vpop.f32.mrb[8].mxu1 }
 0x244   : > { %v1068_v35 = vadd.f32 %v2090_v51, %v2696_v55  ;;  %v1059_v61 = vpop.f32.mrb[9].mxu1 }
 0x245   : > { %v1060_v46 = vadd.f32 %v1059_v61, %v2696_v55  ;;  %v2091_v1 = vpop.f32.mrb[10].mxu1 }
 0x246   : > { %v1116_v18 = vmax.f32 %v1068_v35, 0.0  ;;  %v1071_v8 = vadd.f32 %v2091_v1, %v2696_v55  ;;  %v1062_v19 = vpop.f32.mrb[11].mxu1 }
 0x247   : > { %v1114_v47 = vmax.f32 %v1060_v46, 0.0  ;;  %v1063_v59 = vadd.f32 %v1062_v19, %v2696_v55 }
 0x248   : > { %v1117_v14 = vmax.f32 %v1071_v8, 0.0  ;;  %v1180_v39 = vmul.f32 %v1148_v56, %v1116_v18 }
 0x249   : > { %v1115_v40 = vmax.f32 %v1063_v59, 0.0  ;;  %v1178_v53 = vmul.f32 %v1146_v7, %v1114_v47  ;;  %v1152_v47 = vld [vmem:[%s2704_s16 + $0xf0] sm:$0xff]  ;;  %v1153_v59 = vld [vmem:[%s2704_s16 + $0xf8] sm:$0xff] }
 0x24a   : > { %v1181_v2 = vmul.f32 %v1149_v23, %v1117_v14  ;;  %v1150_v14 = vld [vmem:[%s2704_s16 + $0xe0] sm:$0xff] }
 0x24b   : > { %v1179_v28 = vmul.f32 %v1147_v38, %v1115_v40  ;;  %v1151_v40 = vld [vmem:[%s2704_s16 + $0xe8] sm:$0xff] }
 0x24c   : > { %v1199_v42 = vpack.c.bf16 %v1181_v2, %v1180_v39 }
 0x24d   : > { %v1198_v51 = vpack.c.bf16 %v1179_v28, %v1178_v53 }
 0x24f   : > { %2136 = vmatprep.mubr.bf16.mxu1 %v1198_v51 }
 0x250   : > { %2137 = vmatmul.mubr.bf16.gmra.mrb[40].mxu1 %v1199_v42 }
 0x253   : > { %v2094_v35 = vpop.f32.mrb[12].mxu1 }
 0x254   : > { %v1084_v61 = vadd.f32 %v2094_v35, %v2696_v55  ;;  %v1075_v46 = vpop.f32.mrb[13].mxu1 }
 0x255   : > { %v1076_v1 = vadd.f32 %v1075_v46, %v2696_v55  ;;  %v2095_v8 = vpop.f32.mrb[14].mxu1  ;;  %v2896_v46 = vld [vmem:[%s3067_s8] ss:$0 sm:$0xff] }
 0x256   : > { %v1120_v19 = vmax.f32 %v1084_v61, 0.0  ;;  %v1087_v18 = vadd.f32 %v2095_v8, %v2696_v55  ;;  %v1078_v56 = vpop.f32.mrb[15].mxu1 }
 0x257   : > { %v1118_v23 = vmax.f32 %v1076_v1, 0.0  ;;  %v1079_v7 = vadd.f32 %v1078_v56, %v2696_v55 }
 0x258   : > { %v1121_v38 = vmax.f32 %v1087_v18, 0.0  ;;  %v1184_v2 = vmul.f32 %v1152_v47, %v1120_v19 }
 0x259   : > { %v1119_v39 = vmax.f32 %v1079_v7, 0.0  ;;  %v1182_v28 = vmul.f32 %v1150_v14, %v1118_v23 }
 0x25a   : > { %v1185_v53 = vmul.f32 %v1153_v59, %v1121_v38 }
 0x25b   : > { %v1183_v42 = vmul.f32 %v1151_v40, %v1119_v39 }
 0x25c   : > { %v1201_v51 = vpack.c.bf16 %v1185_v53, %v1184_v2 }
 0x25d   : > { %v1200_v35 = vpack.c.bf16 %v1183_v42, %v1182_v28 }
 0x25f   : > { %2140 = vmatprep.mubr.bf16.mxu1 %v1200_v35 }
 0x260   : > { %2141 = vmatmul.mubr.bf16.gmra.mrb[44].mxu1 %v1201_v51 }
 0x261   : > { %2160 = vmatprep.mubr.bf16.mxu1 %v1427_v63  ;;  %v3071_v63 = vpack.c.bf16 %v2638_v30, %v2634_v22 }
 0x268   : > { %2161 = vmatmul.mubr.bf16.vlgmr.msra.gmra.mrb[48].mxu1 %v1428_v12  ;;  %v3074_v12 = vpack.c.bf16 %v2683_v26, %v2679_v13 }
 0x269   : > { %2164 = vmatprep.mubr.bf16.mxu1 %v1429_v24 }
 0x270   : > { %2165 = vmatmul.mubr.bf16.gmra.mrb[52].mxu1 %v1430_v36 }
 0x271   : > { %2168 = vmatprep.mubr.bf16.mxu1 %v1431_v48 }
 0x278   : > { %2169 = vmatmul.mubr.bf16.gmra.mrb[56].mxu1 %v1432_v4 }
 0x279   : > { %2172 = vmatprep.mubr.bf16.mxu1 %v1433_v20 }
 0x280   : > { %2173 = vmatmul.mubr.bf16.gmra.mrb[60].mxu1 %v1434_v37 }
 0x281   : > { %2176 = vmatprep.mubr.bf16.mxu1 %v1435_v52 }
 0x288   : > { %2177 = vmatmul.mubr.bf16.gmra.mrb[64].mxu1 %v1436_v15 }
 0x289   : > { %2180 = vmatprep.mubr.bf16.mxu1 %v3069_v57 }
 0x290   : > { %2181 = vmatmul.mubr.bf16.gmra.mrb[68].mxu1 %v3070_v60 }
 0x291   : > { %2184 = vmatprep.mubr.bf16.mxu1 %v3071_v63 }
 0x298   : > { %2185 = vmatmul.mubr.bf16.gmra.mrb[72].mxu1 %v3072_v5 }
 0x299   : > { %2188 = vmatprep.mubr.bf16.mxu1 %v3073_v9 }
 0x2a0   : > { %2189 = vmatmul.mubr.bf16.gmra.mrb[76].mxu1 %v3074_v12 }
 0x2c3   : > { %v2114_v17 = vpop.f32.mrb[16].mxu1 }
 0x2c4   : > { %v1300_v21 = vpop.f32.mrb[17].mxu1  ;;  %v1670_v13 = vmul.f32 0.3, %v2114_v17 }
 0x2c5   : > { %v2115_v24 = vpop.f32.mrb[18].mxu1  ;;  %v1668_v61 = vmul.f32 0.3, %v1300_v21 }
 0x2c6   : > { %v1303_v29 = vpop.f32.mrb[19].mxu1  ;;  %v1671_v19 = vmul.f32 0.3, %v2115_v24 }
 0x2c7   : > { %v1669_v23 = vmul.f32 0.3, %v1303_v29 }
 0x2d3   : > { %v2118_v33 = vpop.f32.mrb[20].mxu1 }
 0x2d4   : > { %v1316_v36 = vpop.f32.mrb[21].mxu1  ;;  %v1674_v42 = vmul.f32 0.3, %v2118_v33 }
 0x2d5   : > { %v2119_v41 = vpop.f32.mrb[22].mxu1  ;;  %v1672_v57 = vmul.f32 0.3, %v1316_v36 }
 0x2d6   : > { %v1319_v45 = vpop.f32.mrb[23].mxu1  ;;  %v1675_v5 = vmul.f32 0.3, %v2119_v41 }
 0x2d7   : > { %v1673_v21 = vmul.f32 0.3, %v1319_v45 }
 0x2e3   : > { %v2839_v48 = vpop.f32.mrb[24].mxu1 }
 0x2e4   : > { %v2841_v58 = vpop.f32.mrb[25].mxu1  ;;  %v1678_v45 = vmul.f32 0.3, %v2839_v48 }
 0x2e5   : > { %v2843_v0 = vpop.f32.mrb[26].mxu1 }
 0x2e6   : > { %v2845_v4 = vpop.f32.mrb[27].mxu1 }
 0x2f3   : > { %v2847_v11 = vpop.f32.mrb[28].mxu1 }
 0x2f4   : > { %v2849_v16 = vpop.f32.mrb[29].mxu1 }
 0x2f5   : > { %v2851_v20 = vpop.f32.mrb[30].mxu1 }
 0x2f6   : > { %v2853_v27 = vpop.f32.mrb[31].mxu1 }
 0x303   : > { %v2855_v32 = vpop.f32.mrb[32].mxu1 }
 0x304   : > { %v2857_v37 = vpop.f32.mrb[33].mxu1 }
 0x305   : > { %v2859_v43 = vpop.f32.mrb[34].mxu1 }
 0x306   : > { %v2861_v49 = vpop.f32.mrb[35].mxu1 }
 0x313   : > { %v2863_v52 = vpop.f32.mrb[36].mxu1 }
 0x314   : > { %v2865_v3 = vpop.f32.mrb[37].mxu1 }
 0x315   : > { %v2867_v10 = vpop.f32.mrb[38].mxu1 }
 0x316   : > { %v2869_v15 = vpop.f32.mrb[39].mxu1 }
 0x323   : > { %v2871_v25 = vpop.f32.mrb[40].mxu1 }
 0x324   : > { %v2873_v34 = vpop.f32.mrb[41].mxu1 }
 0x325   : > { %v2875_v50 = vpop.f32.mrb[42].mxu1 }
 0x326   : > { %v2877_v62 = vpop.f32.mrb[43].mxu1 }
 0x333   : > { %v2879_v22 = vpop.f32.mrb[44].mxu1 }
 0x334   : > { %v2881_v30 = vpop.f32.mrb[45].mxu1 }
 0x335   : > { %v2883_v54 = vpop.f32.mrb[46].mxu1 }
 0x336   : > { %v2885_v6 = vpop.f32.mrb[47].mxu1 }
 0x33b   : > { %v2162_v44 = vpop.f32.mrb[48].mxu1 }
 0x33c   : > { %v1709_v26 = vmul.f32 %v2162_v44, %v2890_v31  ;;  %v1541_v55 = vpop.f32.mrb[49].mxu1 }
 0x33d   : > { %v1707_v1 = vmul.f32 %v2890_v31, %v1541_v55  ;;  %v2163_v8 = vpop.f32.mrb[50].mxu1 }
 0x33e   : > { %v1741_v18 = vadd.f32 %v1709_v26, %v1670_v13  ;;  %v1710_v56 = vmul.f32 %v2163_v8, %v2890_v31  ;;  %v1544_v47 = vpop.f32.mrb[51].mxu1  ;;  %v1676_v8 = vmul.f32 0.3, %v2841_v58 }
 0x33f   : > { %v1739_v59 = vadd.f32 %v1707_v1, %v1668_v61  ;;  %v1708_v7 = vmul.f32 %v2890_v31, %v1544_v47 }
 0x340   : > { %v1780_v14 = vadd.f32 %v2896_v46, %v1741_v18  ;;  %v1742_v38 = vadd.f32 %v1710_v56, %v1671_v19  ;;  %v1679_v56 = vmul.f32 0.3, %v2843_v0 }
 0x341   : > { %v1778_v40 = vadd.f32 %v2896_v46, %v1739_v59  ;;  %v1740_v39 = vadd.f32 %v1708_v7, %v1669_v23  ;;  %v1677_v59 = vmul.f32 0.3, %v2845_v4  ;;  %v1682_v4 = vmul.f32 0.3, %v2847_v11 }
 0x342   : > { %1812 = vst.msk [vmem:[%s2905_s19 + $0x10] sm:$0xff] %vm530_vm0, %v1780_v14  ;;  %v1781_v2 = vadd.f32 %v2896_v46, %v1742_v38 }
 0x343   : > { %1810 = vst.msk [vmem:[%s2905_s19] sm:$0xff] %vm530_vm0, %v1778_v40  ;;  %v1779_v53 = vadd.f32 %v2896_v46, %v1740_v39  ;;  %v2166_v28 = vpop.f32.mrb[52].mxu1 }
 0x344   : > { %1813 = vst.msk [vmem:[%s2905_s19 + $0x18] sm:$0xff] %vm530_vm0, %v1781_v2  ;;  %v1713_v51 = vmul.f32 %v2166_v28, %v2890_v31  ;;  %v1557_v35 = vpop.f32.mrb[53].mxu1 }
 0x345   : > { %1811 = vst.msk [vmem:[%s2905_s19 + $0x8] sm:$0xff] %vm530_vm0, %v1779_v53  ;;  %v1711_v60 = vmul.f32 %v2890_v31, %v1557_v35  ;;  %v2167_v63 = vpop.f32.mrb[54].mxu1 }
 0x346   : > { %v1745_v9 = vadd.f32 %v1713_v51, %v1674_v42  ;;  %v1714_v12 = vmul.f32 %v2167_v63, %v2890_v31  ;;  %v1560_v17 = vpop.f32.mrb[55].mxu1  ;;  %v1680_v51 = vmul.f32 0.3, %v2849_v16 }
 0x347   : > { %v1743_v24 = vadd.f32 %v1711_v60, %v1672_v57  ;;  %v1712_v29 = vmul.f32 %v2890_v31, %v1560_v17  ;;  %v1683_v60 = vmul.f32 0.3, %v2851_v20 }
 0x348   : > { %v1784_v33 = vadd.f32 %v2896_v46, %v1745_v9  ;;  %v1746_v36 = vadd.f32 %v1714_v12, %v1675_v5  ;;  %v1681_v9 = vmul.f32 0.3, %v2853_v27  ;;  %v1686_v27 = vmul.f32 0.3, %v2855_v32 }
 0x349   : > { %v1782_v44 = vadd.f32 %v2896_v46, %v1743_v24  ;;  %v1744_v13 = vadd.f32 %v1712_v29, %v1673_v21 }
 0x34a   : > { %1816 = vst.msk [vmem:[%s2905_s19 + $0x30] sm:$0xff] %vm530_vm0, %v1784_v33  ;;  %v1785_v41 = vadd.f32 %v2896_v46, %v1746_v36 }
 0x34b   : > { %1814 = vst.msk [vmem:[%s2905_s19 + $0x20] sm:$0xff] %vm530_vm0, %v1782_v44  ;;  %v1783_v26 = vadd.f32 %v2896_v46, %v1744_v13  ;;  %v2170_v55 = vpop.f32.mrb[56].mxu1 }
 0x34c   : > { %1817 = vst.msk [vmem:[%s2905_s19 + $0x38] sm:$0xff] %vm530_vm0, %v1785_v41  ;;  %v1717_v61 = vmul.f32 %v2170_v55, %v2890_v31  ;;  %v1573_v1 = vpop.f32.mrb[57].mxu1  ;;  %v1684_v41 = vmul.f32 0.3, %v2857_v37 }
 0x34d   : > { %1815 = vst.msk [vmem:[%s2905_s19 + $0x28] sm:$0xff] %vm530_vm0, %v1783_v26  ;;  %v1715_v19 = vmul.f32 %v2890_v31, %v1573_v1  ;;  %v2171_v18 = vpop.f32.mrb[58].mxu1 }
 0x34e   : > { %v1749_v47 = vadd.f32 %v1717_v61, %v1678_v45  ;;  %v1718_v48 = vmul.f32 %v2171_v18, %v2890_v31  ;;  %v1576_v23 = vpop.f32.mrb[59].mxu1  ;;  %v1687_v45 = vmul.f32 0.3, %v2859_v43 }
 0x34f   : > { %v1747_v7 = vadd.f32 %v1715_v19, %v1676_v8  ;;  %v1716_v14 = vmul.f32 %v2890_v31, %v1576_v23  ;;  %v1685_v8 = vmul.f32 0.3, %v2861_v49  ;;  %v1690_v49 = vmul.f32 0.3, %v2863_v52 }
 0x350   : > { %v1788_v58 = vadd.f32 %v2896_v46, %v1749_v47  ;;  %v1750_v38 = vadd.f32 %v1718_v48, %v1679_v56 }
 0x351   : > { %v1786_v40 = vadd.f32 %v2896_v46, %v1747_v7  ;;  %v1748_v39 = vadd.f32 %v1716_v14, %v1677_v59 }
 0x352   : > { %1820 = vst.msk [vmem:[%s2905_s19 + $0x50] sm:$0xff] %vm530_vm0, %v1788_v58  ;;  %v1789_v0 = vadd.f32 %v2896_v46, %v1750_v38  ;;  %v1688_v58 = vmul.f32 0.3, %v2865_v3 }
 0x353   : > { %1818 = vst.msk [vmem:[%s2905_s19 + $0x40] sm:$0xff] %vm530_vm0, %v1786_v40  ;;  %v1787_v2 = vadd.f32 %v2896_v46, %v1748_v39  ;;  %v2174_v53 = vpop.f32.mrb[60].mxu1  ;;  %v1691_v39 = vmul.f32 0.3, %v2867_v10 }
 0x354   : > { %1821 = vst.msk [vmem:[%s2905_s19 + $0x58] sm:$0xff] %vm530_vm0, %v1789_v0  ;;  %v1721_v28 = vmul.f32 %v2174_v53, %v2890_v31  ;;  %v1589_v42 = vpop.f32.mrb[61].mxu1  ;;  %v1689_v53 = vmul.f32 0.3, %v2869_v15  ;;  %v1694_v15 = vmul.f32 0.3, %v2871_v25 }
 0x355   : > { %1819 = vst.msk [vmem:[%s2905_s19 + $0x48] sm:$0xff] %vm530_vm0, %v1787_v2  ;;  %v1719_v35 = vmul.f32 %v2890_v31, %v1589_v42  ;;  %v2175_v57 = vpop.f32.mrb[62].mxu1 }
 0x356   : > { %v1753_v63 = vadd.f32 %v1721_v28, %v1682_v4  ;;  %v1722_v11 = vmul.f32 %v2175_v57, %v2890_v31  ;;  %v1592_v5 = vpop.f32.mrb[63].mxu1 }
 0x357   : > { %v1751_v12 = vadd.f32 %v1719_v35, %v1680_v51  ;;  %v1720_v17 = vmul.f32 %v2890_v31, %v1592_v5  ;;  %v1692_v5 = vmul.f32 0.3, %v2873_v34 }
 0x358   : > { %v1792_v16 = vadd.f32 %v2896_v46, %v1753_v63  ;;  %v1754_v21 = vadd.f32 %v1722_v11, %v1683_v60 }
 0x359   : > { %v1790_v24 = vadd.f32 %v2896_v46, %v1751_v12  ;;  %v1752_v29 = vadd.f32 %v1720_v17, %v1681_v9  ;;  %v1695_v17 = vmul.f32 0.3, %v2875_v50 }
 0x35a   : > { %1824 = vst.msk [vmem:[%s2905_s19 + $0x70] sm:$0xff] %vm530_vm0, %v1792_v16  ;;  %v1793_v20 = vadd.f32 %v2896_v46, %v1754_v21 }
 0x35b   : > { %1822 = vst.msk [vmem:[%s2905_s19 + $0x60] sm:$0xff] %vm530_vm0, %v1790_v24  ;;  %v1791_v33 = vadd.f32 %v2896_v46, %v1752_v29  ;;  %v2178_v36 = vpop.f32.mrb[64].mxu1  ;;  %v1693_v24 = vmul.f32 0.3, %v2877_v62  ;;  %v1698_v62 = vmul.f32 0.3, %v2879_v22 }
 0x35c   : > { %1825 = vst.msk [vmem:[%s2905_s19 + $0x78] sm:$0xff] %vm530_vm0, %v1793_v20  ;;  %v1725_v44 = vmul.f32 %v2178_v36, %v2890_v31  ;;  %v1605_v13 = vpop.f32.mrb[65].mxu1 }
 0x35d   : > { %1823 = vst.msk [vmem:[%s2905_s19 + $0x68] sm:$0xff] %vm530_vm0, %v1791_v33  ;;  %v1723_v26 = vmul.f32 %v2890_v31, %v1605_v13  ;;  %v2179_v55 = vpop.f32.mrb[66].mxu1 }
 0x35e   : > { %v1757_v61 = vadd.f32 %v1725_v44, %v1686_v27  ;;  %v1726_v32 = vmul.f32 %v2179_v55, %v2890_v31  ;;  %v1608_v1 = vpop.f32.mrb[67].mxu1  ;;  %v1696_v55 = vmul.f32 0.3, %v2881_v30 }
 0x35f   : > { %v1755_v19 = vadd.f32 %v1723_v26, %v1684_v41  ;;  %v1724_v18 = vmul.f32 %v2890_v31, %v1608_v1 }
 0x360   : > { %v1796_v37 = vadd.f32 %v2896_v46, %v1757_v61  ;;  %v1758_v56 = vadd.f32 %v1726_v32, %v1687_v45  ;;  %v1699_v32 = vmul.f32 0.3, %v2883_v54 }
 0x361   : > { %v1794_v47 = vadd.f32 %v2896_v46, %v1755_v19  ;;  %v1756_v48 = vadd.f32 %v1724_v18, %v1685_v8  ;;  %v1697_v19 = vmul.f32 0.3, %v2885_v6 }
 0x362   : > { %1828 = vst.msk [vmem:[%s2905_s19 + $0x90] sm:$0xff] %vm530_vm0, %v1796_v37  ;;  %v1797_v43 = vadd.f32 %v2896_v46, %v1758_v56 }
 0x363   : > { %1826 = vst.msk [vmem:[%s2905_s19 + $0x80] sm:$0xff] %vm530_vm0, %v1794_v47  ;;  %v1795_v23 = vadd.f32 %v2896_v46, %v1756_v48  ;;  %v2182_v59 = vpop.f32.mrb[68].mxu1 }
 0x364   : > { %1829 = vst.msk [vmem:[%s2905_s19 + $0x98] sm:$0xff] %vm530_vm0, %v1797_v43  ;;  %v1729_v7 = vmul.f32 %v2182_v59, %v2890_v31  ;;  %v1621_v14 = vpop.f32.mrb[69].mxu1 }
 0x365   : > { %1827 = vst.msk [vmem:[%s2905_s19 + $0x88] sm:$0xff] %vm530_vm0, %v1795_v23  ;;  %v1727_v38 = vmul.f32 %v2890_v31, %v1621_v14  ;;  %v2183_v40 = vpop.f32.mrb[70].mxu1 }
 0x366   : > { %v1761_v0 = vadd.f32 %v1729_v7, %v1690_v49  ;;  %v1730_v52 = vmul.f32 %v2183_v40, %v2890_v31  ;;  %v1624_v2 = vpop.f32.mrb[71].mxu1 }
 0x367   : > { %v1759_v4 = vadd.f32 %v1727_v38, %v1688_v58  ;;  %v1728_v28 = vmul.f32 %v2890_v31, %v1624_v2 }
 0x368   : > { %v1800_v3 = vadd.f32 %v2896_v46, %v1761_v0  ;;  %v1762_v42 = vadd.f32 %v1730_v52, %v1691_v39 }
 0x369   : > { %v1798_v51 = vadd.f32 %v2896_v46, %v1759_v4  ;;  %v1760_v35 = vadd.f32 %v1728_v28, %v1689_v53 }
 0x36a   : > { %1832 = vst.msk [vmem:[%s2905_s19 + $0xb0] sm:$0xff] %vm530_vm0, %v1800_v3  ;;  %v1801_v10 = vadd.f32 %v2896_v46, %v1762_v42 }
 0x36b   : > { %1830 = vst.msk [vmem:[%s2905_s19 + $0xa0] sm:$0xff] %vm530_vm0, %v1798_v51  ;;  %v1799_v57 = vadd.f32 %v2896_v46, %v1760_v35  ;;  %v2186_v60 = vpop.f32.mrb[72].mxu1 }
 0x36c   : > { %1833 = vst.msk [vmem:[%s2905_s19 + $0xb8] sm:$0xff] %vm530_vm0, %v1801_v10  ;;  %v1733_v63 = vmul.f32 %v2186_v60, %v2890_v31  ;;  %v1637_v11 = vpop.f32.mrb[73].mxu1 }
 0x36d   : > { %1831 = vst.msk [vmem:[%s2905_s19 + $0xa8] sm:$0xff] %vm530_vm0, %v1799_v57  ;;  %v1731_v9 = vmul.f32 %v2890_v31, %v1637_v11  ;;  %v2187_v12 = vpop.f32.mrb[74].mxu1 }
 0x36e   : > { %v1765_v16 = vadd.f32 %v1733_v63, %v1694_v15  ;;  %v1734_v25 = vmul.f32 %v2187_v12, %v2890_v31  ;;  %v1640_v21 = vpop.f32.mrb[75].mxu1 }
 0x36f   : > { %v1763_v29 = vadd.f32 %v1731_v9, %v1692_v5  ;;  %v1732_v20 = vmul.f32 %v2890_v31, %v1640_v21 }
 0x370   : > { %v1804_v34 = vadd.f32 %v2896_v46, %v1765_v16  ;;  %v1766_v33 = vadd.f32 %v1734_v25, %v1695_v17 }
 0x371   : > { %v1802_v36 = vadd.f32 %v2896_v46, %v1763_v29  ;;  %v1764_v27 = vadd.f32 %v1732_v20, %v1693_v24 }
 0x372   : > { %1836 = vst.msk [vmem:[%s2905_s19 + $0xd0] sm:$0xff] %vm530_vm0, %v1804_v34  ;;  %v1805_v50 = vadd.f32 %v2896_v46, %v1766_v33 }
 0x373   : > { %1834 = vst.msk [vmem:[%s2905_s19 + $0xc0] sm:$0xff] %vm530_vm0, %v1802_v36  ;;  %v1803_v44 = vadd.f32 %v2896_v46, %v1764_v27  ;;  %v2190_v13 = vpop.f32.mrb[76].mxu1 }
 0x374   : > { %1837 = vst.msk [vmem:[%s2905_s19 + $0xd8] sm:$0xff] %vm530_vm0, %v1805_v50  ;;  %v1737_v41 = vmul.f32 %v2190_v13, %v2890_v31  ;;  %v1653_v26 = vpop.f32.mrb[77].mxu1 }
 0x375   : > { %1835 = vst.msk [vmem:[%s2905_s19 + $0xc8] sm:$0xff] %vm530_vm0, %v1803_v44  ;;  %v1735_v45 = vmul.f32 %v2890_v31, %v1653_v26  ;;  %v2191_v61 = vpop.f32.mrb[78].mxu1 }
 0x376   : > { %v1769_v1 = vadd.f32 %v1737_v41, %v1698_v62  ;;  %v1738_v22 = vmul.f32 %v2191_v61, %v2890_v31  ;;  %v1656_v8 = vpop.f32.mrb[79].mxu1 }
 0x377   : > { %v1767_v18 = vadd.f32 %v1735_v45, %v1696_v55  ;;  %v1736_v37 = vmul.f32 %v2890_v31, %v1656_v8 }
 0x378   : > { %v1808_v30 = vadd.f32 %v2896_v46, %v1769_v1  ;;  %v1770_v56 = vadd.f32 %v1738_v22, %v1699_v32 }
 0x379   : > { %v1806_v47 = vadd.f32 %v2896_v46, %v1767_v18  ;;  %v1768_v48 = vadd.f32 %v1736_v37, %v1697_v19 }
 0x37a   : > { %1840 = vst.msk [vmem:[%s2905_s19 + $0xf0] sm:$0xff] %vm530_vm0, %v1808_v30  ;;  %v1809_v54 = vadd.f32 %v2896_v46, %v1770_v56 }
 0x37b   : > { %1838 = vst.msk [vmem:[%s2905_s19 + $0xe0] sm:$0xff] %vm530_vm0, %v1806_v47  ;;  %v1807_v43 = vadd.f32 %v2896_v46, %v1768_v48 }
 0x37c   : > { %1841 = vst.msk [vmem:[%s2905_s19 + $0xf8] sm:$0xff] %vm530_vm0, %v1809_v54 }
 0x37d   : > { %1839 = vst.msk [vmem:[%s2905_s19 + $0xe8] sm:$0xff] %vm530_vm0, %v1807_v43 }
 0x37e PF: > { %s19_s30 = sadd.s32 1, %s2256_s30  }
 0x37f   : > { %p16_p4 = scmp.ge.s32.totalorder %s19_s30, 4  }
 0x381   :  { %18 = sbr.rel (!%p16_p4) target bundleno = 1 (0x1), region = 89 }

// kernel: encoder_img_forward.5
= control target key start
LH: loop header
LB: loop body
LE: loop exit
PB: predicated region body
PF: predicated region fallthrough
CT: control target
= control target key end

     0   :  { %v64_v8 = vlaneseq  ;;  %vm1191_vm0 = vcmask 195584   ;;  %s2396_s3 = inlined_call_operand.vmem [shape: bf16[256,256], index: 3, kind: input, shape index: {}]   ;;  %s2397_s2 = inlined_call_operand.vmem [shape: f32[3,256], index: 2, kind: input, shape index: {}]   ;;  %s2398_s0 = inlined_call_operand.vmem [shape: f32[128,256], index: 0, kind: input, shape index: {}]   ;;  %s2399_s4 = inlined_call_operand.vmem [shape: bf16[256,24], index: 4, kind: input, shape index: {}]   ;;  %s2400_s5 = inlined_call_operand.vmem [shape: bf16[256,24], index: 5, kind: input, shape index: {}]   ;;  %s2401_s1 = inlined_call_operand.vmem [shape: f32[128,256], index: 1, kind: input, shape index: {}]   ;;  %s2402_s6 = inlined_call_operand.vmem [shape: f32[1,24], index: 6, kind: input, shape index: {}]   ;;  %s2403_s7 = inlined_call_operand.vmem [shape: f32[1,24], index: 7, kind: input, shape index: {}]   ;;  %s2404_s8 = inlined_call_operand.vmem [shape: f32[128,24], index: 8, kind: output, shape index: {}]  }
   0x1   :  { %v1422_v0 = vld [vmem:[%s2396_s3 + $0x4] ss:$8 sps:$4 sm:$0xff]   ;;  %v1424_v1 = vld [vmem:[%s2396_s3] ss:$8 sps:$4 sm:$0xff]   ;;  %v1425_v2 = vld [vmem:[%s2396_s3 + $0x14] ss:$8 sps:$4 sm:$0xff]  }
   0x2   :  { %422 = vmatprep.subr.bf16.mxu0 %v1422_v0  ;;  %v1427_v3 = vld [vmem:[%s2396_s3 + $0x10] ss:$8 sps:$4 sm:$0xff]   ;;  %v1428_v4 = vld [vmem:[%s2396_s3 + $0x24] ss:$8 sps:$4 sm:$0xff]   ;;  %v1430_v5 = vld [vmem:[%s2396_s3 + $0x20] ss:$8 sps:$4 sm:$0xff]  }
   0x3   :  { %423 = vmatpush1.bf16.msra.mxu0 %v1424_v1  ;;  %v1431_v6 = vld [vmem:[%s2396_s3 + $0x34] ss:$8 sps:$4 sm:$0xff]   ;;  %v1433_v7 = vld [vmem:[%s2396_s3 + $0x30] ss:$8 sps:$4 sm:$0xff]   ;;  %v1434_v9 = vld [vmem:[%s2396_s3 + $0x44] ss:$8 sps:$4 sm:$0xff]  }
   0x4   :  { %424 = vmatprep.subr.bf16.mxu0 %v1425_v2  ;;  %v1436_v10 = vld [vmem:[%s2396_s3 + $0x40] ss:$8 sps:$4 sm:$0xff]   ;;  %v1581_v11 = vshrl.u32 %v64_v8, 7  ;;  %v1437_v12 = vld [vmem:[%s2396_s3 + $0x54] ss:$8 sps:$4 sm:$0xff]  }
   0x5   :  { %v1439_v13 = vld [vmem:[%s2396_s3 + $0x50] ss:$8 sps:$4 sm:$0xff]   ;;  %v1440_v16 = vld [vmem:[%s2396_s3 + $0x64] ss:$8 sps:$4 sm:$0xff]   ;;  %v1442_v20 = vld [vmem:[%s2396_s3 + $0x60] ss:$8 sps:$4 sm:$0xff]  }
   0x6   :  { %v70_v14 = vsub.s32 4, %v1581_v11  ;;  %v120_v15 = vsub.s32 5, %v1581_v11  ;;  %v1595_v17 = vsub.s32 0, %v1581_v11  ;;  %v1598_v18 = vsub.s32 1, %v1581_v11  ;;  %v1603_v19 = vld [vmem:[%s2397_s2] sm:$0x77] }
   0x7   :  { %425 = vmatpush1.bf16.msra.mxu0 %v1427_v3  ;;  %v1613_v23 = vld [vmem:[%s2398_s0] sm:$0xff]  ;;  %v1618_v24 = vld [vmem:[%s2398_s0 + $0x10] sm:$0xff]  ;;  %v31_v26 = vld [vmem:[%s2398_s0 + $0x8] sm:$0xff] }
   0x8   :  { %426 = vmatprep.subr.bf16.mxu0 %v1428_v4  ;;  %v71_v21 = vrot.slane %v1603_v19, %v70_v14  ;;  %v121_v22 = vrot.slane %v1603_v19, %v120_v15  ;;  %v1443_v25 = vld [vmem:[%s2396_s3 + $0x74] ss:$8 sps:$4 sm:$0xff]   ;;  %v872_v28 = vpack.c.bf16 %v1618_v24, %v1613_v23  ;;  %v1445_v31 = vld [vmem:[%s2396_s3 + $0x70] ss:$8 sps:$4 sm:$0xff]   ;;  %v1446_v34 = vld [vmem:[%s2396_s3 + $0x84] ss:$8 sps:$4 sm:$0xff]   ;;  %v67_v55 = vrot.slane %v1603_v19, %v1595_v17 }
   0x9   :  { %v33_v27 = vld [vmem:[%s2398_s0 + $0x18] sm:$0xff]  ;;  %v1448_v37 = vld [vmem:[%s2396_s3 + $0x80] ss:$8 sps:$4 sm:$0xff]   ;;  %v1452_v43 = vld [vmem:[%s2396_s3 + $0xa4] ss:$8 sps:$4 sm:$0xff]  }
   0xa   :  { %v1632_v29 = vrot.slane %v71_v21, %v1595_v17  ;;  %v1635_v30 = vrot.slane %v121_v22, %v1598_v18  ;;  %v1449_v40 = vld [vmem:[%s2396_s3 + $0x94] ss:$8 sps:$4 sm:$0xff]   ;;  %v1451_v41 = vld [vmem:[%s2396_s3 + $0x90] ss:$8 sps:$4 sm:$0xff]   ;;  %v1662_v44 = vld [vmem:[%s2399_s4 + $0x40] sm:$0xff]  }
   0xb   :  { %427 = vmatpush1.bf16.msra.mxu0 %v1430_v5  ;;  %v1667_v45 = vld [vmem:[%s2399_s4] sm:$0xff]   ;;  %v1675_v47 = vld [vmem:[%s2399_s4 + $0x48] sm:$0xff]   ;;  %1406 = vmatprep.subr.bf16.mxu1 %v1662_v44  ;;  %v1455_v48 = vld [vmem:[%s2396_s3 + $0xb4] ss:$8 sps:$4 sm:$0xff]   ;;  %v1752_v5 = vrot.slane %v67_v55, %v1595_v17 }
   0xc   :  { %428 = vmatprep.subr.bf16.mxu0 %v1431_v6  ;;  %v83_v32 = vmul.f32 %v1632_v29, %v31_v26  ;;  %v85_v33 = vmul.f32 %v1632_v29, %v33_v27  ;;  %v1454_v46 = vld [vmem:[%s2396_s3 + $0xa0] ss:$8 sps:$4 sm:$0xff]   ;;  %1414 = vmatpush3.bf16.msra.mxu1 %v1667_v45  ;;  %v53_v50 = vld [vmem:[%s2398_s0 + $0xb8] sm:$0xff]  ;;  %v1700_v53 = vld [vmem:[%s2399_s4 + $0x50] sm:$0xff]   ;;  %v117_v6 = vrot.slane %v1603_v19, %v1598_v18 }
   0xd   :  { %v51_v49 = vld [vmem:[%s2398_s0 + $0xa8] sm:$0xff]  ;;  %1407 = vmatprep.subr.bf16.mxu1 %v1675_v47  ;;  %v1457_v52 = vld [vmem:[%s2396_s3 + $0xb0] ss:$8 sps:$4 sm:$0xff]   ;;  %v105_v57 = vmul.f32 %v1632_v29, %v53_v50  ;;  %v1461_v4 = vld [vmem:[%s2396_s3 + $0xd4] ss:$8 sps:$4 sm:$0xff]   ;;  %v82_v22 = vmul.f32 %v1752_v5, %v1613_v23 }
   0xe   :  { %v133_v35 = vadd.f32 %v1635_v30, %v83_v32  ;;  %v135_v36 = vadd.f32 %v1635_v30, %v85_v33  ;;  %v1692_v51 = vld [vmem:[%s2399_s4 + $0x8] sm:$0xff]   ;;  %v103_v56 = vmul.f32 %v1632_v29, %v51_v49  ;;  %v1718_v59 = vld [vmem:[%s2398_s0 + $0xd8] sm:$0xff]  ;;  %v1731_v63 = vld [vmem:[%s2399_s4 + $0x10] sm:$0xff]   ;;  %v1791_v26 = vrot.slane %v117_v6, %v1598_v18 }
   0xf   :  { %429 = vmatpush1.bf16.msra.mxu0 %v1433_v7  ;;  %v1458_v54 = vld [vmem:[%s2396_s3 + $0xc4] ss:$8 sps:$4 sm:$0xff]   ;;  %v155_v61 = vadd.f32 %v1635_v30, %v105_v57  ;;  %v1460_v0 = vld [vmem:[%s2396_s3 + $0xc0] ss:$8 sps:$4 sm:$0xff]   ;;  %v1741_v2 = vld [vmem:[%s2398_s0 + $0xf8] sm:$0xff] }
  0x10   :  { %430 = vmatprep.subr.bf16.mxu0 %v1434_v9  ;;  %v165_v38 = vmax.f32 %v133_v35, 0.0  ;;  %v167_v39 = vmax.f32 %v135_v36, 0.0  ;;  %v1712_v58 = vld [vmem:[%s2398_s0 + $0xc8] sm:$0xff]  ;;  %1415 = vmatpush3.bf16.msra.mxu1 %v1692_v51  ;;  %v153_v60 = vadd.f32 %v1635_v30, %v103_v56  ;;  %v1746_v3 = vld [vmem:[%s2399_s4 + $0x58] sm:$0xff]   ;;  %v1784_v21 = vld [vmem:[%s2399_s4 + $0x60] sm:$0xff]   ;;  %v113_v27 = vmul.f32 %v1632_v29, %v1741_v2 }
  0x11   :  { %1408 = vmatprep.subr.bf16.mxu1 %v1700_v53  ;;  %v1726_v62 = vld [vmem:[%s2398_s0 + $0xe8] sm:$0xff]  ;;  %v107_v1 = vmul.f32 %v1632_v29, %v1712_v58  ;;  %v1764_v8 = vld [vmem:[%s2398_s0 + $0x38] sm:$0xff]  ;;  %v1827_v49 = vld [vmem:[%s2398_s0 + $0x20] sm:$0xff] }
  0x12   :  { %v197_v42 = vpack.c.bf16 %v167_v39, %v165_v38  ;;  %v1759_v7 = vld [vmem:[%s2398_s0 + $0x28] sm:$0xff]  ;;  %v185_v9 = vmax.f32 %v153_v60, 0.0  ;;  %v1775_v15 = vld [vmem:[%s2399_s4 + $0x18] sm:$0xff]   ;;  %v89_v33 = vmul.f32 %v1632_v29, %v1764_v8  ;;  %v163_v36 = vadd.f32 %v1635_v30, %v113_v27  ;;  %v1832_v50 = vld [vmem:[%s2398_s0 + $0x30] sm:$0xff] }
  0x13   :  { %431 = vmatpush1.bf16.msra.mxu0 %v1436_v10  ;;  %v187_v10 = vmax.f32 %v155_v61, 0.0  ;;  %v87_v32 = vmul.f32 %v1632_v29, %v1759_v7  ;;  %v1464_v35 = vld [vmem:[%s2396_s3 + $0xe4] ss:$8 sps:$4 sm:$0xff]   ;;  %v1845_v55 = vld [vmem:[%s2398_s0 + $0x58] sm:$0xff]  ;;  %v86_v61 = vmul.f32 %v1752_v5, %v1827_v49  ;;  %v1872_v27 = vld [vmem:[%s2398_s0 + $0x50] sm:$0xff] }
  0x14   :  { %432 = vmatprep.subr.bf16.mxu0 %v1437_v12  ;;  %454 = vmatprep.mubr.bf16.mxu0 %v197_v42  ;;  %v109_v12 = vmul.f32 %v1632_v29, %v1718_v59  ;;  %v195_v42 = vmax.f32 %v163_v36, 0.0 }
  0x15   :  { %1416 = vmatpush3.bf16.msra.mxu1 %v1731_v63  ;;  %v1770_v14 = vpack.c.bf16 %v187_v10, %v185_v9  ;;  %v93_v10 = vmul.f32 %v1632_v29, %v1845_v55 }
  0x16   :  { %1409 = vmatprep.subr.bf16.mxu1 %v1746_v3 }
  0x17   :  { %433 = vmatpush1.bf16.msra.mxu0 %v1439_v13  ;;  %v157_v13 = vadd.f32 %v1635_v30, %v107_v1  ;;  %v1469_v1 = vld [vmem:[%s2396_s3 + $0xf0] ss:$8 sps:$4 sm:$0xff]  }
  0x18   :  { %434 = vmatprep.subr.bf16.mxu0 %v1440_v16  ;;  %v159_v16 = vadd.f32 %v1635_v30, %v109_v12 }
  0x19   :  { %v189_v17 = vmax.f32 %v157_v13, 0.0  ;;  %1417 = vmatpush3.bf16.msra.mxu1 %v1775_v15  ;;  %v136_v13 = vadd.f32 %v1791_v26, %v86_v61 }
  0x1a   :  { %1410 = vmatprep.subr.bf16.mxu1 %v1784_v21 }
  0x1b   :  { %435 = vmatpush1.bf16.msra.mxu0 %v1442_v20  ;;  %v111_v20 = vmul.f32 %v1632_v29, %v1726_v62 }
  0x1c   :  { %436 = vmatprep.subr.bf16.mxu0 %v1443_v25  ;;  %v84_v25 = vmul.f32 %v1752_v5, %v1618_v24 }
  0x1d   :  { %v161_v18 = vadd.f32 %v1635_v30, %v111_v20 }
  0x1f   :  { %437 = vmatpush1.bf16.msra.mxu0 %v1445_v31  ;;  %v1463_v31 = vld [vmem:[%s2396_s3 + $0xd0] ss:$8 sps:$4 sm:$0xff]   ;;  %v193_v39 = vmax.f32 %v161_v18, 0.0 }
  0x20   :  { %438 = vmatprep.subr.bf16.mxu0 %v1446_v34  ;;  %v191_v34 = vmax.f32 %v159_v16, 0.0 }
  0x21   :  { %v1847_v56 = vpack.c.bf16 %v195_v42, %v193_v39 }
  0x22   :  { %v1814_v38 = vpack.c.bf16 %v191_v34, %v189_v17 }
  0x23   :  { %439 = vmatpush1.bf16.msra.mxu0 %v1448_v37  ;;  %v1812_v37 = vld [vmem:[%s2399_s4 + $0x20] sm:$0xff]  }
  0x24   :  { %440 = vmatprep.subr.bf16.mxu0 %v1449_v40  ;;  %v132_v40 = vadd.f32 %v1791_v26, %v82_v22  ;;  %1418 = vmatpush3.bf16.msra.mxu1 %v1812_v37  ;;  %v143_v22 = vadd.f32 %v1635_v30, %v93_v10 }
  0x26   :  { %v164_v57 = vmax.f32 %v132_v40, 0.0  ;;  %v175_v39 = vmax.f32 %v143_v22, 0.0  ;;  %v1938_v22 = vld [vmem:[%s2398_s0 + $0x80] sm:$0xff] }
  0x27   :  { %441 = vmatpush1.bf16.msra.mxu0 %v1451_v41  ;;  %v134_v41 = vadd.f32 %v1791_v26, %v84_v25  ;;  %v1867_v25 = vld [vmem:[%s2398_s0 + $0x40] sm:$0xff] }
  0x28   :  { %442 = vmatprep.subr.bf16.mxu0 %v1452_v43  ;;  %v1466_v43 = vld [vmem:[%s2396_s3 + $0xe0] ss:$8 sps:$4 sm:$0xff]   ;;  %v90_v18 = vmul.f32 %v1752_v5, %v1867_v25 }
  0x29   :  { %v166_v60 = vmax.f32 %v134_v41, 0.0 }
  0x2a   :  { %v140_v42 = vadd.f32 %v1791_v26, %v90_v18 }
  0x2b   :  { %443 = vmatpush1.bf16.msra.mxu0 %v1454_v46  ;;  %v137_v46 = vadd.f32 %v1635_v30, %v87_v32  ;;  %v196_v12 = vpack.c.bf16 %v166_v60, %v164_v57  ;;  %v1882_v32 = vld [vmem:[%s2398_s0 + $0x78] sm:$0xff]  ;;  %v1902_v57 = vld [vmem:[%s2398_s0 + $0x60] sm:$0xff] }
  0x2c   :  { %444 = vmatprep.subr.bf16.mxu0 %v1455_v48  ;;  %v139_v48 = vadd.f32 %v1635_v30, %v89_v33  ;;  %v168_v33 = vmax.f32 %v136_v13, 0.0  ;;  %v97_v41 = vmul.f32 %v1632_v29, %v1882_v32  ;;  %v1918_v60 = vld [vmem:[%s2398_s0 + $0x98] sm:$0xff]  ;;  %v172_v61 = vmax.f32 %v140_v42, 0.0 }
  0x2d   :  { %v101_v10 = vmul.f32 %v1632_v29, %v1918_v60 }
  0x2e   :  { %v171_v6 = vmax.f32 %v139_v48, 0.0 }
  0x2f   :  { %445 = vmatpush1.bf16.msra.mxu0 %v1457_v52  ;;  %v1467_v52 = vld [vmem:[%s2396_s3 + $0xf4] ss:$8 sps:$4 sm:$0xff]  }
  0x30   :  { %446 = vmatprep.subr.bf16.mxu0 %v1458_v54  ;;  %v1840_v54 = vld [vmem:[%s2398_s0 + $0x48] sm:$0xff] }
  0x31   :  { %v91_v9 = vmul.f32 %v1632_v29, %v1840_v54 }
  0x33   :  { %447 = vmatpush1.bf16.msra.mxu0 %v1460_v0  ;;  %v88_v0 = vmul.f32 %v1752_v5, %v1832_v50  ;;  %v141_v20 = vadd.f32 %v1635_v30, %v91_v9 }
  0x34   :  { %448 = vmatprep.subr.bf16.mxu0 %v1461_v4  ;;  %v169_v4 = vmax.f32 %v137_v46, 0.0 }
  0x35   :  { %v138_v16 = vadd.f32 %v1791_v26, %v88_v0  ;;  %v173_v36 = vmax.f32 %v141_v20, 0.0  ;;  %v151_v20 = vadd.f32 %v1635_v30, %v101_v10 }
  0x36   :  { %v199_v17 = vpack.c.bf16 %v171_v6, %v169_v4 }
  0x37   :  { %449 = vmatpush1.bf16.msra.mxu0 %v1463_v31  ;;  %v1877_v31 = vld [vmem:[%s2398_s0 + $0x68] sm:$0xff]  ;;  %v170_v34 = vmax.f32 %v138_v16, 0.0  ;;  %v201_v46 = vpack.c.bf16 %v175_v39, %v173_v36  ;;  %v183_v18 = vmax.f32 %v151_v20, 0.0  ;;  %v1957_v39 = vld [vmem:[%s2398_s0 + $0xa0] sm:$0xff] }
  0x38   :  { %450 = vmatprep.subr.bf16.mxu0 %v1464_v35  ;;  %v92_v35 = vmul.f32 %v1752_v5, %v1872_v27  ;;  %v95_v40 = vmul.f32 %v1632_v29, %v1877_v31 }
  0x3a   :  { %v145_v48 = vadd.f32 %v1635_v30, %v95_v40  ;;  %v1962_v40 = vld [vmem:[%s2398_s0 + $0xb0] sm:$0xff] }
  0x3b   :  { %451 = vmatpush1.bf16.msra.mxu0 %v1466_v43  ;;  %v142_v43 = vadd.f32 %v1791_v26, %v92_v35  ;;  %v104_v42 = vmul.f32 %v1752_v5, %v1962_v40 }
  0x3c   :  { %452 = vmatprep.subr.bf16.mxu0 %v1467_v52  ;;  %v147_v52 = vadd.f32 %v1635_v30, %v97_v41  ;;  %v177_v4 = vmax.f32 %v145_v48, 0.0 }
  0x3d   :  { %v174_v0 = vmax.f32 %v142_v43, 0.0  ;;  %v154_v48 = vadd.f32 %v1791_v26, %v104_v42 }
  0x3e   :  { %v179_v6 = vmax.f32 %v147_v52, 0.0  ;;  %v1973_v52 = vld [vmem:[%s2398_s0 + $0xc0] sm:$0xff] }
  0x3f   :  { %453 = vmatpush1.bf16.msra.mxu0 %v1469_v1  ;;  %v94_v1 = vmul.f32 %v1752_v5, %v1902_v57 }
  0x40   :  { %1278 = vmatprep.subr.bf16.mxu0 %v1662_v44  ;;  %v198_v44 = vpack.c.bf16 %v170_v34, %v168_v33  ;;  %v203_v16 = vpack.c.bf16 %v179_v6, %v177_v4 }
  0x42   :  { %455 = vmatmul.mubr.bf16.vlgmr.msra.gmra.mrb[0].mxu0 %v196_v12  ;;  %v144_v12 = vadd.f32 %v1791_v26, %v94_v1  ;;  %v186_v1 = vmax.f32 %v154_v48, 0.0 }
  0x43   :  { %464 = vmatprep.mubr.bf16.mxu0 %v199_v17  ;;  %1279 = vmatpush3.bf16.msra.mxu0 %v1667_v45  ;;  %v1907_v45 = vld [vmem:[%s2398_s0 + $0x70] sm:$0xff] }
  0x44   :  { %1280 = vmatprep.subr.bf16.mxu0 %v1675_v47  ;;  %v1913_v47 = vld [vmem:[%s2398_s0 + $0x88] sm:$0xff]  ;;  %v878_v23 = vpack.c.bf16 %v1907_v45, %v1902_v57 }
  0x45   :  { %v99_v9 = vmul.f32 %v1632_v29, %v1913_v47  ;;  %v1943_v29 = vld [vmem:[%s2398_s0 + $0x90] sm:$0xff]  ;;  %v881_v24 = vpack.c.bf16 %v1918_v60, %v1913_v47 }
  0x46   :  { %v100_v33 = vmul.f32 %v1752_v5, %v1943_v29 }
  0x47   :  { %1281 = vmatpush3.bf16.msra.mxu0 %v1692_v51  ;;  %v96_v51 = vmul.f32 %v1752_v5, %v1907_v45  ;;  %v149_v17 = vadd.f32 %v1635_v30, %v99_v9  ;;  %v98_v30 = vmul.f32 %v1752_v5, %v1938_v22 }
  0x48   :  { %1282 = vmatprep.subr.bf16.mxu0 %v1700_v53  ;;  %v200_v53 = vpack.c.bf16 %v174_v0, %v172_v61  ;;  %v1978_v61 = vld [vmem:[%s2398_s0 + $0xd0] sm:$0xff] }
  0x49   :  { %v146_v13 = vadd.f32 %v1791_v26, %v96_v51  ;;  %v181_v34 = vmax.f32 %v149_v17, 0.0  ;;  %v148_v36 = vadd.f32 %v1791_v26, %v98_v30  ;;  %v106_v51 = vmul.f32 %v1752_v5, %v1973_v52 }
  0x4a   :  { %465 = vmatmul.mubr.bf16.gmra.mrb[4].mxu0 %v198_v44  ;;  %v108_v4 = vmul.f32 %v1752_v5, %v1978_v61 }
  0x4b   :  { %474 = vmatprep.mubr.bf16.mxu0 %v201_v46  ;;  %1283 = vmatpush3.bf16.msra.mxu0 %v1731_v63  ;;  %v176_v63 = vmax.f32 %v144_v12, 0.0  ;;  %v180_v41 = vmax.f32 %v148_v36, 0.0  ;;  %v156_v9 = vadd.f32 %v1791_v26, %v106_v51  ;;  %v1995_v12 = vld [vmem:[%s2398_s0 + $0xf0] sm:$0xff]  ;;  %v1486_v36 = vld [vmem:[%s2400_s5 + $0x40] sm:$0xff]  }
  0x4c   :  { %1284 = vmatprep.subr.bf16.mxu0 %v1746_v3  ;;  %v178_v3 = vmax.f32 %v146_v13, 0.0  ;;  %v158_v10 = vadd.f32 %v1791_v26, %v108_v4  ;;  %v112_v17 = vmul.f32 %v1752_v5, %v1995_v12 }
  0x4d   :  { %v188_v13 = vmax.f32 %v156_v9, 0.0  ;;  %v569_v9 = vld [vmem:[%s2401_s1 + $0x10] sm:$0xff] }
  0x4e   :  { %v202_v35 = vpack.c.bf16 %v178_v3, %v176_v63  ;;  %v162_v3 = vadd.f32 %v1791_v26, %v112_v17 }
  0x4f   :  { %1285 = vmatpush3.bf16.msra.mxu0 %v1775_v15  ;;  %v150_v15 = vadd.f32 %v1791_v26, %v100_v33 }
  0x50   :  { %1286 = vmatprep.subr.bf16.mxu0 %v1784_v21  ;;  %v205_v21 = vpack.c.bf16 %v183_v18, %v181_v34  ;;  %v194_v33 = vmax.f32 %v162_v3, 0.0  ;;  %v1480_v18 = vld [vmem:[%s2399_s4 + $0x68] sm:$0xff]  }
  0x51   :  { %v182_v44 = vmax.f32 %v150_v15, 0.0  ;;  %1411 = vmatprep.subr.bf16.mxu1 %v1480_v18  ;;  %v246_v15 = vsub.s32 2, %v1581_v11 }
  0x52   :  { %475 = vmatmul.mubr.bf16.gmra.mrb[8].mxu0 %v200_v53  ;;  %v1990_v53 = vld [vmem:[%s2398_s0 + $0xe0] sm:$0xff] }
  0x53   :  { %484 = vmatprep.mubr.bf16.mxu0 %v203_v16  ;;  %1287 = vmatpush3.bf16.msra.mxu0 %v1812_v37  ;;  %v102_v37 = vmul.f32 %v1752_v5, %v1957_v39  ;;  %v204_v43 = vpack.c.bf16 %v182_v44, %v180_v41  ;;  %v190_v16 = vmax.f32 %v158_v10, 0.0  ;;  %v247_v41 = vrot.slane %v1603_v19, %v246_v15 }
  0x54   :  { %1288 = vmatprep.subr.bf16.mxu0 %v1480_v18 }
  0x55   :  { %v152_v46 = vadd.f32 %v1791_v26, %v102_v37  ;;  %v208_v20 = vpack.c.bf16 %v190_v16, %v188_v13  ;;  %v2030_v37 = vrot.slane %v247_v41, %v246_v15  ;;  %v568_v13 = vld [vmem:[%s2401_s1 + $0x8] sm:$0xff] }
  0x57   :  { %v184_v0 = vmax.f32 %v152_v46, 0.0 }
  0x59   :  { %v206_v6 = vpack.c.bf16 %v186_v1, %v184_v0 }
  0x5a   :  { %485 = vmatmul.mubr.bf16.gmra.mrb[12].mxu0 %v202_v35  ;;  %v1485_v35 = vld [vmem:[%s2399_s4 + $0x38] sm:$0xff]  }
  0x5b   :  { %494 = vmatprep.mubr.bf16.mxu0 %v205_v21  ;;  %v250_v21 = vsub.s32 6, %v1581_v11  ;;  %v567_v11 = vld [vmem:[%s2401_s1] sm:$0xff] }
  0x5d   :  { %v251_v44 = vrot.slane %v1603_v19, %v250_v21  ;;  %v571_v21 = vld [vmem:[%s2401_s1 + $0x20] sm:$0xff] }
  0x5f   :  { %v2032_v42 = vrot.slane %v251_v44, %v246_v15  ;;  %v573_v44 = vld [vmem:[%s2401_s1 + $0x30] sm:$0xff] }
  0x62   :  { %495 = vmatmul.mubr.bf16.gmra.mrb[16].mxu0 %v204_v43 }
  0x63   :  { %504 = vmatprep.mubr.bf16.mxu0 %v1770_v14  ;;  %v110_v14 = vmul.f32 %v1752_v5, %v1990_v53  ;;  %v1481_v5 = vld [vmem:[%s2399_s4 + $0x28] sm:$0xff]  }
  0x64   :  { %1289 = vmatpush3.bf16.msra.mxu0 %v1481_v5  ;;  %1419 = vmatpush3.bf16.msra.mxu1 %v1481_v5 }
  0x65   :  { %v160_v63 = vadd.f32 %v1791_v26, %v110_v14  ;;  %v1482_v26 = vld [vmem:[%s2399_s4 + $0x70] sm:$0xff]   ;;  %v570_v14 = vld [vmem:[%s2401_s1 + $0x18] sm:$0xff] }
  0x66   :  { %1290 = vmatprep.subr.bf16.mxu0 %v1482_v26  ;;  %1412 = vmatprep.subr.bf16.mxu1 %v1482_v26 }
  0x67   :  { %v192_v30 = vmax.f32 %v160_v63, 0.0 }
  0x69   :  { %v210_v34 = vpack.c.bf16 %v194_v33, %v192_v30 }
  0x6a   :  { %505 = vmatmul.mubr.bf16.gmra.mrb[20].mxu0 %v206_v6 }
  0x6b   :  { %514 = vmatprep.mubr.bf16.mxu0 %v1814_v38  ;;  %v1483_v38 = vld [vmem:[%s2399_s4 + $0x30] sm:$0xff]  }
  0x6c   :  { %1291 = vmatpush3.bf16.msra.mxu0 %v1483_v38  ;;  %1420 = vmatpush3.bf16.msra.mxu1 %v1483_v38 }
  0x72   :  { %515 = vmatmul.mubr.bf16.gmra.mrb[24].mxu0 %v208_v20 }
  0x73   :  { %524 = vmatprep.mubr.bf16.mxu0 %v1847_v56  ;;  %v1484_v56 = vld [vmem:[%s2399_s4 + $0x78] sm:$0xff]  }
  0x74   :  { %1292 = vmatprep.subr.bf16.mxu0 %v1484_v56  ;;  %1413 = vmatprep.subr.bf16.mxu1 %v1484_v56 }
  0x75   :  { %1293 = vmatpush3.bf16.msra.mxu0 %v1485_v35  ;;  %1421 = vmatpush3.bf16.msra.mxu1 %v1485_v35 }
  0x76   :  { %1342 = vmatprep.subr.bf16.mxu1 %v1486_v36 }
  0x7a   :  { %525 = vmatmul.mubr.bf16.gmra.mrb[28].mxu0 %v210_v34 }
 0x115   :  { %v456_v43 = vpop.f32.mrb[0].mxu0 }
 0x116   :  { %v457_v46 = vadd.f32 %v456_v43, %v2030_v37  ;;  %v458_v48 = vpop.f32.mrb[1].mxu0 }
 0x117   :  { %v459_v0 = vadd.f32 %v458_v48, %v2032_v42  ;;  %v460_v1 = vpop.f32.mrb[2].mxu0 }
 0x118   :  { %v535_v51 = vmax.f32 %v457_v46, 0.0  ;;  %v461_v4 = vadd.f32 %v460_v1, %v2030_v37  ;;  %v462_v6 = vpop.f32.mrb[3].mxu0  ;;  %v572_v46 = vld [vmem:[%s2401_s1 + $0x28] sm:$0xff] }
 0x119   :  { %v536_v19 = vmax.f32 %v459_v0, 0.0  ;;  %v463_v10 = vadd.f32 %v462_v6, %v2032_v42  ;;  %v574_v0 = vld [vmem:[%s2401_s1 + $0x38] sm:$0xff] }
 0x11a   :  { %v537_v16 = vmax.f32 %v461_v4, 0.0  ;;  %v599_v20 = vmul.f32 %v567_v11, %v535_v51 }
 0x11b   :  { %v538_v17 = vmax.f32 %v463_v10, 0.0  ;;  %v600_v3 = vmul.f32 %v568_v13, %v536_v19 }
 0x11c   :  { %v601_v63 = vmul.f32 %v569_v9, %v537_v16 }
 0x11d   :  { %v602_v30 = vmul.f32 %v570_v14, %v538_v17  ;;  %v466_v33 = vpop.f32.mrb[4].mxu0 }
 0x11e   :  { %v631_v34 = vpack.c.bf16 %v601_v63, %v599_v20  ;;  %v467_v18 = vadd.f32 %v466_v33, %v2030_v37  ;;  %v468_v5 = vpop.f32.mrb[5].mxu0 }
 0x11f   :  { %v469_v26 = vadd.f32 %v468_v5, %v2032_v42  ;;  %v470_v38 = vpop.f32.mrb[6].mxu0  ;;  %v632_v56 = vpack.c.bf16 %v602_v30, %v600_v3  ;;  %v575_v30 = vld [vmem:[%s2401_s1 + $0x40] sm:$0xff] }
 0x120   :  { %v539_v35 = vmax.f32 %v467_v18, 0.0  ;;  %v471_v36 = vadd.f32 %v470_v38, %v2030_v37  ;;  %v472_v15 = vpop.f32.mrb[7].mxu0  ;;  %v578_v38 = vld [vmem:[%s2401_s1 + $0x58] sm:$0xff] }
 0x121   :  { %v540_v41 = vmax.f32 %v469_v26, 0.0  ;;  %v473_v43 = vadd.f32 %v472_v15, %v2032_v42  ;;  %807 = vmatprep.mubr.bf16.mxu0 %v632_v56  ;;  %v576_v26 = vld [vmem:[%s2401_s1 + $0x48] sm:$0xff] }
 0x122   :  { %v541_v48 = vmax.f32 %v471_v36, 0.0  ;;  %808 = vmatmul.mubr.bf16.vlgmr.msra.gmra.mrb[32].mxu0 %v631_v34  ;;  %v603_v51 = vmul.f32 %v571_v21, %v539_v35  ;;  %v577_v34 = vld [vmem:[%s2401_s1 + $0x50] sm:$0xff] }
 0x123   :  { %v542_v1 = vmax.f32 %v473_v43, 0.0  ;;  %v604_v6 = vmul.f32 %v572_v46, %v540_v41 }
 0x124   :  { %v605_v4 = vmul.f32 %v573_v44, %v541_v48 }
 0x125   :  { %v606_v11 = vmul.f32 %v574_v0, %v542_v1  ;;  %v476_v19 = vpop.f32.mrb[8].mxu0 }
 0x126   :  { %v477_v9 = vadd.f32 %v476_v19, %v2030_v37  ;;  %v478_v10 = vpop.f32.mrb[9].mxu0  ;;  %v633_v13 = vpack.c.bf16 %v605_v4, %v603_v51  ;;  %v1487_v51 = vld [vmem:[%s2400_s5] sm:$0xff]   ;;  %v1488_v19 = vld [vmem:[%s2400_s5 + $0x48] sm:$0xff]  }
 0x127   :  { %v479_v16 = vadd.f32 %v478_v10, %v2032_v42  ;;  %v480_v14 = vpop.f32.mrb[10].mxu0  ;;  %v634_v17 = vpack.c.bf16 %v606_v11, %v604_v6 }
 0x128   :  { %v543_v20 = vmax.f32 %v477_v9, 0.0  ;;  %v481_v63 = vadd.f32 %v480_v14, %v2030_v37  ;;  %v482_v3 = vpop.f32.mrb[11].mxu0  ;;  %v579_v9 = vld [vmem:[%s2401_s1 + $0x60] sm:$0xff]  ;;  %v580_v14 = vld [vmem:[%s2401_s1 + $0x68] sm:$0xff] }
 0x129   :  { %v544_v33 = vmax.f32 %v479_v16, 0.0  ;;  %v483_v18 = vadd.f32 %v482_v3, %v2032_v42  ;;  %815 = vmatprep.mubr.bf16.mxu0 %v634_v17  ;;  %v1489_v3 = vld [vmem:[%s2400_s5 + $0x8] sm:$0xff]  }
 0x12a   :  { %v545_v5 = vmax.f32 %v481_v63, 0.0  ;;  %816 = vmatmul.mubr.bf16.gmra.mrb[36].mxu0 %v633_v13  ;;  %v607_v35 = vmul.f32 %v575_v30, %v543_v20  ;;  %v581_v13 = vld [vmem:[%s2401_s1 + $0x70] sm:$0xff]  ;;  %v582_v20 = vld [vmem:[%s2401_s1 + $0x78] sm:$0xff] }
 0x12b   :  { %v546_v56 = vmax.f32 %v483_v18, 0.0  ;;  %v608_v21 = vmul.f32 %v576_v26, %v544_v33 }
 0x12c   :  { %v609_v36 = vmul.f32 %v577_v34, %v545_v5  ;;  %v1490_v34 = vld [vmem:[%s2400_s5 + $0x50] sm:$0xff]  }
 0x12d   :  { %v486_v15 = vpop.f32.mrb[12].mxu0  ;;  %v610_v41 = vmul.f32 %v578_v38, %v546_v56 }
 0x12e   :  { %v487_v44 = vadd.f32 %v486_v15, %v2030_v37  ;;  %v488_v43 = vpop.f32.mrb[13].mxu0  ;;  %v635_v46 = vpack.c.bf16 %v609_v36, %v607_v35 }
 0x12f   :  { %v489_v48 = vadd.f32 %v488_v43, %v2032_v42  ;;  %v490_v0 = vpop.f32.mrb[14].mxu0  ;;  %v636_v1 = vpack.c.bf16 %v610_v41, %v608_v21  ;;  %v1491_v41 = vld [vmem:[%s2400_s5 + $0x10] sm:$0xff]  }
 0x130   :  { %v547_v4 = vmax.f32 %v487_v44, 0.0  ;;  %v491_v6 = vadd.f32 %v490_v0, %v2030_v37  ;;  %v492_v11 = vpop.f32.mrb[15].mxu0  ;;  %v583_v0 = vld [vmem:[%s2401_s1 + $0x80] sm:$0xff] }
 0x131   :  { %v548_v10 = vmax.f32 %v489_v48, 0.0  ;;  %v493_v16 = vadd.f32 %v492_v11, %v2032_v42  ;;  %823 = vmatprep.mubr.bf16.mxu1 %v636_v1  ;;  %v1492_v48 = vld [vmem:[%s2400_s5 + $0x58] sm:$0xff]  }
 0x132   :  { %v549_v17 = vmax.f32 %v491_v6, 0.0  ;;  %824 = vmatmul.mubr.bf16.vlgmr.msra.gmra.mrb[0].mxu1 %v635_v46  ;;  %v611_v30 = vmul.f32 %v579_v9, %v547_v4  ;;  %v584_v6 = vld [vmem:[%s2401_s1 + $0x88] sm:$0xff] }
 0x133   :  { %v550_v63 = vmax.f32 %v493_v16, 0.0  ;;  %1343 = vmatpush3.bf16.msra.mxu1 %v1487_v51  ;;  %v612_v18 = vmul.f32 %v580_v14, %v548_v10  ;;  %v585_v51 = vld [vmem:[%s2401_s1 + $0x90] sm:$0xff]  ;;  %v1493_v10 = vld [vmem:[%s2400_s5 + $0x18] sm:$0xff]   ;;  %v1494_v14 = vld [vmem:[%s2400_s5 + $0x60] sm:$0xff]  }
 0x134   :  { %v613_v33 = vmul.f32 %v581_v13, %v549_v17  ;;  %1344 = vmatprep.subr.bf16.mxu1 %v1488_v19  ;;  %v586_v19 = vld [vmem:[%s2401_s1 + $0x98] sm:$0xff] }
 0x135   :  { %v614_v5 = vmul.f32 %v582_v20, %v550_v63  ;;  %v496_v26 = vpop.f32.mrb[16].mxu0 }
 0x136   :  { %v497_v38 = vadd.f32 %v496_v26, %v2030_v37  ;;  %v498_v56 = vpop.f32.mrb[17].mxu0  ;;  %v637_v35 = vpack.c.bf16 %v613_v33, %v611_v30  ;;  %v1495_v26 = vld [vmem:[%s2400_s5 + $0x20] sm:$0xff]  }
 0x137   :  { %v499_v36 = vadd.f32 %v498_v56, %v2032_v42  ;;  %v500_v15 = vpop.f32.mrb[18].mxu0  ;;  %1345 = vmatpush3.bf16.msra.mxu1 %v1489_v3  ;;  %v638_v21 = vpack.c.bf16 %v614_v5, %v612_v18 }
 0x138   :  { %v551_v44 = vmax.f32 %v497_v38, 0.0  ;;  %v501_v43 = vadd.f32 %v500_v15, %v2030_v37  ;;  %v502_v46 = vpop.f32.mrb[19].mxu0  ;;  %1346 = vmatprep.subr.bf16.mxu1 %v1490_v34  ;;  %v587_v15 = vld [vmem:[%s2401_s1 + $0xa0] sm:$0xff] }
 0x139   :  { %v552_v1 = vmax.f32 %v499_v36, 0.0  ;;  %v503_v4 = vadd.f32 %v502_v46, %v2032_v42  ;;  %831 = vmatprep.mubr.bf16.mxu1 %v638_v21  ;;  %v1496_v36 = vld [vmem:[%s2400_s5 + $0x68] sm:$0xff]  }
 0x13a   :  { %v553_v11 = vmax.f32 %v501_v43, 0.0  ;;  %832 = vmatmul.mubr.bf16.gmra.mrb[4].mxu1 %v637_v35  ;;  %v615_v13 = vmul.f32 %v583_v0, %v551_v44  ;;  %v588_v43 = vld [vmem:[%s2401_s1 + $0xa8] sm:$0xff] }
 0x13b   :  { %v554_v9 = vmax.f32 %v503_v4, 0.0  ;;  %1347 = vmatpush3.bf16.msra.mxu1 %v1491_v41  ;;  %v616_v17 = vmul.f32 %v584_v6, %v552_v1  ;;  %v589_v41 = vld [vmem:[%s2401_s1 + $0xb0] sm:$0xff]  ;;  %v1497_v1 = vld [vmem:[%s2400_s5 + $0x28] sm:$0xff]  }
 0x13c   :  { %v617_v16 = vmul.f32 %v585_v51, %v553_v11  ;;  %1348 = vmatprep.subr.bf16.mxu1 %v1492_v48  ;;  %v590_v48 = vld [vmem:[%s2401_s1 + $0xb8] sm:$0xff]  ;;  %v1498_v6 = vld [vmem:[%s2400_s5 + $0x70] sm:$0xff]  }
 0x13d   :  { %v618_v20 = vmul.f32 %v586_v19, %v554_v9  ;;  %v506_v63 = vpop.f32.mrb[20].mxu0 }
 0x13e   :  { %v507_v3 = vadd.f32 %v506_v63, %v2030_v37  ;;  %v508_v30 = vpop.f32.mrb[21].mxu0  ;;  %v639_v33 = vpack.c.bf16 %v617_v16, %v615_v13  ;;  %v1499_v63 = vld [vmem:[%s2400_s5 + $0x30] sm:$0xff]  }
 0x13f   :  { %v509_v34 = vadd.f32 %v508_v30, %v2032_v42  ;;  %v510_v18 = vpop.f32.mrb[22].mxu0  ;;  %v640_v5 = vpack.c.bf16 %v618_v20, %v616_v17  ;;  %1349 = vmatpush3.bf16.msra.mxu1 %v1493_v10 }
 0x140   :  { %v555_v38 = vmax.f32 %v507_v3, 0.0  ;;  %v511_v56 = vadd.f32 %v510_v18, %v2030_v37  ;;  %v512_v35 = vpop.f32.mrb[23].mxu0  ;;  %1350 = vmatprep.subr.bf16.mxu1 %v1494_v14  ;;  %v591_v18 = vld [vmem:[%s2401_s1 + $0xc0] sm:$0xff] }
 0x141   :  { %v556_v21 = vmax.f32 %v509_v34, 0.0  ;;  %v513_v44 = vadd.f32 %v512_v35, %v2032_v42  ;;  %839 = vmatprep.mubr.bf16.mxu1 %v640_v5  ;;  %v1500_v34 = vld [vmem:[%s2400_s5 + $0x78] sm:$0xff]  }
 0x142   :  { %v557_v46 = vmax.f32 %v511_v56, 0.0  ;;  %840 = vmatmul.mubr.bf16.gmra.mrb[8].mxu1 %v639_v33  ;;  %v619_v51 = vmul.f32 %v587_v15, %v555_v38  ;;  %v592_v56 = vld [vmem:[%s2401_s1 + $0xc8] sm:$0xff] }
 0x143   :  { %v558_v0 = vmax.f32 %v513_v44, 0.0  ;;  %1351 = vmatpush3.bf16.msra.mxu1 %v1495_v26  ;;  %v620_v11 = vmul.f32 %v588_v43, %v556_v21  ;;  %v593_v26 = vld [vmem:[%s2401_s1 + $0xd0] sm:$0xff]  ;;  %v1501_v21 = vld [vmem:[%s2400_s5 + $0x38] sm:$0xff]  }
 0x144   :  { %v621_v4 = vmul.f32 %v589_v41, %v557_v46  ;;  %1352 = vmatprep.subr.bf16.mxu1 %v1496_v36  ;;  %v594_v36 = vld [vmem:[%s2401_s1 + $0xd8] sm:$0xff] }
 0x145   :  { %v622_v19 = vmul.f32 %v590_v48, %v558_v0  ;;  %v516_v9 = vpop.f32.mrb[24].mxu0 }
 0x146   :  { %v517_v10 = vadd.f32 %v516_v9, %v2030_v37  ;;  %v518_v13 = vpop.f32.mrb[25].mxu0  ;;  %v641_v16 = vpack.c.bf16 %v621_v4, %v619_v51 }
 0x147   :  { %v519_v14 = vadd.f32 %v518_v13, %v2032_v42  ;;  %v520_v17 = vpop.f32.mrb[26].mxu0  ;;  %v642_v20 = vpack.c.bf16 %v622_v19, %v620_v11  ;;  %1353 = vmatpush3.bf16.msra.mxu1 %v1497_v1  ;;  %v595_v13 = vld [vmem:[%s2401_s1 + $0xe0] sm:$0xff] }
 0x148   :  { %v559_v3 = vmax.f32 %v517_v10, 0.0  ;;  %v521_v30 = vadd.f32 %v520_v17, %v2030_v37  ;;  %v522_v33 = vpop.f32.mrb[27].mxu0  ;;  %1354 = vmatprep.subr.bf16.mxu1 %v1498_v6 }
 0x149   :  { %v560_v5 = vmax.f32 %v519_v14, 0.0  ;;  %v523_v38 = vadd.f32 %v522_v33, %v2032_v42  ;;  %847 = vmatprep.mubr.bf16.mxu1 %v642_v20  ;;  %v597_v14 = vld [vmem:[%s2401_s1 + $0xf0] sm:$0xff]  ;;  %v596_v20 = vld [vmem:[%s2401_s1 + $0xe8] sm:$0xff] }
 0x14a   :  { %v561_v35 = vmax.f32 %v521_v30, 0.0  ;;  %848 = vmatmul.mubr.bf16.gmra.mrb[12].mxu1 %v641_v16  ;;  %v623_v41 = vmul.f32 %v591_v18, %v559_v3 }
 0x14b   :  { %v562_v15 = vmax.f32 %v523_v38, 0.0  ;;  %1355 = vmatpush3.bf16.msra.mxu1 %v1499_v63  ;;  %v624_v43 = vmul.f32 %v592_v56, %v560_v5  ;;  %v1503_v38 = vld [vmem:[%s2398_s0 + $0x18] sm:$0xff] }
 0x14c   :  { %v625_v44 = vmul.f32 %v593_v26, %v561_v35  ;;  %1356 = vmatprep.subr.bf16.mxu1 %v1500_v34  ;;  %v875_v35 = vpack.c.bf16 %v1764_v8, %v1759_v7  ;;  %v1504_v7 = vld [vmem:[%s2398_s0 + $0xa8] sm:$0xff]  ;;  %v1505_v8 = vld [vmem:[%s2398_s0 + $0xb8] sm:$0xff] }
 0x14d   :  { %v626_v46 = vmul.f32 %v594_v36, %v562_v15  ;;  %v526_v48 = vpop.f32.mrb[28].mxu0  ;;  %v874_v36 = vpack.c.bf16 %v1832_v50, %v1827_v49  ;;  %v877_v15 = vpack.c.bf16 %v1845_v55, %v1840_v54  ;;  %v883_v49 = vpack.c.bf16 %v1505_v8, %v1504_v7  ;;  %v2285_v8 = vld [vmem:[%s2403_s7] ss:$0 sm:$0xff] }
 0x14e   :  { %v527_v0 = vadd.f32 %v526_v48, %v2030_v37  ;;  %v528_v1 = vpop.f32.mrb[29].mxu0  ;;  %v643_v51 = vpack.c.bf16 %v625_v44, %v623_v41  ;;  %v879_v41 = vpack.c.bf16 %v1882_v32, %v1877_v31  ;;  %v882_v50 = vpack.c.bf16 %v1962_v40, %v1957_v39 }
 0x14f   :  { %v529_v4 = vadd.f32 %v528_v1, %v2032_v42  ;;  %v530_v6 = vpop.f32.mrb[30].mxu0  ;;  %v644_v11 = vpack.c.bf16 %v626_v46, %v624_v43  ;;  %1357 = vmatpush3.bf16.msra.mxu1 %v1501_v21  ;;  %v876_v21 = vpack.c.bf16 %v1872_v27, %v1867_v25  ;;  %v885_v54 = vpack.c.bf16 %v1718_v59, %v1712_v58 }
 0x150   :  { %v563_v19 = vmax.f32 %v527_v0, 0.0  ;;  %v531_v9 = vadd.f32 %v530_v6, %v2030_v37  ;;  %v532_v10 = vpop.f32.mrb[31].mxu0  ;;  %v598_v37 = vld [vmem:[%s2401_s1 + $0xf8] sm:$0xff]  ;;  %v884_v55 = vpack.c.bf16 %v1978_v61, %v1973_v52  ;;  %v887_v25 = vpack.c.bf16 %v1741_v2, %v1726_v62 }
 0x151   :  { %v564_v16 = vmax.f32 %v529_v4, 0.0  ;;  %v533_v17 = vadd.f32 %v532_v10, %v2032_v42  ;;  %855 = vmatprep.mubr.bf16.mxu1 %v644_v11  ;;  %v1502_v42 = vld [vmem:[%s2398_s0 + $0x8] sm:$0xff]  ;;  %v886_v27 = vpack.c.bf16 %v1995_v12, %v1990_v53 }
 0x152   :  { %v565_v63 = vmax.f32 %v531_v9, 0.0  ;;  %856 = vmatmul.mubr.bf16.gmra.mrb[16].mxu1 %v643_v51  ;;  %v627_v30 = vmul.f32 %v595_v13, %v563_v19  ;;  %v873_v56 = vpack.c.bf16 %v1503_v38, %v1502_v42 }
 0x153   :  { %v566_v3 = vmax.f32 %v533_v17, 0.0  ;;  %v628_v34 = vmul.f32 %v596_v20, %v564_v16 }
 0x154   :  { %v629_v33 = vmul.f32 %v597_v14, %v565_v63 }
 0x155   :  { %v630_v18 = vmul.f32 %v598_v37, %v566_v3 }
 0x156   :  { %v645_v5 = vpack.c.bf16 %v629_v33, %v627_v30 }
 0x157   :  { %v646_v26 = vpack.c.bf16 %v630_v18, %v628_v34 }
 0x159   :  { %863 = vmatprep.mubr.bf16.mxu1 %v646_v26 }
 0x15a   :  { %864 = vmatmul.mubr.bf16.gmra.mrb[20].mxu1 %v645_v5 }
 0x15b   :  { %1048 = vmatprep.mubr.bf16.mxu1 %v873_v56 }
 0x162   :  { %1049 = vmatmul.mubr.bf16.vlgmr.msra.gmra.mrb[24].mxu1 %v872_v28  ;;  %v880_v28 = vpack.c.bf16 %v1943_v29, %v1938_v22 }
 0x163   :  { %1056 = vmatprep.mubr.bf16.mxu1 %v875_v35 }
 0x16a   :  { %1057 = vmatmul.mubr.bf16.gmra.mrb[28].mxu1 %v874_v36 }
 0x16b   :  { %1064 = vmatprep.mubr.bf16.mxu1 %v877_v15  ;;  %v2279_v15 = vld [vmem:[%s2402_s6] ss:$0 sm:$0xff] }
 0x172   :  { %1065 = vmatmul.mubr.bf16.gmra.mrb[32].mxu1 %v876_v21 }
 0x173   :  { %1072 = vmatprep.mubr.bf16.mxu1 %v879_v41 }
 0x17a   :  { %1073 = vmatmul.mubr.bf16.gmra.mrb[36].mxu1 %v878_v23 }
 0x17b   :  { %1080 = vmatprep.mubr.bf16.mxu1 %v881_v24 }
 0x182   :  { %1081 = vmatmul.mubr.bf16.gmra.mrb[40].mxu1 %v880_v28 }
 0x183   :  { %1088 = vmatprep.mubr.bf16.mxu1 %v883_v49 }
 0x18a   :  { %1089 = vmatmul.mubr.bf16.gmra.mrb[44].mxu1 %v882_v50 }
 0x18b   :  { %1096 = vmatprep.mubr.bf16.mxu1 %v885_v54 }
 0x192   :  { %1097 = vmatmul.mubr.bf16.gmra.mrb[48].mxu1 %v884_v55 }
 0x193   :  { %1104 = vmatprep.mubr.bf16.mxu1 %v887_v25 }
 0x19a   :  { %1105 = vmatmul.mubr.bf16.gmra.mrb[52].mxu1 %v886_v27 }
 0x1f5   :  { %v1294_v31 = vpop.f32.mrb[32].mxu0 }
 0x1f6   :  { %v1295_v32 = vpop.f32.mrb[33].mxu0 }
 0x1f7   :  { %v1296_v57 = vadd.f32 %v1295_v32, %v1294_v31  ;;  %v1297_v45 = vpop.f32.mrb[34].mxu0 }
 0x1f8   :  { %v1298_v47 = vpop.f32.mrb[35].mxu0 }
 0x1f9   :  { %v1299_v58 = vadd.f32 %v1298_v47, %v1297_v45  ;;  %v1113_v24 = vmul.f32 0.3, %v1296_v57 }
 0x1fb   :  { %v1114_v49 = vmul.f32 0.3, %v1299_v58 }
 0x1fd   :  { %v1300_v59 = vpop.f32.mrb[36].mxu0 }
 0x1fe   :  { %v1301_v60 = vpop.f32.mrb[37].mxu0 }
 0x1ff   :  { %v2248_v22 = vadd.f32 %v1301_v60, %v1300_v59  ;;  %v1303_v29 = vpop.f32.mrb[38].mxu0 }
 0x200   :  { %v1304_v39 = vpop.f32.mrb[39].mxu0 }
 0x201   :  { %v2250_v40 = vadd.f32 %v1304_v39, %v1303_v29  ;;  %v1115_v58 = vmul.f32 0.3, %v2248_v22 }
 0x203   :  { %v1116_v29 = vmul.f32 0.3, %v2250_v40 }
 0x205   :  { %v1306_v62 = vpop.f32.mrb[0].mxu1 }
 0x206   :  { %v1307_v2 = vpop.f32.mrb[1].mxu1 }
 0x207   :  { %v2252_v52 = vadd.f32 %v1307_v2, %v1306_v62  ;;  %v1309_v61 = vpop.f32.mrb[2].mxu1 }
 0x208   :  { %v1310_v53 = vpop.f32.mrb[3].mxu1 }
 0x209   :  { %v2254_v12 = vadd.f32 %v1310_v53, %v1309_v61  ;;  %v1117_v40 = vmul.f32 0.3, %v2252_v52 }
 0x20d   :  { %v1312_v44 = vpop.f32.mrb[4].mxu1 }
 0x20e   :  { %v1313_v43 = vpop.f32.mrb[5].mxu1 }
 0x20f   :  { %v2256_v46 = vadd.f32 %v1313_v43, %v1312_v44  ;;  %v1315_v48 = vpop.f32.mrb[6].mxu1 }
 0x210   :  { %v1316_v0 = vpop.f32.mrb[7].mxu1 }
 0x211   :  { %v2258_v1 = vadd.f32 %v1316_v0, %v1315_v48 }
 0x215   :  { %v1318_v51 = vpop.f32.mrb[8].mxu1 }
 0x216   :  { %v1319_v4 = vpop.f32.mrb[9].mxu1 }
 0x217   :  { %v2260_v6 = vadd.f32 %v1319_v4, %v1318_v51  ;;  %v1321_v11 = vpop.f32.mrb[10].mxu1 }
 0x218   :  { %v1322_v19 = vpop.f32.mrb[11].mxu1 }
 0x219   :  { %v2262_v9 = vadd.f32 %v1322_v19, %v1321_v11  ;;  %v1118_v11 = vmul.f32 0.3, %v2254_v12  ;;  %v1119_v12 = vmul.f32 0.3, %v2256_v46 }
 0x21d   :  { %v1324_v10 = vpop.f32.mrb[12].mxu1 }
 0x21e   :  { %v1325_v13 = vpop.f32.mrb[13].mxu1 }
 0x21f   :  { %v2264_v16 = vadd.f32 %v1325_v13, %v1324_v10  ;;  %v1327_v14 = vpop.f32.mrb[14].mxu1 }
 0x220   :  { %v1328_v17 = vpop.f32.mrb[15].mxu1 }
 0x221   :  { %v2266_v20 = vadd.f32 %v1328_v17, %v1327_v14 }
 0x225   :  { %v1330_v63 = vpop.f32.mrb[16].mxu1 }
 0x226   :  { %v1331_v37 = vpop.f32.mrb[17].mxu1 }
 0x227   :  { %v2268_v3 = vadd.f32 %v1331_v37, %v1330_v63  ;;  %v1333_v30 = vpop.f32.mrb[18].mxu1 }
 0x228   :  { %v1334_v33 = vpop.f32.mrb[19].mxu1 }
 0x229   :  { %v2270_v34 = vadd.f32 %v1334_v33, %v1333_v30 }
 0x22d   :  { %v1336_v18 = vpop.f32.mrb[20].mxu1 }
 0x22e   :  { %v1337_v5 = vpop.f32.mrb[21].mxu1 }
 0x22f   :  { %v2272_v26 = vadd.f32 %v1337_v5, %v1336_v18  ;;  %v1339_v42 = vpop.f32.mrb[22].mxu1 }
 0x230   :  { %v1340_v38 = vpop.f32.mrb[23].mxu1 }
 0x231   :  { %v2274_v56 = vadd.f32 %v1340_v38, %v1339_v42  ;;  %v1120_v42 = vmul.f32 0.3, %v2258_v1  ;;  %v1121_v1 = vmul.f32 0.3, %v2260_v6 }
 0x235   :  { %v1358_v35 = vpop.f32.mrb[24].mxu1 }
 0x236   :  { %v1359_v36 = vpop.f32.mrb[25].mxu1 }
 0x237   :  { %v1360_v21 = vadd.f32 %v1359_v36, %v1358_v35  ;;  %v1361_v41 = vpop.f32.mrb[26].mxu1 }
 0x238   :  { %v1362_v23 = vpop.f32.mrb[27].mxu1 }
 0x239   :  { %v1136_v28 = vmul.f32 %v1360_v21, %v2279_v15  ;;  %v1363_v7 = vadd.f32 %v1362_v23, %v1361_v41 }
 0x23b   :  { %v1152_v50 = vadd.f32 %v1136_v28, %v1113_v24  ;;  %v1137_v54 = vmul.f32 %v1363_v7, %v2279_v15 }
 0x23d   :  { %v1175_v55 = vadd.f32 %v2285_v8, %v1152_v50  ;;  %v1153_v25 = vadd.f32 %v1137_v54, %v1114_v49  ;;  %v1364_v27 = vpop.f32.mrb[28].mxu1  ;;  %v1122_v54 = vmul.f32 0.3, %v2262_v9  ;;  %v1123_v9 = vmul.f32 0.3, %v2264_v16 }
 0x23e   :  { %v1365_v31 = vpop.f32.mrb[29].mxu1 }
 0x23f   :  { %1192 = vst.msk [vmem:[%s2404_s8] sm:$0xff] %vm1191_vm0, %v1175_v55  ;;  %v1176_v32 = vadd.f32 %v2285_v8, %v1153_v25  ;;  %v1366_v57 = vadd.f32 %v1365_v31, %v1364_v27  ;;  %v1367_v45 = vpop.f32.mrb[30].mxu1 }
 0x240   :  { %v1368_v47 = vpop.f32.mrb[31].mxu1 }
 0x241   :  { %1193 = vst.msk [vmem:[%s2404_s8 + $0x8] sm:$0xff] %vm1191_vm0, %v1176_v32  ;;  %v1138_v59 = vmul.f32 %v1366_v57, %v2279_v15  ;;  %v1369_v60 = vadd.f32 %v1368_v47, %v1367_v45 }
 0x243   :  { %v1154_v39 = vadd.f32 %v1138_v59, %v1115_v58  ;;  %v1139_v62 = vmul.f32 %v1369_v60, %v2279_v15 }
 0x245   :  { %v1177_v2 = vadd.f32 %v2285_v8, %v1154_v39  ;;  %v1155_v61 = vadd.f32 %v1139_v62, %v1116_v29  ;;  %v1370_v53 = vpop.f32.mrb[32].mxu1  ;;  %v1124_v29 = vmul.f32 0.3, %v2266_v20  ;;  %v1125_v20 = vmul.f32 0.3, %v2268_v3 }
 0x246   :  { %v1371_v44 = vpop.f32.mrb[33].mxu1 }
 0x247   :  { %1194 = vst.msk [vmem:[%s2404_s8 + $0x10] sm:$0xff] %vm1191_vm0, %v1177_v2  ;;  %v1178_v22 = vadd.f32 %v2285_v8, %v1155_v61  ;;  %v1372_v43 = vadd.f32 %v1371_v44, %v1370_v53  ;;  %v1373_v48 = vpop.f32.mrb[34].mxu1 }
 0x248   :  { %v1374_v0 = vpop.f32.mrb[35].mxu1 }
 0x249   :  { %1195 = vst.msk [vmem:[%s2404_s8 + $0x18] sm:$0xff] %vm1191_vm0, %v1178_v22  ;;  %v1140_v51 = vmul.f32 %v1372_v43, %v2279_v15  ;;  %v1375_v4 = vadd.f32 %v1374_v0, %v1373_v48 }
 0x24b   :  { %v1156_v19 = vadd.f32 %v1140_v51, %v1117_v40  ;;  %v1141_v10 = vmul.f32 %v1375_v4, %v2279_v15  ;;  %v1126_v51 = vmul.f32 0.3, %v2270_v34  ;;  %v1127_v34 = vmul.f32 0.3, %v2272_v26 }
 0x24d   :  { %v1179_v13 = vadd.f32 %v2285_v8, %v1156_v19  ;;  %v1157_v14 = vadd.f32 %v1141_v10, %v1118_v11  ;;  %v1376_v17 = vpop.f32.mrb[36].mxu1 }
 0x24e   :  { %v1377_v63 = vpop.f32.mrb[37].mxu1 }
 0x24f   :  { %1196 = vst.msk [vmem:[%s2404_s8 + $0x20] sm:$0xff] %vm1191_vm0, %v1179_v13  ;;  %v1180_v52 = vadd.f32 %v2285_v8, %v1157_v14  ;;  %v1378_v37 = vadd.f32 %v1377_v63, %v1376_v17  ;;  %v1379_v30 = vpop.f32.mrb[38].mxu1 }
 0x250   :  { %v1380_v33 = vpop.f32.mrb[39].mxu1 }
 0x251   :  { %1197 = vst.msk [vmem:[%s2404_s8 + $0x28] sm:$0xff] %vm1191_vm0, %v1180_v52  ;;  %v1142_v18 = vmul.f32 %v1378_v37, %v2279_v15  ;;  %v1381_v5 = vadd.f32 %v1380_v33, %v1379_v30  ;;  %v1128_v33 = vmul.f32 0.3, %v2274_v56 }
 0x253   :  { %v1158_v38 = vadd.f32 %v1142_v18, %v1119_v12  ;;  %v1143_v35 = vmul.f32 %v1381_v5, %v2279_v15 }
 0x255   :  { %v1181_v36 = vadd.f32 %v2285_v8, %v1158_v38  ;;  %v1159_v21 = vadd.f32 %v1143_v35, %v1120_v42  ;;  %v1382_v41 = vpop.f32.mrb[40].mxu1 }
 0x256   :  { %v1383_v23 = vpop.f32.mrb[41].mxu1 }
 0x257   :  { %1198 = vst.msk [vmem:[%s2404_s8 + $0x30] sm:$0xff] %vm1191_vm0, %v1181_v36  ;;  %v1182_v46 = vadd.f32 %v2285_v8, %v1159_v21  ;;  %v1384_v24 = vadd.f32 %v1383_v23, %v1382_v41  ;;  %v1385_v28 = vpop.f32.mrb[42].mxu1 }
 0x258   :  { %v1386_v7 = vpop.f32.mrb[43].mxu1 }
 0x259   :  { %1199 = vst.msk [vmem:[%s2404_s8 + $0x38] sm:$0xff] %vm1191_vm0, %v1182_v46  ;;  %v1144_v49 = vmul.f32 %v1384_v24, %v2279_v15  ;;  %v1387_v50 = vadd.f32 %v1386_v7, %v1385_v28 }
 0x25b   :  { %v1160_v55 = vadd.f32 %v1144_v49, %v1121_v1  ;;  %v1145_v25 = vmul.f32 %v1387_v50, %v2279_v15 }
 0x25d   :  { %v1183_v27 = vadd.f32 %v2285_v8, %v1160_v55  ;;  %v1161_v31 = vadd.f32 %v1145_v25, %v1122_v54  ;;  %v1388_v32 = vpop.f32.mrb[44].mxu1 }
 0x25e   :  { %v1389_v57 = vpop.f32.mrb[45].mxu1 }
 0x25f   :  { %1200 = vst.msk [vmem:[%s2404_s8 + $0x40] sm:$0xff] %vm1191_vm0, %v1183_v27  ;;  %v1184_v6 = vadd.f32 %v2285_v8, %v1161_v31  ;;  %v1390_v45 = vadd.f32 %v1389_v57, %v1388_v32  ;;  %v1391_v47 = vpop.f32.mrb[46].mxu1 }
 0x260   :  { %v1392_v58 = vpop.f32.mrb[47].mxu1 }
 0x261   :  { %1201 = vst.msk [vmem:[%s2404_s8 + $0x48] sm:$0xff] %vm1191_vm0, %v1184_v6  ;;  %v1146_v59 = vmul.f32 %v1390_v45, %v2279_v15  ;;  %v1393_v60 = vadd.f32 %v1392_v58, %v1391_v47 }
 0x263   :  { %v1162_v39 = vadd.f32 %v1146_v59, %v1123_v9  ;;  %v1147_v62 = vmul.f32 %v1393_v60, %v2279_v15 }
 0x265   :  { %v1185_v2 = vadd.f32 %v2285_v8, %v1162_v39  ;;  %v1163_v61 = vadd.f32 %v1147_v62, %v1124_v29  ;;  %v1394_v53 = vpop.f32.mrb[48].mxu1 }
 0x266   :  { %v1395_v44 = vpop.f32.mrb[49].mxu1 }
 0x267   :  { %1202 = vst.msk [vmem:[%s2404_s8 + $0x50] sm:$0xff] %vm1191_vm0, %v1185_v2  ;;  %v1186_v16 = vadd.f32 %v2285_v8, %v1163_v61  ;;  %v1396_v22 = vadd.f32 %v1395_v44, %v1394_v53  ;;  %v1397_v43 = vpop.f32.mrb[50].mxu1 }
 0x268   :  { %v1398_v48 = vpop.f32.mrb[51].mxu1 }
 0x269   :  { %1203 = vst.msk [vmem:[%s2404_s8 + $0x58] sm:$0xff] %vm1191_vm0, %v1186_v16  ;;  %v1148_v0 = vmul.f32 %v1396_v22, %v2279_v15  ;;  %v1399_v40 = vadd.f32 %v1398_v48, %v1397_v43 }
 0x26b   :  { %v1164_v4 = vadd.f32 %v1148_v0, %v1125_v20  ;;  %v1149_v11 = vmul.f32 %v1399_v40, %v2279_v15 }
 0x26d   :  { %v1187_v19 = vadd.f32 %v2285_v8, %v1164_v4  ;;  %v1165_v10 = vadd.f32 %v1149_v11, %v1126_v51  ;;  %v1400_v13 = vpop.f32.mrb[52].mxu1 }
 0x26e   :  { %v1401_v14 = vpop.f32.mrb[53].mxu1 }
 0x26f   :  { %1204 = vst.msk [vmem:[%s2404_s8 + $0x60] sm:$0xff] %vm1191_vm0, %v1187_v19  ;;  %v1188_v3 = vadd.f32 %v2285_v8, %v1165_v10  ;;  %v1402_v17 = vadd.f32 %v1401_v14, %v1400_v13  ;;  %v1403_v63 = vpop.f32.mrb[54].mxu1 }
 0x270   :  { %v1404_v52 = vpop.f32.mrb[55].mxu1 }
 0x271   :  { %1205 = vst.msk [vmem:[%s2404_s8 + $0x68] sm:$0xff] %vm1191_vm0, %v1188_v3  ;;  %v1150_v37 = vmul.f32 %v1402_v17, %v2279_v15  ;;  %v1405_v30 = vadd.f32 %v1404_v52, %v1403_v63 }
 0x273   :  { %v1166_v12 = vadd.f32 %v1150_v37, %v1127_v34  ;;  %v1151_v18 = vmul.f32 %v1405_v30, %v2279_v15 }
 0x275   :  { %v1189_v5 = vadd.f32 %v2285_v8, %v1166_v12  ;;  %v1167_v42 = vadd.f32 %v1151_v18, %v1128_v33 }
 0x277   :  { %1206 = vst.msk [vmem:[%s2404_s8 + $0x70] sm:$0xff] %vm1191_vm0, %v1189_v5  ;;  %v1190_v26 = vadd.f32 %v2285_v8, %v1167_v42 }
 0x279   :  { %1207 = vst.msk [vmem:[%s2404_s8 + $0x78] sm:$0xff] %vm1191_vm0, %v1190_v26 }

// kernel: encoder_img_forward.6
= control target key start
LH: loop header
LB: loop body
LE: loop exit
PB: predicated region body
PF: predicated region fallthrough
CT: control target
= control target key end

     0   :  { %v46_v18 = vlaneseq  ;;  %vm1511_vm0 = vcmask 261120   ;;  %s2573_s3 = inlined_call_operand.vmem [shape: bf16[384,384], index: 3, kind: input, shape index: {}]   ;;  %s2574_s0 = inlined_call_operand.vmem [shape: f32[32,384], index: 0, kind: input, shape index: {}]   ;;  %s2575_s2 = inlined_call_operand.vmem [shape: f32[3,384], index: 2, kind: input, shape index: {}]   ;;  %s2576_s4 = inlined_call_operand.vmem [shape: bf16[384,32], index: 4, kind: input, shape index: {}]   ;;  %s2577_s5 = inlined_call_operand.vmem [shape: bf16[384,32], index: 5, kind: input, shape index: {}]   ;;  %s2578_s1 = inlined_call_operand.vmem [shape: f32[32,384], index: 1, kind: input, shape index: {}]   ;;  %s2579_s6 = inlined_call_operand.vmem [shape: f32[1,32], index: 6, kind: input, shape index: {}]   ;;  %s2580_s7 = inlined_call_operand.vmem [shape: f32[1,32], index: 7, kind: input, shape index: {}]   ;;  %s2581_s8 = inlined_call_operand.vmem [shape: f32[32,32], index: 8, kind: output, shape index: {}]  }
   0x1   :  { %v1833_v0 = vld [vmem:[%s2573_s3 + $0x4] ss:$12 sps:$4 sm:$0xff]   ;;  %v1835_v1 = vld [vmem:[%s2573_s3] ss:$12 sps:$4 sm:$0xff]   ;;  %v1836_v2 = vld [vmem:[%s2573_s3 + $0x1c] ss:$12 sps:$4 sm:$0xff]  }
   0x2   :  { %649 = vmatprep.subr.bf16.mxu0 %v1833_v0  ;;  %v1838_v3 = vld [vmem:[%s2573_s3 + $0x18] ss:$12 sps:$4 sm:$0xff]   ;;  %v1839_v4 = vld [vmem:[%s2573_s3 + $0x34] ss:$12 sps:$4 sm:$0xff]   ;;  %v1841_v6 = vld [vmem:[%s2573_s3 + $0x30] ss:$12 sps:$4 sm:$0xff]  }
   0x3   :  { %650 = vmatpush1.bf16.msra.mxu0 %v1835_v1  ;;  %v1844_v5 = vld [vmem:[%s2573_s3 + $0xc8] ss:$12 sps:$4 sm:$0xff]   ;;  %v1842_v8 = vld [vmem:[%s2573_s3 + $0x4c] ss:$12 sps:$4 sm:$0xff]   ;;  %v1847_v12 = vld [vmem:[%s2573_s3 + $0x64] ss:$12 sps:$4 sm:$0xff]  }
   0x4   :  { %651 = vmatprep.subr.bf16.mxu0 %v1836_v2  ;;  %1642 = vmatprep.subr.bf16.mxu1 %v1844_v5  ;;  %v1846_v7 = vld [vmem:[%s2573_s3 + $0x8] ss:$12 sps:$4 sm:$0xff]   ;;  %v1849_v9 = vld [vmem:[%s2573_s3 + $0xe0] ss:$12 sps:$4 sm:$0xff]   ;;  %v1854_v13 = vld [vmem:[%s2573_s3 + $0xf8] ss:$12 sps:$4 sm:$0xff]  }
   0x5   :  { %1643 = vmatpush3.bf16.msra.mxu1 %v1846_v7  ;;  %v1851_v10 = vld [vmem:[%s2573_s3 + $0x20] ss:$12 sps:$4 sm:$0xff]   ;;  %v1845_v11 = vld [vmem:[%s2573_s3 + $0x48] ss:$12 sps:$4 sm:$0xff]   ;;  %v1856_v14 = vld [vmem:[%s2573_s3 + $0x38] ss:$12 sps:$4 sm:$0xff]  }
   0x6   :  { %1644 = vmatprep.subr.bf16.mxu1 %v1849_v9  ;;  %v1850_v15 = vld [vmem:[%s2573_s3 + $0x60] ss:$12 sps:$4 sm:$0xff]   ;;  %v1859_v16 = vld [vmem:[%s2573_s3 + $0x110] ss:$12 sps:$4 sm:$0xff]   ;;  %v1855_v20 = vld [vmem:[%s2573_s3 + $0x78] ss:$12 sps:$4 sm:$0xff]  }
   0x7   :  { %652 = vmatpush1.bf16.msra.mxu0 %v1838_v3  ;;  %v1852_v17 = vld [vmem:[%s2573_s3 + $0x7c] ss:$12 sps:$4 sm:$0xff]   ;;  %v1857_v22 = vld [vmem:[%s2573_s3 + $0x94] ss:$12 sps:$4 sm:$0xff]   ;;  %v2089_v23 = vshrl.u32 %v46_v18, 7 }
   0x8   :  { %653 = vmatprep.subr.bf16.mxu0 %v1839_v4  ;;  %v1861_v19 = vld [vmem:[%s2573_s3 + $0x50] ss:$12 sps:$4 sm:$0xff]   ;;  %v1864_v21 = vld [vmem:[%s2573_s3 + $0x128] ss:$12 sps:$4 sm:$0xff]   ;;  %v1869_v25 = vld [vmem:[%s2573_s3 + $0x140] ss:$12 sps:$4 sm:$0xff]  }
   0x9   :  { %1645 = vmatpush3.bf16.msra.mxu1 %v1851_v10  ;;  %v1866_v24 = vld [vmem:[%s2573_s3 + $0x68] ss:$12 sps:$4 sm:$0xff]   ;;  %v1860_v26 = vld [vmem:[%s2573_s3 + $0x90] ss:$12 sps:$4 sm:$0xff]   ;;  %v1862_v27 = vld [vmem:[%s2573_s3 + $0xac] ss:$12 sps:$4 sm:$0xff]  }
   0xa   :  { %1646 = vmatprep.subr.bf16.mxu1 %v1854_v13  ;;  %v2104_v28 = vsub.s32 0, %v2089_v23  ;;  %v52_v29 = vsub.s32 4, %v2089_v23  ;;  %v1871_v30 = vld [vmem:[%s2573_s3 + $0x80] ss:$12 sps:$4 sm:$0xff]   ;;  %v1874_v31 = vld [vmem:[%s2573_s3 + $0x158] ss:$12 sps:$4 sm:$0xff]  }
   0xb   :  { %654 = vmatpush1.bf16.msra.mxu0 %v1841_v6  ;;  %v1865_v32 = vld [vmem:[%s2573_s3 + $0xa8] ss:$12 sps:$4 sm:$0xff]   ;;  %v2117_v33 = vsub.s32 1, %v2089_v23  ;;  %v91_v34 = vsub.s32 5, %v2089_v23  ;;  %v1867_v35 = vld [vmem:[%s2573_s3 + $0xc4] ss:$12 sps:$4 sm:$0xff]  }
   0xc   :  { %655 = vmatprep.subr.bf16.mxu0 %v1842_v8  ;;  %v1870_v36 = vld [vmem:[%s2573_s3 + $0xc0] ss:$12 sps:$4 sm:$0xff]   ;;  %v1876_v37 = vld [vmem:[%s2573_s3 + $0x98] ss:$12 sps:$4 sm:$0xff]   ;;  %v1879_v38 = vld [vmem:[%s2573_s3 + $0x170] ss:$12 sps:$4 sm:$0xff]  }
   0xd   :  { %1647 = vmatpush3.bf16.msra.mxu1 %v1856_v14  ;;  %v1872_v39 = vld [vmem:[%s2573_s3 + $0xdc] ss:$12 sps:$4 sm:$0xff]   ;;  %v2146_v42 = vld [vmem:[%s2575_s2] sm:$0x77]  ;;  %v1882_v3 = vld [vmem:[%s2573_s3 + $0x10c] ss:$12 sps:$4 sm:$0xff]  }
   0xe   :  { %1648 = vmatprep.subr.bf16.mxu1 %v1859_v16  ;;  %v1881_v40 = vld [vmem:[%s2573_s3 + $0xb0] ss:$12 sps:$4 sm:$0xff]   ;;  %v2141_v41 = vld [vmem:[%s2574_s0 + $0x8] sm:$0xff]  ;;  %v2151_v43 = vld [vmem:[%s2574_s0 + $0x20] sm:$0xff]  ;;  %v53_v44 = vrot.slane %v2146_v42, %v52_v29  ;;  %v92_v45 = vrot.slane %v2146_v42, %v91_v34  ;;  %v49_v47 = vrot.slane %v2146_v42, %v2104_v28  ;;  %v88_v48 = vrot.slane %v2146_v42, %v2117_v33 }
   0xf   :  { %656 = vmatpush1.bf16.msra.mxu0 %v1845_v11  ;;  %v1884_v46 = vld [vmem:[%s2573_s3 + $0x188] ss:$12 sps:$4 sm:$0xff]   ;;  %v2165_v49 = vld [vmem:[%s2574_s0] sm:$0xff]  ;;  %v2170_v50 = vld [vmem:[%s2574_s0 + $0x18] sm:$0xff] }
  0x10   :  { %657 = vmatprep.subr.bf16.mxu0 %v1847_v12  ;;  %v1875_v51 = vld [vmem:[%s2573_s3 + $0xd8] ss:$12 sps:$4 sm:$0xff]   ;;  %v68_v52 = vrot.slane %v53_v44, %v2104_v28  ;;  %v107_v53 = vrot.slane %v92_v45, %v2117_v33  ;;  %v64_v54 = vrot.slane %v49_v47, %v2104_v28  ;;  %v103_v55 = vrot.slane %v88_v48, %v2117_v33  ;;  %v1877_v56 = vld [vmem:[%s2573_s3 + $0xf4] ss:$12 sps:$4 sm:$0xff]   ;;  %v1880_v62 = vld [vmem:[%s2573_s3 + $0xf0] ss:$12 sps:$4 sm:$0xff]  }
  0x11   :  { %1649 = vmatpush3.bf16.msra.mxu1 %v1861_v19  ;;  %v1185_v57 = vpack.c.bf16 %v2170_v50, %v2165_v49  ;;  %v1885_v9 = vld [vmem:[%s2573_s3 + $0x108] ss:$12 sps:$4 sm:$0xff]   ;;  %v1886_v11 = vld [vmem:[%s2573_s3 + $0x124] ss:$12 sps:$4 sm:$0xff]   ;;  %v1888_v12 = vld [vmem:[%s2573_s3 + $0x1a0] ss:$12 sps:$4 sm:$0xff]  }
  0x12   :  { %1650 = vmatprep.subr.bf16.mxu1 %v1864_v21  ;;  %v74_v58 = vmul.f32 %v68_v52, %v2141_v41  ;;  %v77_v59 = vmul.f32 %v68_v52, %v2151_v43  ;;  %v73_v60 = vmul.f32 %v64_v54, %v2165_v49  ;;  %v76_v61 = vmul.f32 %v64_v54, %v2170_v50  ;;  %v1889_v13 = vld [vmem:[%s2573_s3 + $0x120] ss:$12 sps:$4 sm:$0xff]   ;;  %v2212_v14 = vld [vmem:[%s2574_s0 + $0x38] sm:$0xff]  ;;  %v1900_v45 = vld [vmem:[%s2573_s3 + $0x1e8] ss:$12 sps:$4 sm:$0xff]  }
  0x13   :  { %658 = vmatpush1.bf16.msra.mxu0 %v1850_v15  ;;  %v2217_v15 = vld [vmem:[%s2574_s0 + $0x50] sm:$0xff]  ;;  %v1890_v16 = vld [vmem:[%s2573_s3 + $0x13c] ss:$12 sps:$4 sm:$0xff]   ;;  %v80_v18 = vmul.f32 %v68_v52, %v2212_v14  ;;  %v1898_v44 = vld [vmem:[%s2573_s3 + $0x16c] ss:$12 sps:$4 sm:$0xff]  }
  0x14   :  { %659 = vmatprep.subr.bf16.mxu0 %v1852_v17  ;;  %v113_v63 = vadd.f32 %v107_v53, %v74_v58  ;;  %v116_v0 = vadd.f32 %v107_v53, %v77_v59  ;;  %v112_v1 = vadd.f32 %v103_v55, %v73_v60  ;;  %v115_v2 = vadd.f32 %v103_v55, %v76_v61  ;;  %v1892_v17 = vld [vmem:[%s2573_s3 + $0x1b8] ss:$12 sps:$4 sm:$0xff]   ;;  %v2235_v21 = vld [vmem:[%s2574_s0 + $0x48] sm:$0xff]  ;;  %v1894_v29 = vld [vmem:[%s2573_s3 + $0x154] ss:$12 sps:$4 sm:$0xff]  }
  0x15   :  { %1651 = vmatpush3.bf16.msra.mxu1 %v1866_v24  ;;  %v83_v19 = vmul.f32 %v68_v52, %v2217_v15  ;;  %v119_v24 = vadd.f32 %v107_v53, %v80_v18  ;;  %v2274_v52 = vld [vmem:[%s2574_s0 + $0x28] sm:$0xff]  ;;  %v2287_v58 = vld [vmem:[%s2574_s0 + $0x40] sm:$0xff] }
  0x16   :  { %1652 = vmatprep.subr.bf16.mxu1 %v1869_v25  ;;  %v125_v4 = vmax.f32 %v113_v63, 0.0  ;;  %v128_v5 = vmax.f32 %v116_v0, 0.0  ;;  %v124_v6 = vmax.f32 %v112_v1, 0.0  ;;  %v127_v7 = vmax.f32 %v115_v2, 0.0  ;;  %v1902_v1 = vld [vmem:[%s2573_s3 + $0x180] ss:$12 sps:$4 sm:$0xff]  }
  0x17   :  { %660 = vmatpush1.bf16.msra.mxu0 %v1855_v20  ;;  %v2230_v20 = vld [vmem:[%s2574_s0 + $0x30] sm:$0xff]  ;;  %v122_v25 = vadd.f32 %v107_v53, %v83_v19 }
  0x18   :  { %661 = vmatprep.subr.bf16.mxu0 %v1857_v22  ;;  %v137_v8 = vpack.c.bf16 %v128_v5, %v125_v4  ;;  %v2197_v10 = vpack.c.bf16 %v127_v7, %v124_v6  ;;  %v1893_v22 = vld [vmem:[%s2573_s3 + $0x138] ss:$12 sps:$4 sm:$0xff]   ;;  %v1901_v53 = vld [vmem:[%s2573_s3 + $0x168] ss:$12 sps:$4 sm:$0xff]  }
  0x19   :  { %1653 = vmatpush3.bf16.msra.mxu1 %v1871_v30  ;;  %v1896_v30 = vld [vmem:[%s2573_s3 + $0x1d0] ss:$12 sps:$4 sm:$0xff]   ;;  %v1909_v5 = vld [vmem:[%s2573_s3 + $0x218] ss:$12 sps:$4 sm:$0xff]   ;;  %v1914_v19 = vld [vmem:[%s2573_s3 + $0x1c8] ss:$12 sps:$4 sm:$0xff]  }
  0x1a   :  { %1654 = vmatprep.subr.bf16.mxu1 %v1874_v31  ;;  %787 = vmatprep.mubr.bf16.mxu1 %v137_v8  ;;  %v131_v31 = vmax.f32 %v119_v24, 0.0  ;;  %v1908_v4 = vld [vmem:[%s2573_s3 + $0x19c] ss:$12 sps:$4 sm:$0xff]   ;;  %v1977_v24 = vmov 0  }
  0x1b   :  { %662 = vmatpush1.bf16.msra.mxu0 %v1860_v26  ;;  %681 = vmatprep.mubr.bf16.mxu0 %v137_v8  ;;  %v79_v26 = vmul.f32 %v64_v54, %v2230_v20 }
  0x1c   :  { %663 = vmatprep.subr.bf16.mxu0 %v1862_v27  ;;  %v82_v27 = vmul.f32 %v64_v54, %v2235_v21 }
  0x1d   :  { %1655 = vmatpush3.bf16.msra.mxu1 %v1876_v37  ;;  %v118_v34 = vadd.f32 %v103_v55, %v79_v26  ;;  %v1922_v26 = vld [vmem:[%s2573_s3 + $0x1fc] ss:$12 sps:$4 sm:$0xff]  }
  0x1e   :  { %1656 = vmatprep.subr.bf16.mxu1 %v1879_v38 }
  0x1f   :  { %664 = vmatpush1.bf16.msra.mxu0 %v1865_v32  ;;  %v134_v32 = vmax.f32 %v122_v25, 0.0  ;;  %v130_v38 = vmax.f32 %v118_v34, 0.0  ;;  %v1917_v25 = vld [vmem:[%s2573_s3 + $0x1e0] ss:$12 sps:$4 sm:$0xff]  }
  0x20   :  { %665 = vmatprep.subr.bf16.mxu0 %v1867_v35  ;;  %v121_v35 = vadd.f32 %v103_v55, %v82_v27  ;;  %v1920_v27 = vld [vmem:[%s2573_s3 + $0x1f8] ss:$12 sps:$4 sm:$0xff]  }
  0x21   :  { %1657 = vmatpush3.bf16.msra.mxu1 %v1881_v40  ;;  %v140_v37 = vpack.c.bf16 %v134_v32, %v131_v31  ;;  %v2254_v40 = vld [vmem:[%s2575_s2 + $0x8] sm:$0x7]  ;;  %v1928_v31 = vld [vmem:[%s2573_s3 + $0x22c] ss:$12 sps:$4 sm:$0xff]   ;;  %v1929_v34 = vld [vmem:[%s2576_s4 + $0x40] sm:$0xff]  }
  0x22   :  { %1756 = vmatprep.subr.bf16.mxu1 %v1884_v46  ;;  %v57_v47 = vrot.slane %v2254_v40, %v2104_v28  ;;  %v96_v48 = vrot.slane %v2254_v40, %v2117_v33  ;;  %v1926_v32 = vld [vmem:[%s2573_s3 + $0x228] ss:$12 sps:$4 sm:$0xff]  }
  0x23   :  { %666 = vmatpush1.bf16.msra.mxu0 %v1870_v36  ;;  %v1897_v36 = vld [vmem:[%s2573_s3 + $0x150] ss:$12 sps:$4 sm:$0xff]  }
  0x24   :  { %667 = vmatprep.subr.bf16.mxu0 %v1872_v39  ;;  %788 = vmatmul.mubr.bf16.vlgmr.msra.gmra.mrb[0].mxu1 %v2197_v10  ;;  %v133_v39 = vmax.f32 %v121_v35, 0.0  ;;  %v72_v54 = vrot.slane %v57_v47, %v2104_v28  ;;  %v111_v55 = vrot.slane %v96_v48, %v2117_v33  ;;  %v2294_v28 = vld [vmem:[%s2574_s0 + $0x58] sm:$0xff]  ;;  %v1905_v33 = vld [vmem:[%s2573_s3 + $0x200] ss:$12 sps:$4 sm:$0xff]   ;;  %v1937_v47 = vld [vmem:[%s2576_s4 + $0x10] sm:$0xff]  }
  0x25   :  { %1757 = vmatpush3.bf16.msra.mxu1 %v1884_v46  ;;  %v2265_v46 = vld [vmem:[%s2574_s0 + $0x10] sm:$0xff]  ;;  %795 = vmatprep.mubr.bf16.mxu1 %v140_v37  ;;  %v1930_v35 = vld [vmem:[%s2576_s4 + $0x80] sm:$0xff]   ;;  %v1938_v48 = vld [vmem:[%s2576_s4 + $0x58] sm:$0xff]  }
  0x26   :  { %1758 = vmatprep.subr.bf16.mxu1 %v1888_v12  ;;  %v75_v59 = vmul.f32 %v72_v54, %v2265_v46  ;;  %v78_v60 = vmul.f32 %v72_v54, %v2274_v52  ;;  %v81_v63 = vmul.f32 %v72_v54, %v2287_v58  ;;  %v84_v0 = vmul.f32 %v72_v54, %v2294_v28  ;;  %v1941_v54 = vld [vmem:[%s2576_s4 + $0x60] sm:$0xff]  }
  0x27   :  { %668 = vmatpush1.bf16.msra.mxu0 %v1875_v51  ;;  %v139_v51 = vpack.c.bf16 %v133_v39, %v130_v38  ;;  %v1933_v38 = vld [vmem:[%s2576_s4 + $0x88] sm:$0xff]  }
  0x28   :  { %669 = vmatprep.subr.bf16.mxu0 %v1877_v56  ;;  %v1904_v56 = vld [vmem:[%s2573_s3 + $0x184] ss:$12 sps:$4 sm:$0xff]   ;;  %v114_v61 = vadd.f32 %v111_v55, %v75_v59  ;;  %v120_v7 = vadd.f32 %v111_v55, %v81_v63  ;;  %v123_v8 = vadd.f32 %v111_v55, %v84_v0  ;;  %v1934_v39 = vld [vmem:[%s2576_s4 + $0x8] sm:$0xff]   ;;  %v1950_v0 = vld [vmem:[%s2576_s4 + $0x78] sm:$0xff]  }
  0x29   :  { %1759 = vmatpush3.bf16.msra.mxu1 %v1888_v12  ;;  %v1913_v12 = vld [vmem:[%s2573_s3 + $0x230] ss:$12 sps:$4 sm:$0xff]   ;;  %v1944_v59 = vld [vmem:[%s2576_s4 + $0x68] sm:$0xff]  }
  0x2a   :  { %1760 = vmatprep.subr.bf16.mxu1 %v1892_v17  ;;  %v126_v2 = vmax.f32 %v114_v61, 0.0  ;;  %v1947_v61 = vld [vmem:[%s2576_s4 + $0x70] sm:$0xff]  }
  0x2b   :  { %670 = vmatpush1.bf16.msra.mxu0 %v1880_v62  ;;  %v117_v62 = vadd.f32 %v111_v55, %v78_v60  ;;  %v1942_v55 = vld [vmem:[%s2576_s4 + $0xa0] sm:$0xff]   ;;  %v1945_v60 = vld [vmem:[%s2576_s4 + $0xa8] sm:$0xff]   ;;  %v1949_v63 = vld [vmem:[%s2576_s4 + $0x30] sm:$0xff]  }
  0x2c   :  { %671 = vmatprep.subr.bf16.mxu0 %v1882_v3  ;;  %796 = vmatmul.mubr.bf16.gmra.mrb[4].mxu1 %v139_v51 }
  0x2d   :  { %1761 = vmatpush3.bf16.msra.mxu1 %v1892_v17  ;;  %v129_v3 = vmax.f32 %v117_v62, 0.0  ;;  %v1916_v17 = vld [vmem:[%s2573_s3 + $0x1cc] ss:$12 sps:$4 sm:$0xff]   ;;  %v1948_v62 = vld [vmem:[%s2576_s4 + $0xb0] sm:$0xff]  }
  0x2e   :  { %1762 = vmatprep.subr.bf16.mxu1 %v1896_v30 }
  0x2f   :  { %672 = vmatpush1.bf16.msra.mxu0 %v1885_v9  ;;  %v138_v6 = vpack.c.bf16 %v129_v3, %v126_v2  ;;  %v1906_v9 = vld [vmem:[%s2573_s3 + $0x198] ss:$12 sps:$4 sm:$0xff]  }
  0x30   :  { %673 = vmatprep.subr.bf16.mxu0 %v1886_v11  ;;  %v1912_v11 = vld [vmem:[%s2573_s3 + $0x1b4] ss:$12 sps:$4 sm:$0xff]   ;;  %v1952_v2 = vld [vmem:[%s2576_s4 + $0x38] sm:$0xff]  }
  0x31   :  { %1763 = vmatpush3.bf16.msra.mxu1 %v1896_v30  ;;  %1772 = vmatprep.mubr.bf16.mxu1 %v138_v6  ;;  %v1923_v30 = vld [vmem:[%s2573_s3 + $0x210] ss:$12 sps:$4 sm:$0xff]   ;;  %v1953_v3 = vld [vmem:[%s2577_s5 + $0x40] sm:$0xff]  }
  0x32   :  { %1764 = vmatprep.subr.bf16.mxu1 %v1900_v45 }
  0x33   :  { %674 = vmatpush1.bf16.msra.mxu0 %v1889_v13  ;;  %v135_v13 = vmax.f32 %v123_v8, 0.0 }
  0x34   :  { %675 = vmatprep.subr.bf16.mxu0 %v1890_v16  ;;  %v1910_v16 = vld [vmem:[%s2573_s3 + $0x1b0] ss:$12 sps:$4 sm:$0xff]  }
  0x35   :  { %1765 = vmatpush3.bf16.msra.mxu1 %v1900_v45  ;;  %v1936_v45 = vld [vmem:[%s2576_s4 + $0x90] sm:$0xff]  }
  0x36   :  { %1766 = vmatprep.subr.bf16.mxu1 %v1905_v33 }
  0x37   :  { %676 = vmatpush1.bf16.msra.mxu0 %v1893_v22  ;;  %v1919_v22 = vld [vmem:[%s2573_s3 + $0x1e4] ss:$12 sps:$4 sm:$0xff]  }
  0x38   :  { %677 = vmatprep.subr.bf16.mxu0 %v1894_v29  ;;  %v1925_v29 = vld [vmem:[%s2573_s3 + $0x214] ss:$12 sps:$4 sm:$0xff]  }
  0x39   :  { %1767 = vmatpush3.bf16.msra.mxu1 %v1905_v33  ;;  %v1946_v33 = vld [vmem:[%s2576_s4 + $0x28] sm:$0xff]  }
  0x3a   :  { %1768 = vmatprep.subr.bf16.mxu1 %v1909_v5 }
  0x3b   :  { %678 = vmatpush1.bf16.msra.mxu0 %v1897_v36  ;;  %v1931_v36 = vld [vmem:[%s2576_s4] sm:$0xff]  }
  0x3c   :  { %679 = vmatprep.subr.bf16.mxu0 %v1898_v44  ;;  %v1935_v44 = vld [vmem:[%s2576_s4 + $0x50] sm:$0xff]  }
  0x3d   :  { %1769 = vmatpush3.bf16.msra.mxu1 %v1909_v5 }
  0x3e   :  { %1770 = vmatprep.subr.bf16.mxu1 %v1913_v12 }
  0x3f   :  { %680 = vmatpush1.bf16.msra.mxu0 %v1901_v53  ;;  %v1940_v53 = vld [vmem:[%s2576_s4 + $0x18] sm:$0xff]  }
  0x40   :  { %702 = vmatprep.subr.bf16.mxu0 %v1904_v56  ;;  %v1943_v56 = vld [vmem:[%s2576_s4 + $0x20] sm:$0xff]  }
  0x41   :  { %1771 = vmatpush3.bf16.msra.mxu1 %v1913_v12 }
  0x42   :  { %682 = vmatmul.mubr.bf16.vlgmr.msra.gmra.mrb[0].mxu0 %v2197_v10  ;;  %v132_v10 = vmax.f32 %v120_v7, 0.0  ;;  %1680 = vmatprep.subr.bf16.mxu1 %v1929_v34  ;;  %v873_v34 = vld [vmem:[%s2578_s1 + $0x40] sm:$0xff] }
  0x43   :  { %703 = vmatpush1.bf16.msra.mxu0 %v1902_v1  ;;  %691 = vmatprep.mubr.bf16.mxu0 %v140_v37  ;;  %v1932_v37 = vld [vmem:[%s2576_s4 + $0x48] sm:$0xff]   ;;  %v1951_v1 = vld [vmem:[%s2576_s4 + $0xb8] sm:$0xff]  }
  0x44   :  { %704 = vmatprep.subr.bf16.mxu0 %v1908_v4  ;;  %v141_v18 = vpack.c.bf16 %v135_v13, %v132_v10  ;;  %v1955_v4 = vld [vmem:[%s2577_s5 + $0x80] sm:$0xff]  }
  0x46   :  { %1773 = vmatmul.mubr.bf16.vlgmr.msra.gmra.mrb[8].mxu1 %v141_v18 }
  0x47   :  { %705 = vmatpush1.bf16.msra.mxu0 %v1906_v9  ;;  %1681 = vmatpush3.bf16.msra.mxu1 %v1931_v36 }
  0x48   :  { %706 = vmatprep.subr.bf16.mxu0 %v1912_v11  ;;  %1682 = vmatprep.subr.bf16.mxu1 %v1932_v37 }
  0x4a   :  { %692 = vmatmul.mubr.bf16.gmra.mrb[4].mxu0 %v139_v51  ;;  %v1939_v51 = vld [vmem:[%s2576_s4 + $0x98] sm:$0xff]  }
  0x4b   :  { %707 = vmatpush1.bf16.msra.mxu0 %v1910_v16  ;;  %734 = vmatprep.mubr.bf16.mxu0 %v1977_v24 }
  0x4c   :  { %708 = vmatprep.subr.bf16.mxu0 %v1916_v17  ;;  %1683 = vmatpush3.bf16.msra.mxu1 %v1934_v39 }
  0x4d   :  { %1684 = vmatprep.subr.bf16.mxu1 %v1935_v44 }
  0x4f   :  { %709 = vmatpush1.bf16.msra.mxu0 %v1914_v19  ;;  %v240_v19 = vsub.s32 2, %v2089_v23 }
  0x50   :  { %710 = vmatprep.subr.bf16.mxu0 %v1919_v22  ;;  %1685 = vmatpush3.bf16.msra.mxu1 %v1937_v47 }
  0x51   :  { %1686 = vmatprep.subr.bf16.mxu1 %v1938_v48  ;;  %v249_v22 = vrot.slane %v2254_v40, %v240_v19 }
  0x53   :  { %711 = vmatpush1.bf16.msra.mxu0 %v1917_v25 }
  0x54   :  { %712 = vmatprep.subr.bf16.mxu0 %v1922_v26  ;;  %1687 = vmatpush3.bf16.msra.mxu1 %v1940_v53  ;;  %v870_v53 = vld [vmem:[%s2578_s1 + $0x28] sm:$0xff] }
  0x55   :  { %1688 = vmatprep.subr.bf16.mxu1 %v1941_v54 }
  0x57   :  { %713 = vmatpush1.bf16.msra.mxu0 %v1920_v27 }
  0x58   :  { %714 = vmatprep.subr.bf16.mxu0 %v1925_v29  ;;  %1689 = vmatpush3.bf16.msra.mxu1 %v1943_v56 }
  0x59   :  { %1690 = vmatprep.subr.bf16.mxu1 %v1944_v59 }
  0x5b   :  { %715 = vmatpush1.bf16.msra.mxu0 %v1923_v30 }
  0x5c   :  { %716 = vmatprep.subr.bf16.mxu0 %v1928_v31  ;;  %1691 = vmatpush3.bf16.msra.mxu1 %v1946_v33 }
  0x5d   :  { %1692 = vmatprep.subr.bf16.mxu1 %v1947_v61  ;;  %v244_v61 = vsub.s32 6, %v2089_v23  ;;  %v1961_v23 = vld [vmem:[%s2577_s5 + $0x90] sm:$0xff]  }
  0x5f   :  { %717 = vmatpush1.bf16.msra.mxu0 %v1926_v32 }
  0x60   :  { %1776 = vmatprep.subr.bf16.mxu0 %v1930_v35  ;;  %1693 = vmatpush3.bf16.msra.mxu1 %v1949_v63  ;;  %v1958_v63 = vld [vmem:[%s2577_s5 + $0x88] sm:$0xff]  }
  0x61   :  { %1694 = vmatprep.subr.bf16.mxu1 %v1950_v0  ;;  %v241_v0 = vrot.slane %v2146_v42, %v240_v19 }
  0x62   :  { %735 = vmatmul.mubr.bf16.vlgmr.msra.gmra.mrb[0].mxu0 %v138_v6 }
  0x63   :  { %744 = vmatprep.mubr.bf16.mxu0 %v1977_v24  ;;  %1777 = vmatpush3.bf16.msra.mxu0 %v1930_v35  ;;  %v264_v24 = vrot.slane %v249_v22, %v240_v19 }
  0x64   :  { %1778 = vmatprep.subr.bf16.mxu0 %v1933_v38  ;;  %1695 = vmatpush3.bf16.msra.mxu1 %v1952_v2  ;;  %v256_v2 = vrot.slane %v241_v0, %v240_v19  ;;  %v1976_v0 = vld [vmem:[%s2577_s5 + $0xb8] sm:$0xff]  }
  0x65   :  { %1718 = vmatprep.subr.bf16.mxu1 %v1953_v3 }
  0x67   :  { %1779 = vmatpush3.bf16.msra.mxu0 %v1933_v38  ;;  %v867_v38 = vld [vmem:[%s2578_s1 + $0x10] sm:$0xff] }
  0x68   :  { %1780 = vmatprep.subr.bf16.mxu0 %v1936_v45 }
  0x6a   :  { %745 = vmatmul.mubr.bf16.gmra.mrb[4].mxu0 %v141_v18 }
  0x6b   :  { %1781 = vmatpush3.bf16.msra.mxu0 %v1936_v45  ;;  %v876_v45 = vld [vmem:[%s2578_s1 + $0x58] sm:$0xff] }
  0x6c   :  { %1782 = vmatprep.subr.bf16.mxu0 %v1939_v51 }
  0x6f   :  { %1783 = vmatpush3.bf16.msra.mxu0 %v1939_v51 }
  0x70   :  { %1784 = vmatprep.subr.bf16.mxu0 %v1942_v55 }
  0x73   :  { %1785 = vmatpush3.bf16.msra.mxu0 %v1942_v55 }
  0x74   :  { %1786 = vmatprep.subr.bf16.mxu0 %v1945_v60 }
  0x77   :  { %1787 = vmatpush3.bf16.msra.mxu0 %v1945_v60 }
  0x78   :  { %1788 = vmatprep.subr.bf16.mxu0 %v1948_v62 }
  0x7b   :  { %1789 = vmatpush3.bf16.msra.mxu0 %v1948_v62  ;;  %v1187_v62 = vpack.c.bf16 %v2274_v52, %v2265_v46  ;;  %v1964_v46 = vld [vmem:[%s2577_s5 + $0x98] sm:$0xff]  }
  0x7c   :  { %1790 = vmatprep.subr.bf16.mxu0 %v1951_v1 }
  0x7f   :  { %1791 = vmatpush3.bf16.msra.mxu0 %v1951_v1  ;;  %v245_v1 = vrot.slane %v2146_v42, %v244_v61 }
  0x80   :  { %1796 = vmatprep.subr.bf16.mxu0 %v1955_v4 }
  0x81   :  { %v260_v3 = vrot.slane %v245_v1, %v240_v19  ;;  %v869_v19 = vld [vmem:[%s2578_s1 + $0x20] sm:$0xff] }
  0xf7   :  { %v1658_v5 = vpop.f32.mrb[0].mxu1 }
  0xf8   :  { %v1659_v6 = vpop.f32.mrb[1].mxu1 }
  0xf9   :  { %v1660_v7 = vadd.f32 %v1659_v6, %v1658_v5  ;;  %v1661_v8 = vpop.f32.mrb[2].mxu1 }
  0xfa   :  { %v1662_v9 = vpop.f32.mrb[3].mxu1 }
  0xfb   :  { %v1663_v11 = vadd.f32 %v1662_v9, %v1661_v8  ;;  %v790_v26 = vadd.f32 %v1660_v7, %v264_v24 }
  0xfd   :  { %v793_v30 = vadd.f32 %v1663_v11, %v264_v24  ;;  %v1967_v11 = vld [vmem:[%s2577_s5 + $0xa0] sm:$0xff]  }
  0xff   :  { %v1664_v12 = vpop.f32.mrb[4].mxu1 }
 0x100   :  { %v1665_v10 = vpop.f32.mrb[5].mxu1 }
 0x101   :  { %v1666_v13 = vadd.f32 %v1665_v10, %v1664_v12  ;;  %v1667_v16 = vpop.f32.mrb[6].mxu1  ;;  %v865_v12 = vld [vmem:[%s2578_s1] sm:$0xff] }
 0x102   :  { %v1668_v17 = vpop.f32.mrb[7].mxu1 }
 0x103   :  { %v1669_v18 = vadd.f32 %v1668_v17, %v1667_v16  ;;  %v798_v25 = vadd.f32 %v1666_v13, %v264_v24  ;;  %v868_v13 = vld [vmem:[%s2578_s1 + $0x18] sm:$0xff]  ;;  %v866_v17 = vld [vmem:[%s2578_s1 + $0x8] sm:$0xff] }
 0x105   :  { %v801_v27 = vadd.f32 %v1669_v18, %v264_v24 }
 0x119   :  { %v1774_v29 = vpop.f32.mrb[8].mxu1 }
 0x11a   :  { %v847_v31 = vadd.f32 %v1774_v29, %v798_v25  ;;  %v838_v32 = vpop.f32.mrb[9].mxu1 }
 0x11b   :  { %v839_v35 = vadd.f32 %v838_v32, %v790_v26  ;;  %v1775_v36 = vpop.f32.mrb[10].mxu1  ;;  %v1970_v26 = vld [vmem:[%s2577_s5 + $0xa8] sm:$0xff]  }
 0x11c   :  { %v861_v37 = vmax.f32 %v847_v31, 0.0  ;;  %v850_v40 = vadd.f32 %v1775_v36, %v801_v27  ;;  %v841_v39 = vpop.f32.mrb[11].mxu1 }
 0x11d   :  { %v855_v44 = vmax.f32 %v839_v35, 0.0  ;;  %v842_v47 = vadd.f32 %v841_v39, %v793_v30 }
 0x11e   :  { %v885_v48 = vmul.f32 %v873_v34, %v861_v37  ;;  %v864_v51 = vmax.f32 %v850_v40, 0.0 }
 0x11f   :  { %v879_v54 = vmul.f32 %v867_v38, %v855_v44  ;;  %v858_v55 = vmax.f32 %v842_v47, 0.0  ;;  %v1954_v38 = vld [vmem:[%s2577_s5] sm:$0xff]   ;;  %v1973_v47 = vld [vmem:[%s2577_s5 + $0xb0] sm:$0xff]  }
 0x120   :  { %v888_v56 = vmul.f32 %v876_v45, %v864_v51  ;;  %v1956_v45 = vld [vmem:[%s2577_s5 + $0x48] sm:$0xff]  }
 0x121   :  { %v882_v59 = vmul.f32 %v870_v53, %v858_v55  ;;  %v874_v53 = vld [vmem:[%s2578_s1 + $0x48] sm:$0xff]  ;;  %v872_v55 = vld [vmem:[%s2578_s1 + $0x38] sm:$0xff] }
 0x122   :  { %v894_v60 = vpack.c.bf16 %v888_v56, %v885_v48  ;;  %v871_v48 = vld [vmem:[%s2578_s1 + $0x30] sm:$0xff] }
 0x123   :  { %v891_v33 = vpack.c.bf16 %v882_v59, %v879_v54  ;;  %v875_v59 = vld [vmem:[%s2578_s1 + $0x50] sm:$0xff] }
 0x125   :  { %1792 = vmatprep.mubr.bf16.mxu0 %v891_v33  ;;  %v1957_v33 = vld [vmem:[%s2577_s5 + $0x8] sm:$0xff]  }
 0x126   :  { %1793 = vmatmul.mubr.bf16.vlgmr.msra.gmra.mrb[8].mxu0 %v894_v60 }
 0x127   :  { %1797 = vmatpush3.bf16.msra.mxu0 %v1955_v4  ;;  %1812 = vmatprep.mubr.bf16.mxu0 %v1187_v62 }
 0x128   :  { %1798 = vmatprep.subr.bf16.mxu0 %v1958_v63 }
 0x12b   :  { %1799 = vmatpush3.bf16.msra.mxu0 %v1958_v63  ;;  %v1959_v63 = vld [vmem:[%s2577_s5 + $0x50] sm:$0xff]  }
 0x12c   :  { %1800 = vmatprep.subr.bf16.mxu0 %v1961_v23 }
 0x12f   :  { %1801 = vmatpush3.bf16.msra.mxu0 %v1961_v23 }
 0x130   :  { %1802 = vmatprep.subr.bf16.mxu0 %v1964_v46 }
 0x133   :  { %1803 = vmatpush3.bf16.msra.mxu0 %v1964_v46  ;;  %v1960_v46 = vld [vmem:[%s2577_s5 + $0x10] sm:$0xff]  }
 0x134   :  { %1804 = vmatprep.subr.bf16.mxu0 %v1967_v11 }
 0x135   :  { %v736_v52 = vpop.f32.mrb[0].mxu0 }
 0x136   :  { %v1816_v5 = vadd.f32 %v736_v52, %v256_v2  ;;  %v738_v6 = vpop.f32.mrb[1].mxu0  ;;  %v1186_v52 = vpack.c.bf16 %v2151_v43, %v2141_v41  ;;  %v1965_v41 = vld [vmem:[%s2577_s5 + $0x60] sm:$0xff]  }
 0x137   :  { %v1817_v7 = vadd.f32 %v738_v6, %v260_v3  ;;  %v740_v42 = vpop.f32.mrb[2].mxu0  ;;  %1805 = vmatpush3.bf16.msra.mxu0 %v1967_v11  ;;  %v1963_v6 = vld [vmem:[%s2577_s5 + $0x18] sm:$0xff]   ;;  %v1966_v43 = vld [vmem:[%s2577_s5 + $0x20] sm:$0xff]   ;;  %v1189_v11 = vpack.c.bf16 %v2217_v15, %v2212_v14 }
 0x138   :  { %v853_v4 = vmax.f32 %v1816_v5, 0.0  ;;  %v1818_v8 = vadd.f32 %v740_v42, %v256_v2  ;;  %v742_v9 = vpop.f32.mrb[3].mxu0  ;;  %1806 = vmatprep.subr.bf16.mxu0 %v1970_v26  ;;  %v1962_v5 = vld [vmem:[%s2577_s5 + $0x58] sm:$0xff]   ;;  %v1968_v42 = vld [vmem:[%s2577_s5 + $0x68] sm:$0xff]  }
 0x139   :  { %v854_v10 = vmax.f32 %v1817_v7, 0.0  ;;  %v1819_v16 = vadd.f32 %v742_v9, %v260_v3  ;;  %v1190_v7 = vpack.c.bf16 %v2294_v28, %v2287_v58  ;;  %v1969_v58 = vld [vmem:[%s2577_s5 + $0x28] sm:$0xff]   ;;  %v1971_v28 = vld [vmem:[%s2577_s5 + $0x70] sm:$0xff]   ;;  %v1975_v9 = vld [vmem:[%s2577_s5 + $0x38] sm:$0xff]  }
 0x13a   :  { %v856_v18 = vmax.f32 %v1818_v8, 0.0  ;;  %v877_v24 = vmul.f32 %v865_v12, %v853_v4  ;;  %v1972_v4 = vld [vmem:[%s2577_s5 + $0x30] sm:$0xff]   ;;  %v1974_v8 = vld [vmem:[%s2577_s5 + $0x78] sm:$0xff]   ;;  %v1188_v12 = vpack.c.bf16 %v2235_v21, %v2230_v20 }
 0x13b   :  { %v857_v22 = vmax.f32 %v1819_v16, 0.0  ;;  %v878_v27 = vmul.f32 %v866_v17, %v854_v10  ;;  %1807 = vmatpush3.bf16.msra.mxu0 %v1970_v26 }
 0x13c   :  { %v880_v25 = vmul.f32 %v868_v13, %v856_v18  ;;  %1808 = vmatprep.subr.bf16.mxu0 %v1973_v47 }
 0x13d   :  { %v881_v29 = vmul.f32 %v869_v19, %v857_v22  ;;  %v746_v30 = vpop.f32.mrb[4].mxu0 }
 0x13e   :  { %v889_v31 = vpack.c.bf16 %v880_v25, %v877_v24  ;;  %v1820_v32 = vadd.f32 %v746_v30, %v256_v2  ;;  %v748_v34 = vpop.f32.mrb[5].mxu0 }
 0x13f   :  { %v1821_v35 = vadd.f32 %v748_v34, %v260_v3  ;;  %v750_v36 = vpop.f32.mrb[6].mxu0  ;;  %v890_v37 = vpack.c.bf16 %v881_v29, %v878_v27  ;;  %1809 = vmatpush3.bf16.msra.mxu0 %v1973_v47 }
 0x140   :  { %v859_v40 = vmax.f32 %v1820_v32, 0.0  ;;  %v1822_v39 = vadd.f32 %v750_v36, %v256_v2  ;;  %v752_v44 = vpop.f32.mrb[7].mxu0  ;;  %1810 = vmatprep.subr.bf16.mxu0 %v1976_v0 }
 0x141   :  { %v860_v51 = vmax.f32 %v1821_v35, 0.0  ;;  %v1823_v54 = vadd.f32 %v752_v44, %v260_v3  ;;  %1119 = vmatprep.mubr.bf16.mxu1 %v890_v37  ;;  %v1640_v44 = vld [vmem:[%s2579_s6] ss:$0 sm:$0xff] }
 0x142   :  { %v862_v56 = vmax.f32 %v1822_v39, 0.0  ;;  %1120 = vmatmul.mubr.bf16.vlgmr.msra.gmra.mrb[12].mxu1 %v889_v31  ;;  %v883_v61 = vmul.f32 %v871_v48, %v859_v40 }
 0x143   :  { %v863_v60 = vmax.f32 %v1823_v54, 0.0  ;;  %1719 = vmatpush3.bf16.msra.mxu1 %v1954_v38  ;;  %v884_v1 = vmul.f32 %v872_v55, %v860_v51  ;;  %1811 = vmatpush3.bf16.msra.mxu0 %v1976_v0  ;;  %v1641_v54 = vld [vmem:[%s2580_s7] ss:$0 sm:$0xff] }
 0x144   :  { %v886_v62 = vmul.f32 %v874_v53, %v862_v56  ;;  %1720 = vmatprep.subr.bf16.mxu1 %v1956_v45 }
 0x145   :  { %v887_v23 = vmul.f32 %v875_v59, %v863_v60 }
 0x146   :  { %v892_v2 = vpack.c.bf16 %v886_v62, %v883_v61  ;;  %1813 = vmatmul.mubr.bf16.vlgmr.msra.gmra.mrb[12].mxu0 %v1190_v7 }
 0x147   :  { %1721 = vmatpush3.bf16.msra.mxu1 %v1957_v33  ;;  %v893_v3 = vpack.c.bf16 %v887_v23, %v884_v1 }
 0x148   :  { %1722 = vmatprep.subr.bf16.mxu1 %v1959_v63 }
 0x149   :  { %1127 = vmatprep.mubr.bf16.mxu1 %v893_v3 }
 0x14a   :  { %1128 = vmatmul.mubr.bf16.gmra.mrb[16].mxu1 %v892_v2 }
 0x14b   :  { %1723 = vmatpush3.bf16.msra.mxu1 %v1960_v46  ;;  %1415 = vmatprep.mubr.bf16.mxu1 %v1186_v52 }
 0x14c   :  { %1724 = vmatprep.subr.bf16.mxu1 %v1962_v5 }
 0x14f   :  { %1725 = vmatpush3.bf16.msra.mxu1 %v1963_v6 }
 0x150   :  { %1726 = vmatprep.subr.bf16.mxu1 %v1965_v41 }
 0x153   :  { %1727 = vmatpush3.bf16.msra.mxu1 %v1966_v43 }
 0x154   :  { %1728 = vmatprep.subr.bf16.mxu1 %v1968_v42 }
 0x157   :  { %1729 = vmatpush3.bf16.msra.mxu1 %v1969_v58 }
 0x158   :  { %1730 = vmatprep.subr.bf16.mxu1 %v1971_v28 }
 0x15b   :  { %1731 = vmatpush3.bf16.msra.mxu1 %v1972_v4 }
 0x15c   :  { %1732 = vmatprep.subr.bf16.mxu1 %v1974_v8 }
 0x15f   :  { %1733 = vmatpush3.bf16.msra.mxu1 %v1975_v9 }
 0x162   :  { %1416 = vmatmul.mubr.bf16.vlgmr.msra.gmra.mrb[20].mxu1 %v1185_v57 }
 0x163   :  { %1423 = vmatprep.mubr.bf16.mxu1 %v1189_v11 }
 0x16a   :  { %1424 = vmatmul.mubr.bf16.gmra.mrb[24].mxu1 %v1188_v12 }
 0x1f9   :  { %v1794_v10 = vpop.f32.mrb[8].mxu0 }
 0x1fa   :  { %v1170_v13 = vpop.f32.mrb[9].mxu0 }
 0x1fb   :  { %v1795_v16 = vpop.f32.mrb[10].mxu0 }
 0x1fc   :  { %v1173_v17 = vpop.f32.mrb[11].mxu0 }
 0x215   :  { %v1696_v18 = vpop.f32.mrb[12].mxu1 }
 0x216   :  { %v1697_v19 = vpop.f32.mrb[13].mxu1 }
 0x217   :  { %v1698_v22 = vadd.f32 %v1697_v19, %v1696_v18  ;;  %v1699_v24 = vpop.f32.mrb[14].mxu1 }
 0x218   :  { %v1700_v25 = vpop.f32.mrb[15].mxu1 }
 0x219   :  { %v1171_v26 = vadd.f32 %v1698_v22, %v1170_v13  ;;  %v1701_v14 = vadd.f32 %v1700_v25, %v1699_v24  ;;  %v1814_v21 = vpop.f32.mrb[12].mxu0 }
 0x21a   :  { %v1466_v32 = vpop.f32.mrb[13].mxu0 }
 0x21b   :  { %v1174_v15 = vadd.f32 %v1701_v14, %v1173_v17  ;;  %v1815_v34 = vpop.f32.mrb[14].mxu0  ;;  %v1481_v48 = vmul.f32 0.3, %v1171_v26 }
 0x21c   :  { %v1469_v35 = vpop.f32.mrb[15].mxu0 }
 0x21d   :  { %v1702_v27 = vpop.f32.mrb[16].mxu1  ;;  %v1482_v55 = vmul.f32 0.3, %v1174_v15 }
 0x21e   :  { %v1703_v49 = vpop.f32.mrb[17].mxu1 }
 0x21f   :  { %v1704_v50 = vadd.f32 %v1703_v49, %v1702_v27  ;;  %v1705_v57 = vpop.f32.mrb[18].mxu1 }
 0x220   :  { %v1706_v29 = vpop.f32.mrb[19].mxu1 }
 0x221   :  { %v1179_v30 = vadd.f32 %v1794_v10, %v1704_v50  ;;  %v1707_v20 = vadd.f32 %v1706_v29, %v1705_v57 }
 0x223   :  { %v1182_v31 = vadd.f32 %v1795_v16, %v1707_v20  ;;  %v1483_v46 = vmul.f32 0.3, %v1179_v30 }
 0x225   :  { %v1484_v6 = vmul.f32 0.3, %v1182_v31 }
 0x235   :  { %v1734_v36 = vpop.f32.mrb[20].mxu1 }
 0x236   :  { %v1735_v37 = vpop.f32.mrb[21].mxu1 }
 0x237   :  { %v1736_v38 = vadd.f32 %v1735_v37, %v1734_v36  ;;  %v1737_v40 = vpop.f32.mrb[22].mxu1 }
 0x238   :  { %v1738_v39 = vpop.f32.mrb[23].mxu1 }
 0x239   :  { %v1739_v45 = vadd.f32 %v1738_v39, %v1737_v40  ;;  %v1467_v47 = vadd.f32 %v1736_v38, %v1466_v32 }
 0x23b   :  { %v1492_v51 = vmul.f32 %v1640_v44, %v1467_v47  ;;  %v1470_v53 = vadd.f32 %v1739_v45, %v1469_v35 }
 0x23d   :  { %v1496_v56 = vadd.f32 %v1492_v51, %v1481_v48  ;;  %v1493_v59 = vmul.f32 %v1640_v44, %v1470_v53  ;;  %v1740_v60 = vpop.f32.mrb[24].mxu1 }
 0x23e   :  { %v1741_v33 = vpop.f32.mrb[25].mxu1 }
 0x23f   :  { %v1507_v61 = vadd.f32 %v1641_v54, %v1496_v56  ;;  %v1497_v62 = vadd.f32 %v1493_v59, %v1482_v55  ;;  %v1742_v63 = vadd.f32 %v1741_v33, %v1740_v60  ;;  %v1743_v0 = vpop.f32.mrb[26].mxu1 }
 0x240   :  { %v1744_v1 = vpop.f32.mrb[27].mxu1 }
 0x241   :  { %1512 = vst.msk [vmem:[%s2581_s8] sm:$0xff] %vm1511_vm0, %v1507_v61  ;;  %v1508_v23 = vadd.f32 %v1641_v54, %v1497_v62  ;;  %v1475_v2 = vadd.f32 %v1814_v21, %v1742_v63  ;;  %v1745_v3 = vadd.f32 %v1744_v1, %v1743_v0 }
 0x243   :  { %1513 = vst.msk [vmem:[%s2581_s8 + $0x8] sm:$0xff] %vm1511_vm0, %v1508_v23  ;;  %v1494_v52 = vmul.f32 %v1640_v44, %v1475_v2  ;;  %v1478_v5 = vadd.f32 %v1815_v34, %v1745_v3 }
 0x245   :  { %v1498_v7 = vadd.f32 %v1494_v52, %v1483_v46  ;;  %v1495_v41 = vmul.f32 %v1640_v44, %v1478_v5 }
 0x247   :  { %v1509_v43 = vadd.f32 %v1641_v54, %v1498_v7  ;;  %v1499_v42 = vadd.f32 %v1495_v41, %v1484_v6 }
 0x249   :  { %1514 = vst.msk [vmem:[%s2581_s8 + $0x10] sm:$0xff] %vm1511_vm0, %v1509_v43  ;;  %v1510_v58 = vadd.f32 %v1641_v54, %v1499_v42 }
 0x24b   :  { %1515 = vst.msk [vmem:[%s2581_s8 + $0x18] sm:$0xff] %vm1511_vm0, %v1510_v58 }

// kernel: encoder_img_forward.7
= control target key start
LH: loop header
LB: loop body
LE: loop exit
PB: predicated region body
PF: predicated region fallthrough
CT: control target
= control target key end

     0   :  { %v41_v37 = vlaneseq  ;;  %v2580_v40 = vmov 1983009808   ;;  %vm2583_vm0 = vmmov 0   ;;  %vm1917_vm1 = vcmask 326656   ;;  %s3315_s3 = inlined_call_operand.vmem [shape: bf16[512,512], index: 3, kind: input, shape index: {}]   ;;  %s3316_s2 = inlined_call_operand.vmem [shape: f32[3,512], index: 2, kind: input, shape index: {}]   ;;  %s3317_s0 = inlined_call_operand.vmem [shape: f32[2,512], index: 0, kind: input, shape index: {}]   ;;  %s3318_s4 = inlined_call_operand.vmem [shape: bf16[512,40], index: 4, kind: input, shape index: {}]   ;;  %s3319_s5 = inlined_call_operand.vmem [shape: bf16[512,40], index: 5, kind: input, shape index: {}]   ;;  %s3320_s1 = inlined_call_operand.vmem [shape: f32[2,512], index: 1, kind: input, shape index: {}]   ;;  %s3321_s8 = inlined_call_operand.vmem [shape: f32[40,48], index: 8, kind: input, shape index: {}]   ;;  %s3322_s6 = inlined_call_operand.vmem [shape: f32[1,40], index: 6, kind: input, shape index: {}]   ;;  %s3323_s7 = inlined_call_operand.vmem [shape: f32[1,40], index: 7, kind: input, shape index: {}]   ;;  %s3324_s9 = inlined_call_operand.vmem [shape: f32[1,48], index: 9, kind: input, shape index: {}]   ;;  %s3325_s10 = inlined_call_operand.vmem [shape: f32[2,48], index: 10, kind: output, shape index: {}]  }
   0x1   :  { %v2322_v0 = vld [vmem:[%s3315_s3 + $0x4] ss:$16 sps:$4 sm:$0xff]   ;;  %v2324_v1 = vld [vmem:[%s3315_s3 + $0xc] ss:$16 sps:$4 sm:$0xff]   ;;  %v2326_v2 = vld [vmem:[%s3315_s3] ss:$16 sps:$4 sm:$0xff]   ;;  %v84_v41 = vunpack.c.l.s4 %v2580_v40 }
   0x2   :  { %990 = vmatprep.subr.bf16.mxu0 %v2322_v0  ;;  %v2327_v3 = vld [vmem:[%s3315_s3 + $0x8] ss:$16 sps:$4 sm:$0xff]   ;;  %1072 = vmatprep.subr.bf16.mxu1 %v2324_v1  ;;  %v2328_v4 = vld [vmem:[%s3315_s3 + $0x24] ss:$16 sps:$4 sm:$0xff]   ;;  %v2330_v5 = vld [vmem:[%s3315_s3 + $0x2c] ss:$16 sps:$4 sm:$0xff]  }
   0x3   :  { %991 = vmatpush1.bf16.msra.mxu0 %v2326_v2  ;;  %1073 = vmatpush1.bf16.msra.mxu1 %v2327_v3  ;;  %v2332_v6 = vld [vmem:[%s3315_s3 + $0x20] ss:$16 sps:$4 sm:$0xff]   ;;  %v2333_v7 = vld [vmem:[%s3315_s3 + $0x28] ss:$16 sps:$4 sm:$0xff]   ;;  %v2334_v8 = vld [vmem:[%s3315_s3 + $0x44] ss:$16 sps:$4 sm:$0xff]   ;;  %v85_v48 = vunpack.c.0.s8 %v84_v41 }
   0x4   :  { %992 = vmatprep.subr.bf16.mxu0 %v2328_v4  ;;  %1074 = vmatprep.subr.bf16.mxu1 %v2330_v5  ;;  %v2336_v9 = vld [vmem:[%s3315_s3 + $0x4c] ss:$16 sps:$4 sm:$0xff]   ;;  %v2338_v10 = vld [vmem:[%s3315_s3 + $0x40] ss:$16 sps:$4 sm:$0xff]   ;;  %v2339_v11 = vld [vmem:[%s3315_s3 + $0x48] ss:$16 sps:$4 sm:$0xff]  }
   0x5   :  { %v2340_v12 = vld [vmem:[%s3315_s3 + $0x64] ss:$16 sps:$4 sm:$0xff]   ;;  %v2342_v13 = vld [vmem:[%s3315_s3 + $0x6c] ss:$16 sps:$4 sm:$0xff]   ;;  %v2344_v14 = vld [vmem:[%s3315_s3 + $0x60] ss:$16 sps:$4 sm:$0xff]  }
   0x6   :  { %v2345_v15 = vld [vmem:[%s3315_s3 + $0x68] ss:$16 sps:$4 sm:$0xff]   ;;  %v2346_v16 = vld [vmem:[%s3315_s3 + $0x84] ss:$16 sps:$4 sm:$0xff]   ;;  %v2348_v17 = vld [vmem:[%s3315_s3 + $0x8c] ss:$16 sps:$4 sm:$0xff]  }
   0x7   :  { %993 = vmatpush1.bf16.msra.mxu0 %v2332_v6  ;;  %1075 = vmatpush1.bf16.msra.mxu1 %v2333_v7  ;;  %v2350_v18 = vld [vmem:[%s3315_s3 + $0x80] ss:$16 sps:$4 sm:$0xff]   ;;  %v2351_v19 = vld [vmem:[%s3315_s3 + $0x88] ss:$16 sps:$4 sm:$0xff]   ;;  %v2352_v20 = vld [vmem:[%s3315_s3 + $0xa4] ss:$16 sps:$4 sm:$0xff]  }
   0x8   :  { %994 = vmatprep.subr.bf16.mxu0 %v2334_v8  ;;  %1076 = vmatprep.subr.bf16.mxu1 %v2336_v9  ;;  %v2354_v21 = vld [vmem:[%s3315_s3 + $0xac] ss:$16 sps:$4 sm:$0xff]   ;;  %v2356_v22 = vld [vmem:[%s3315_s3 + $0xa0] ss:$16 sps:$4 sm:$0xff]   ;;  %v2357_v23 = vld [vmem:[%s3315_s3 + $0xa8] ss:$16 sps:$4 sm:$0xff]  }
   0x9   :  { %v2358_v24 = vld [vmem:[%s3315_s3 + $0xc4] ss:$16 sps:$4 sm:$0xff]   ;;  %v2360_v25 = vld [vmem:[%s3315_s3 + $0xcc] ss:$16 sps:$4 sm:$0xff]   ;;  %v2362_v26 = vld [vmem:[%s3315_s3 + $0xc0] ss:$16 sps:$4 sm:$0xff]  }
   0xa   :  { %v2363_v27 = vld [vmem:[%s3315_s3 + $0xc8] ss:$16 sps:$4 sm:$0xff]   ;;  %v2364_v28 = vld [vmem:[%s3315_s3 + $0xe4] ss:$16 sps:$4 sm:$0xff]   ;;  %v2366_v29 = vld [vmem:[%s3315_s3 + $0xec] ss:$16 sps:$4 sm:$0xff]  }
   0xb   :  { %995 = vmatpush1.bf16.msra.mxu0 %v2338_v10  ;;  %1077 = vmatpush1.bf16.msra.mxu1 %v2339_v11  ;;  %v2368_v30 = vld [vmem:[%s3315_s3 + $0xe0] ss:$16 sps:$4 sm:$0xff]   ;;  %v2369_v31 = vld [vmem:[%s3315_s3 + $0xe8] ss:$16 sps:$4 sm:$0xff]   ;;  %v2370_v32 = vld [vmem:[%s3315_s3 + $0x104] ss:$16 sps:$4 sm:$0xff]  }
   0xc   :  { %996 = vmatprep.subr.bf16.mxu0 %v2340_v12  ;;  %1078 = vmatprep.subr.bf16.mxu1 %v2342_v13  ;;  %v2372_v33 = vld [vmem:[%s3315_s3 + $0x10c] ss:$16 sps:$4 sm:$0xff]   ;;  %v2374_v34 = vld [vmem:[%s3315_s3 + $0x100] ss:$16 sps:$4 sm:$0xff]   ;;  %v2375_v35 = vld [vmem:[%s3315_s3 + $0x108] ss:$16 sps:$4 sm:$0xff]  }
   0xd   :  { %v2376_v36 = vld [vmem:[%s3315_s3 + $0x124] ss:$16 sps:$4 sm:$0xff]   ;;  %v2378_v38 = vld [vmem:[%s3315_s3 + $0x12c] ss:$16 sps:$4 sm:$0xff]   ;;  %v2380_v39 = vld [vmem:[%s3315_s3 + $0x120] ss:$16 sps:$4 sm:$0xff]  }
   0xe   :  { %v2381_v42 = vld [vmem:[%s3315_s3 + $0x128] ss:$16 sps:$4 sm:$0xff]   ;;  %v2382_v43 = vld [vmem:[%s3315_s3 + $0x144] ss:$16 sps:$4 sm:$0xff]   ;;  %v2762_v44 = vshrl.u32 %v41_v37, 7  ;;  %vm1991_vm2 = vcmask 386048  }
   0xf   :  { %997 = vmatpush1.bf16.msra.mxu0 %v2344_v14  ;;  %1079 = vmatpush1.bf16.msra.mxu1 %v2345_v15  ;;  %v2384_v45 = vld [vmem:[%s3315_s3 + $0x14c] ss:$16 sps:$4 sm:$0xff]   ;;  %v2386_v46 = vld [vmem:[%s3315_s3 + $0x140] ss:$16 sps:$4 sm:$0xff]   ;;  %v2387_v47 = vld [vmem:[%s3315_s3 + $0x148] ss:$16 sps:$4 sm:$0xff]  }
  0x10   :  { %998 = vmatprep.subr.bf16.mxu0 %v2346_v16  ;;  %1080 = vmatprep.subr.bf16.mxu1 %v2348_v17  ;;  %v2388_v49 = vld [vmem:[%s3315_s3 + $0x164] ss:$16 sps:$4 sm:$0xff]   ;;  %v43_v50 = vsub.s32 0, %v2762_v44  ;;  %v47_v51 = vsub.s32 4, %v2762_v44  ;;  %v2390_v52 = vld [vmem:[%s3315_s3 + $0x16c] ss:$16 sps:$4 sm:$0xff]   ;;  %v2797_v58 = vsub.s32 %v85_v48, %v2762_v44 }
  0x11   :  { %v102_v53 = vsub.s32 1, %v2762_v44  ;;  %v106_v54 = vsub.s32 5, %v2762_v44  ;;  %v2392_v55 = vld [vmem:[%s3315_s3 + $0x160] ss:$16 sps:$4 sm:$0xff]   ;;  %v2794_v57 = vld [vmem:[%s3316_s2 + $0x8] sm:$0x77] }
  0x12   :  { %v2789_v56 = vld [vmem:[%s3316_s2] sm:$0x77]  ;;  %v2393_v59 = vld [vmem:[%s3315_s3 + $0x168] ss:$16 sps:$4 sm:$0xff]   ;;  %v52_v63 = vrot.slane %v2794_v57, %v43_v50  ;;  %v2396_v0 = vld [vmem:[%s3315_s3 + $0x18c] ss:$16 sps:$4 sm:$0xff]   ;;  %v56_v1 = vrot.slane %v2794_v57, %v47_v51 }
  0x13   :  { %999 = vmatpush1.bf16.msra.mxu0 %v2350_v18  ;;  %1081 = vmatpush1.bf16.msra.mxu1 %v2351_v19  ;;  %v2394_v60 = vld [vmem:[%s3315_s3 + $0x184] ss:$16 sps:$4 sm:$0xff]   ;;  %v44_v61 = vrot.slane %v2789_v56, %v43_v50  ;;  %v48_v62 = vrot.slane %v2789_v56, %v47_v51  ;;  %v103_v2 = vrot.slane %v2789_v56, %v102_v53  ;;  %v2398_v8 = vld [vmem:[%s3315_s3 + $0x180] ss:$16 sps:$4 sm:$0xff]   ;;  %v2399_v13 = vld [vmem:[%s3315_s3 + $0x188] ss:$16 sps:$4 sm:$0xff]  }
  0x14   :  { %1000 = vmatprep.subr.bf16.mxu0 %v2352_v20  ;;  %1082 = vmatprep.subr.bf16.mxu1 %v2354_v21  ;;  %v107_v3 = vrot.slane %v2789_v56, %v106_v54  ;;  %v72_v6 = vrot.slane %v52_v63, %v43_v50  ;;  %v111_v7 = vrot.slane %v2794_v57, %v102_v53  ;;  %v2400_v14 = vld [vmem:[%s3315_s3 + $0x1a4] ss:$16 sps:$4 sm:$0xff]   ;;  %v2402_v17 = vld [vmem:[%s3315_s3 + $0x1ac] ss:$16 sps:$4 sm:$0xff]   ;;  %v2417_v41 = vld [vmem:[%s3315_s3 + $0x1e8] ss:$16 sps:$4 sm:$0xff]  }
  0x15   :  { %v64_v4 = vrot.slane %v44_v61, %v43_v50  ;;  %v68_v5 = vrot.slane %v48_v62, %v43_v50  ;;  %v76_v9 = vrot.slane %v56_v1, %v43_v50  ;;  %v115_v10 = vrot.slane %v2794_v57, %v106_v54  ;;  %v2414_v37 = vld [vmem:[%s3315_s3 + $0x1ec] ss:$16 sps:$4 sm:$0xff]   ;;  %v2421_v50 = vld [vmem:[%s3315_s3 + $0x208] ss:$16 sps:$4 sm:$0xff]   ;;  %v2432_v62 = vld [vmem:[%s3315_s3 + $0x244] ss:$16 sps:$4 sm:$0xff]  }
  0x16   :  { %v123_v11 = vrot.slane %v103_v2, %v102_v53  ;;  %v127_v12 = vrot.slane %v107_v3, %v102_v53  ;;  %v131_v16 = vrot.slane %v111_v7, %v102_v53  ;;  %v2427_v61 = vld [vmem:[%s3315_s3 + $0x228] ss:$16 sps:$4 sm:$0xff]   ;;  %v2435_v63 = vld [vmem:[%s3315_s3 + $0x24c] ss:$16 sps:$4 sm:$0xff]   ;;  %v2438_v2 = vld [vmem:[%s3315_s3 + $0x264] ss:$16 sps:$4 sm:$0xff]  }
  0x17   :  { %1001 = vmatpush1.bf16.msra.mxu0 %v2356_v22  ;;  %1083 = vmatpush1.bf16.msra.mxu1 %v2357_v23  ;;  %v81_v15 = vcombine.low %v64_v4, %v68_v5  ;;  %v82_v18 = vcombine.low %v72_v6, %v76_v9  ;;  %v135_v19 = vrot.slane %v115_v10, %v102_v53  ;;  %v2404_v22 = vld [vmem:[%s3315_s3 + $0x1a0] ss:$16 sps:$4 sm:$0xff]   ;;  %v2405_v23 = vld [vmem:[%s3315_s3 + $0x1a8] ss:$16 sps:$4 sm:$0xff]   ;;  %v2426_v53 = vld [vmem:[%s3315_s3 + $0x224] ss:$16 sps:$4 sm:$0xff]  }
  0x18   :  { %1002 = vmatprep.subr.bf16.mxu0 %v2358_v24  ;;  %1084 = vmatprep.subr.bf16.mxu1 %v2360_v25  ;;  %v140_v20 = vcombine.low %v123_v11, %v127_v12  ;;  %v2433_v1 = vld [vmem:[%s3315_s3 + $0x248] ss:$16 sps:$4 sm:$0xff]   ;;  %v2441_v3 = vld [vmem:[%s3315_s3 + $0x26c] ss:$16 sps:$4 sm:$0xff]   ;;  %v2436_v4 = vld [vmem:[%s3315_s3 + $0x260] ss:$16 sps:$4 sm:$0xff]  }
  0x19   :  { %v89_v21 = vrot.slane %v81_v15, %v2797_v58  ;;  %v96_v24 = vrot.slane %v82_v18, %v2797_v58  ;;  %v141_v25 = vcombine.low %v131_v16, %v135_v19  ;;  %v2439_v5 = vld [vmem:[%s3315_s3 + $0x268] ss:$16 sps:$4 sm:$0xff]   ;;  %v2444_v6 = vld [vmem:[%s3315_s3 + $0x284] ss:$16 sps:$4 sm:$0xff]   ;;  %v2447_v7 = vld [vmem:[%s3315_s3 + $0x28c] ss:$16 sps:$4 sm:$0xff]  }
  0x1a   :  { %v2445_v9 = vld [vmem:[%s3315_s3 + $0x288] ss:$16 sps:$4 sm:$0xff]   ;;  %v2450_v10 = vld [vmem:[%s3315_s3 + $0x2a4] ss:$16 sps:$4 sm:$0xff]   ;;  %v2453_v11 = vld [vmem:[%s3315_s3 + $0x2ac] ss:$16 sps:$4 sm:$0xff]  }
  0x1b   :  { %1003 = vmatpush1.bf16.msra.mxu0 %v2362_v26  ;;  %1085 = vmatpush1.bf16.msra.mxu1 %v2363_v27  ;;  %v148_v26 = vrot.slane %v140_v20, %v2797_v58  ;;  %v2406_v27 = vld [vmem:[%s3315_s3 + $0x1c4] ss:$16 sps:$4 sm:$0xff]   ;;  %v2448_v12 = vld [vmem:[%s3315_s3 + $0x2a0] ss:$16 sps:$4 sm:$0xff]   ;;  %v2459_v15 = vld [vmem:[%s3315_s3 + $0x2cc] ss:$16 sps:$4 sm:$0xff]  }
  0x1c   :  { %1004 = vmatprep.subr.bf16.mxu0 %v2364_v28  ;;  %1086 = vmatprep.subr.bf16.mxu1 %v2366_v29  ;;  %v2843_v28 = vld [vmem:[%s3317_s0] sm:$0xff]  ;;  %v2408_v29 = vld [vmem:[%s3315_s3 + $0x1cc] ss:$16 sps:$4 sm:$0xff]  }
  0x1d   :  { %v2454_v16 = vld [vmem:[%s3315_s3 + $0x2c0] ss:$16 sps:$4 sm:$0xff]   ;;  %v2462_v18 = vld [vmem:[%s3315_s3 + $0x2e4] ss:$16 sps:$4 sm:$0xff]   ;;  %v2465_v19 = vld [vmem:[%s3315_s3 + $0x2ec] ss:$16 sps:$4 sm:$0xff]  }
  0x1e   :  { %v2460_v20 = vld [vmem:[%s3315_s3 + $0x2e0] ss:$16 sps:$4 sm:$0xff]  }
  0x1f   :  { %1005 = vmatpush1.bf16.msra.mxu0 %v2368_v30  ;;  %1087 = vmatpush1.bf16.msra.mxu1 %v2369_v31  ;;  %v97_v30 = vcombine.low %v89_v21, %v96_v24  ;;  %v155_v31 = vrot.slane %v141_v25, %v2797_v58  ;;  %v2463_v21 = vld [vmem:[%s3315_s3 + $0x2e8] ss:$16 sps:$4 sm:$0xff]   ;;  %v2466_v24 = vld [vmem:[%s3315_s3 + $0x300] ss:$16 sps:$4 sm:$0xff]  }
  0x20   :  { %1006 = vmatprep.subr.bf16.mxu0 %v2370_v32  ;;  %1088 = vmatprep.subr.bf16.mxu1 %v2372_v33  ;;  %v2410_v32 = vld [vmem:[%s3315_s3 + $0x1c0] ss:$16 sps:$4 sm:$0xff]   ;;  %v2469_v25 = vld [vmem:[%s3315_s3 + $0x308] ss:$16 sps:$4 sm:$0xff]  }
  0x21   :  { %v99_v33 = vmul.f32 %v97_v30, %v2843_v28  ;;  %v2475_v30 = vld [vmem:[%s3315_s3 + $0x328] ss:$16 sps:$4 sm:$0xff]  }
  0x23   :  { %1007 = vmatpush1.bf16.msra.mxu0 %v2374_v34  ;;  %1089 = vmatpush1.bf16.msra.mxu1 %v2375_v35  ;;  %v156_v34 = vcombine.low %v148_v26, %v155_v31  ;;  %v2411_v35 = vld [vmem:[%s3315_s3 + $0x1c8] ss:$16 sps:$4 sm:$0xff]   ;;  %v2474_v26 = vld [vmem:[%s3315_s3 + $0x324] ss:$16 sps:$4 sm:$0xff]  }
  0x24   :  { %1008 = vmatprep.subr.bf16.mxu0 %v2376_v36  ;;  %1090 = vmatprep.subr.bf16.mxu1 %v2378_v38  ;;  %v2412_v36 = vld [vmem:[%s3315_s3 + $0x1e4] ss:$16 sps:$4 sm:$0xff]  }
  0x25   :  { %v158_v38 = vadd.f32 %v156_v34, %v99_v33  ;;  %v2480_v31 = vld [vmem:[%s3315_s3 + $0x344] ss:$16 sps:$4 sm:$0xff]   ;;  %v2478_v33 = vld [vmem:[%s3315_s3 + $0x340] ss:$16 sps:$4 sm:$0xff]   ;;  %v2481_v34 = vld [vmem:[%s3315_s3 + $0x348] ss:$16 sps:$4 sm:$0xff]  }
  0x27   :  { %1009 = vmatpush1.bf16.msra.mxu0 %v2380_v39  ;;  %1091 = vmatpush1.bf16.msra.mxu1 %v2381_v42  ;;  %v2416_v39 = vld [vmem:[%s3315_s3 + $0x1e0] ss:$16 sps:$4 sm:$0xff]   ;;  %v159_v40 = vmax.f32 %v158_v38, 0.0  ;;  %v2420_v42 = vld [vmem:[%s3315_s3 + $0x204] ss:$16 sps:$4 sm:$0xff]  }
  0x28   :  { %1010 = vmatprep.subr.bf16.mxu0 %v2382_v43  ;;  %1092 = vmatprep.subr.bf16.mxu1 %v2384_v45  ;;  %v2487_v38 = vld [vmem:[%s3315_s3 + $0x368] ss:$16 sps:$4 sm:$0xff]  }
  0x29   :  { %v161_v43 = vcombine.high %v159_v40, %v159_v40  ;;  %v168_v45 = vrot.slane %v159_v40, %v2797_v58  ;;  %v2495_v40 = vld [vmem:[%s3315_s3 + $0x38c] ss:$16 sps:$4 sm:$0xff]  }
  0x2b   :  { %1011 = vmatpush1.bf16.msra.mxu0 %v2386_v46  ;;  %1093 = vmatpush1.bf16.msra.mxu1 %v2387_v47  ;;  %v2423_v46 = vld [vmem:[%s3315_s3 + $0x20c] ss:$16 sps:$4 sm:$0xff]   ;;  %v176_v47 = vcombine.high %v168_v45, %v168_v45  ;;  %v2876_v48 = vrot.slane %v161_v43, %v2797_v58  ;;  %v182_v51 = vpack.c.bf16 %v168_v45, %v168_v45  ;;  %v2498_v43 = vld [vmem:[%s3315_s3 + $0x3a4] ss:$16 sps:$4 sm:$0xff]  }
  0x2c   :  { %1012 = vmatprep.subr.bf16.mxu0 %v2388_v49  ;;  %1094 = vmatprep.subr.bf16.mxu1 %v2390_v52  ;;  %v2418_v49 = vld [vmem:[%s3315_s3 + $0x200] ss:$16 sps:$4 sm:$0xff]   ;;  %v2501_v45 = vld [vmem:[%s3315_s3 + $0x3ac] ss:$16 sps:$4 sm:$0xff]  }
  0x2d   :  { %v183_v52 = vpack.c.bf16 %v176_v47, %v176_v47  ;;  %v177_v54 = vcombine.high %v2876_v48, %v2876_v48  ;;  %v2499_v47 = vld [vmem:[%s3315_s3 + $0x3a8] ss:$16 sps:$4 sm:$0xff]  }
  0x2f   :  { %1013 = vmatpush1.bf16.msra.mxu0 %v2392_v55  ;;  %1095 = vmatpush1.bf16.msra.mxu1 %v2393_v59  ;;  %v2429_v55 = vld [vmem:[%s3315_s3 + $0x22c] ss:$16 sps:$4 sm:$0xff]   ;;  %v185_v59 = vpack.c.bf16 %v177_v54, %v177_v54 }
  0x30   :  { %1014 = vmatprep.subr.bf16.mxu0 %v2394_v60  ;;  %1096 = vmatprep.subr.bf16.mxu1 %v2396_v0  ;;  %v2424_v60 = vld [vmem:[%s3315_s3 + $0x220] ss:$16 sps:$4 sm:$0xff]   ;;  %v2513_v54 = vld [vmem:[%s3315_s3 + $0x3ec] ss:$16 sps:$4 sm:$0xff]  }
  0x31   :  { %1022 = vmatprep.mubr.bf16.mxu0 %v183_v52  ;;  %1104 = vmatprep.mubr.bf16.mxu1 %v183_v52  ;;  %v2430_v0 = vld [vmem:[%s3315_s3 + $0x240] ss:$16 sps:$4 sm:$0xff]   ;;  %v2505_v52 = vld [vmem:[%s3315_s3 + $0x3c8] ss:$16 sps:$4 sm:$0xff]  }
  0x33   :  { %1015 = vmatpush1.bf16.msra.mxu0 %v2398_v8  ;;  %1097 = vmatpush1.bf16.msra.mxu1 %v2399_v13  ;;  %v2442_v8 = vld [vmem:[%s3315_s3 + $0x280] ss:$16 sps:$4 sm:$0xff]   ;;  %v2451_v13 = vld [vmem:[%s3315_s3 + $0x2a8] ss:$16 sps:$4 sm:$0xff]  }
  0x34   :  { %1016 = vmatprep.subr.bf16.mxu0 %v2400_v14  ;;  %1098 = vmatprep.subr.bf16.mxu1 %v2402_v17  ;;  %v2456_v14 = vld [vmem:[%s3315_s3 + $0x2c4] ss:$16 sps:$4 sm:$0xff]   ;;  %v2457_v17 = vld [vmem:[%s3315_s3 + $0x2c8] ss:$16 sps:$4 sm:$0xff]  }
  0x37   :  { %1017 = vmatpush1.bf16.msra.mxu0 %v2404_v22  ;;  %1099 = vmatpush1.bf16.msra.mxu1 %v2405_v23  ;;  %v2468_v22 = vld [vmem:[%s3315_s3 + $0x304] ss:$16 sps:$4 sm:$0xff]   ;;  %v2471_v23 = vld [vmem:[%s3315_s3 + $0x30c] ss:$16 sps:$4 sm:$0xff]  }
  0x38   :  { %1018 = vmatprep.subr.bf16.mxu0 %v2406_v27  ;;  %1100 = vmatprep.subr.bf16.mxu1 %v2408_v29  ;;  %v2477_v27 = vld [vmem:[%s3315_s3 + $0x32c] ss:$16 sps:$4 sm:$0xff]   ;;  %v2472_v29 = vld [vmem:[%s3315_s3 + $0x320] ss:$16 sps:$4 sm:$0xff]  }
  0x3b   :  { %1019 = vmatpush1.bf16.msra.mxu0 %v2410_v32  ;;  %1101 = vmatpush1.bf16.msra.mxu1 %v2411_v35  ;;  %v2483_v32 = vld [vmem:[%s3315_s3 + $0x34c] ss:$16 sps:$4 sm:$0xff]   ;;  %v2486_v35 = vld [vmem:[%s3315_s3 + $0x364] ss:$16 sps:$4 sm:$0xff]  }
  0x3c   :  { %1020 = vmatprep.subr.bf16.mxu0 %v2412_v36  ;;  %1102 = vmatprep.subr.bf16.mxu1 %v2414_v37  ;;  %v2489_v36 = vld [vmem:[%s3315_s3 + $0x36c] ss:$16 sps:$4 sm:$0xff]   ;;  %v2484_v37 = vld [vmem:[%s3315_s3 + $0x360] ss:$16 sps:$4 sm:$0xff]  }
  0x3f   :  { %1021 = vmatpush1.bf16.msra.mxu0 %v2416_v39  ;;  %1103 = vmatpush1.bf16.msra.mxu1 %v2417_v41  ;;  %v2492_v39 = vld [vmem:[%s3315_s3 + $0x384] ss:$16 sps:$4 sm:$0xff]   ;;  %v2490_v41 = vld [vmem:[%s3315_s3 + $0x380] ss:$16 sps:$4 sm:$0xff]  }
  0x40   :  { %1031 = vmatprep.subr.bf16.mxu0 %v2420_v42  ;;  %1113 = vmatprep.subr.bf16.mxu1 %v2423_v46  ;;  %v2493_v42 = vld [vmem:[%s3315_s3 + $0x388] ss:$16 sps:$4 sm:$0xff]   ;;  %v2496_v46 = vld [vmem:[%s3315_s3 + $0x3a0] ss:$16 sps:$4 sm:$0xff]  }
  0x42   :  { %1023 = vmatmul.mubr.bf16.vlgmr.msra.gmra.mrb[0].mxu0 %v182_v51  ;;  %1105 = vmatmul.mubr.bf16.vlgmr.msra.gmra.mrb[0].mxu1 %v182_v51  ;;  %v2502_v51 = vld [vmem:[%s3315_s3 + $0x3c0] ss:$16 sps:$4 sm:$0xff]  }
  0x43   :  { %1032 = vmatpush1.bf16.msra.mxu0 %v2418_v49  ;;  %1114 = vmatpush1.bf16.msra.mxu1 %v2421_v50  ;;  %v2504_v49 = vld [vmem:[%s3315_s3 + $0x3c4] ss:$16 sps:$4 sm:$0xff]   ;;  %v2507_v50 = vld [vmem:[%s3315_s3 + $0x3cc] ss:$16 sps:$4 sm:$0xff]  }
  0x44   :  { %1033 = vmatprep.subr.bf16.mxu0 %v2426_v53  ;;  %1115 = vmatprep.subr.bf16.mxu1 %v2429_v55  ;;  %v2510_v53 = vld [vmem:[%s3315_s3 + $0x3e4] ss:$16 sps:$4 sm:$0xff]   ;;  %v2508_v55 = vld [vmem:[%s3315_s3 + $0x3e0] ss:$16 sps:$4 sm:$0xff]  }
  0x45   :  { %1063 = vmatprep.mubr.bf16.mxu0 %v185_v59  ;;  %1145 = vmatprep.mubr.bf16.mxu1 %v185_v59  ;;  %v2511_v59 = vld [vmem:[%s3315_s3 + $0x3e8] ss:$16 sps:$4 sm:$0xff]  }
  0x47   :  { %1034 = vmatpush1.bf16.msra.mxu0 %v2424_v60  ;;  %1116 = vmatpush1.bf16.msra.mxu1 %v2427_v61  ;;  %v2514_v60 = vld [vmem:[%s3318_s4 + $0x40] sm:$0xff]  }
  0x48   :  { %1035 = vmatprep.subr.bf16.mxu0 %v2432_v62  ;;  %1117 = vmatprep.subr.bf16.mxu1 %v2435_v63  ;;  %v2515_v61 = vld [vmem:[%s3318_s4 + $0xc0] sm:$0xff]   ;;  %v184_v62 = vpack.c.bf16 %v2876_v48, %v2876_v48  ;;  %v2519_v48 = vld [vmem:[%s3318_s4 + $0xc8] sm:$0xff]  }
  0x49   :  { %v2516_v63 = vld [vmem:[%s3318_s4] sm:$0xff]  }
  0x4b   :  { %1036 = vmatpush1.bf16.msra.mxu0 %v2430_v0  ;;  %1118 = vmatpush1.bf16.msra.mxu1 %v2433_v1  ;;  %v2517_v0 = vld [vmem:[%s3318_s4 + $0x80] sm:$0xff]   ;;  %v2518_v1 = vld [vmem:[%s3318_s4 + $0x48] sm:$0xff]  }
  0x4c   :  { %1037 = vmatprep.subr.bf16.mxu0 %v2438_v2  ;;  %1119 = vmatprep.subr.bf16.mxu1 %v2441_v3  ;;  %v2520_v2 = vld [vmem:[%s3318_s4 + $0x8] sm:$0xff]  }
  0x4d   :  { %v2521_v3 = vld [vmem:[%s3318_s4 + $0x88] sm:$0xff]  }
  0x4f   :  { %1038 = vmatpush1.bf16.msra.mxu0 %v2436_v4  ;;  %1120 = vmatpush1.bf16.msra.mxu1 %v2439_v5  ;;  %v2522_v4 = vld [vmem:[%s3318_s4 + $0x50] sm:$0xff]  }
  0x50   :  { %1039 = vmatprep.subr.bf16.mxu0 %v2444_v6  ;;  %1121 = vmatprep.subr.bf16.mxu1 %v2447_v7  ;;  %v2523_v5 = vld [vmem:[%s3318_s4 + $0xd0] sm:$0xff]  }
  0x51   :  { %v2524_v6 = vld [vmem:[%s3318_s4 + $0x10] sm:$0xff]  }
  0x52   :  { %v2525_v7 = vld [vmem:[%s3318_s4 + $0x90] sm:$0xff]  }
  0x53   :  { %1040 = vmatpush1.bf16.msra.mxu0 %v2442_v8  ;;  %1122 = vmatpush1.bf16.msra.mxu1 %v2445_v9  ;;  %v2526_v8 = vld [vmem:[%s3318_s4 + $0x58] sm:$0xff]  }
  0x54   :  { %1041 = vmatprep.subr.bf16.mxu0 %v2450_v10  ;;  %1123 = vmatprep.subr.bf16.mxu1 %v2453_v11  ;;  %v2527_v9 = vld [vmem:[%s3318_s4 + $0xd8] sm:$0xff]  }
  0x55   :  { %v2528_v10 = vld [vmem:[%s3318_s4 + $0x18] sm:$0xff]  }
  0x56   :  { %v2529_v11 = vld [vmem:[%s3318_s4 + $0x98] sm:$0xff]  }
  0x57   :  { %1042 = vmatpush1.bf16.msra.mxu0 %v2448_v12  ;;  %1124 = vmatpush1.bf16.msra.mxu1 %v2451_v13  ;;  %v2530_v12 = vld [vmem:[%s3318_s4 + $0x60] sm:$0xff]  }
  0x58   :  { %1043 = vmatprep.subr.bf16.mxu0 %v2456_v14  ;;  %1125 = vmatprep.subr.bf16.mxu1 %v2459_v15  ;;  %v2531_v13 = vld [vmem:[%s3318_s4 + $0xe0] sm:$0xff]  }
  0x59   :  { %v2532_v14 = vld [vmem:[%s3318_s4 + $0x20] sm:$0xff]  }
  0x5a   :  { %v2533_v15 = vld [vmem:[%s3318_s4 + $0xa0] sm:$0xff]  }
  0x5b   :  { %1044 = vmatpush1.bf16.msra.mxu0 %v2454_v16  ;;  %1126 = vmatpush1.bf16.msra.mxu1 %v2457_v17  ;;  %v2534_v16 = vld [vmem:[%s3318_s4 + $0x68] sm:$0xff]  }
  0x5c   :  { %1045 = vmatprep.subr.bf16.mxu0 %v2462_v18  ;;  %1127 = vmatprep.subr.bf16.mxu1 %v2465_v19  ;;  %v2535_v17 = vld [vmem:[%s3318_s4 + $0xe8] sm:$0xff]  }
  0x5d   :  { %v2536_v18 = vld [vmem:[%s3318_s4 + $0x28] sm:$0xff]  }
  0x5e   :  { %v2537_v19 = vld [vmem:[%s3318_s4 + $0xa8] sm:$0xff]  }
  0x5f   :  { %1046 = vmatpush1.bf16.msra.mxu0 %v2460_v20  ;;  %1128 = vmatpush1.bf16.msra.mxu1 %v2463_v21  ;;  %v2539_v20 = vld [vmem:[%s3318_s4 + $0x70] sm:$0xff]  }
  0x60   :  { %1047 = vmatprep.subr.bf16.mxu0 %v2468_v22  ;;  %1129 = vmatprep.subr.bf16.mxu1 %v2471_v23  ;;  %v2540_v21 = vld [vmem:[%s3318_s4 + $0xf0] sm:$0xff]  }
  0x61   :  { %v2541_v22 = vld [vmem:[%s3318_s4 + $0x30] sm:$0xff]  }
  0x62   :  { %v2542_v23 = vld [vmem:[%s3318_s4 + $0xb0] sm:$0xff]  }
  0x63   :  { %1048 = vmatpush1.bf16.msra.mxu0 %v2466_v24  ;;  %1130 = vmatpush1.bf16.msra.mxu1 %v2469_v25  ;;  %v2543_v24 = vld [vmem:[%s3318_s4 + $0x78] sm:$0xff]  }
  0x64   :  { %1049 = vmatprep.subr.bf16.mxu0 %v2474_v26  ;;  %1131 = vmatprep.subr.bf16.mxu1 %v2477_v27  ;;  %v2544_v25 = vld [vmem:[%s3318_s4 + $0xf8] sm:$0xff]  }
  0x65   :  { %v2545_v26 = vld [vmem:[%s3318_s4 + $0x38] sm:$0xff]  }
  0x66   :  { %v2546_v27 = vld [vmem:[%s3318_s4 + $0xb8] sm:$0xff]  }
  0x67   :  { %1050 = vmatpush1.bf16.msra.mxu0 %v2472_v29  ;;  %1132 = vmatpush1.bf16.msra.mxu1 %v2475_v30  ;;  %v2547_v29 = vld [vmem:[%s3319_s5 + $0x40] sm:$0xff]  }
  0x68   :  { %1051 = vmatprep.subr.bf16.mxu0 %v2480_v31  ;;  %1133 = vmatprep.subr.bf16.mxu1 %v2483_v32  ;;  %v2548_v30 = vld [vmem:[%s3319_s5 + $0xc0] sm:$0xff]   ;;  %v316_v31 = vsub.s32 2, %v2762_v44 }
  0x69   :  { %v1158_v32 = vld [vmem:[%s3320_s1] sm:$0xff] }
  0x6b   :  { %1052 = vmatpush1.bf16.msra.mxu0 %v2478_v33  ;;  %1134 = vmatpush1.bf16.msra.mxu1 %v2481_v34  ;;  %v320_v33 = vsub.s32 6, %v2762_v44  ;;  %v317_v34 = vrot.slane %v2789_v56, %v316_v31  ;;  %v1526_v44 = vcombine.high %v2843_v28, %v2843_v28 }
  0x6c   :  { %1053 = vmatprep.subr.bf16.mxu0 %v2486_v35  ;;  %1135 = vmatprep.subr.bf16.mxu1 %v2489_v36  ;;  %v325_v35 = vrot.slane %v2794_v57, %v316_v31  ;;  %v1160_v36 = vcombine.high %v1158_v32, %v1158_v32 }
  0x6f   :  { %1054 = vmatpush1.bf16.msra.mxu0 %v2484_v37  ;;  %1136 = vmatpush1.bf16.msra.mxu1 %v2487_v38  ;;  %v321_v37 = vrot.slane %v2789_v56, %v320_v33  ;;  %v329_v38 = vrot.slane %v2794_v57, %v320_v33  ;;  %v2568_v33 = vld [vmem:[%s3319_s5 + $0xe8] sm:$0xff]  }
  0x70   :  { %1055 = vmatprep.subr.bf16.mxu0 %v2492_v39  ;;  %1137 = vmatprep.subr.bf16.mxu1 %v2495_v40  ;;  %v337_v39 = vrot.slane %v317_v34, %v316_v31  ;;  %v1167_v40 = vrot.slane %v1158_v32, %v2797_v58  ;;  %v2567_v32 = vld [vmem:[%s3319_s5 + $0x68] sm:$0xff]  }
  0x71   :  { %v2569_v34 = vld [vmem:[%s3319_s5 + $0x28] sm:$0xff]  }
  0x73   :  { %1056 = vmatpush1.bf16.msra.mxu0 %v2490_v41  ;;  %1138 = vmatpush1.bf16.msra.mxu1 %v2493_v42  ;;  %v345_v41 = vrot.slane %v325_v35, %v316_v31  ;;  %v1174_v42 = vrot.slane %v1160_v36, %v2797_v58  ;;  %v2570_v35 = vld [vmem:[%s3319_s5 + $0xa8] sm:$0xff]   ;;  %v2571_v36 = vld [vmem:[%s3319_s5 + $0x70] sm:$0xff]  }
  0x74   :  { %1057 = vmatprep.subr.bf16.mxu0 %v2498_v43  ;;  %1139 = vmatprep.subr.bf16.mxu1 %v2501_v45  ;;  %v341_v43 = vrot.slane %v321_v37, %v316_v31  ;;  %v349_v45 = vrot.slane %v329_v38, %v316_v31  ;;  %v2566_v31 = vld [vmem:[%s3319_s5 + $0xa0] sm:$0xff]   ;;  %v2572_v37 = vld [vmem:[%s3319_s5 + $0xf0] sm:$0xff]  }
  0x75   :  { %v2573_v38 = vld [vmem:[%s3319_s5 + $0x30] sm:$0xff]  }
  0x77   :  { %1058 = vmatpush1.bf16.msra.mxu0 %v2496_v46  ;;  %1140 = vmatpush1.bf16.msra.mxu1 %v2499_v47 }
  0x78   :  { %1059 = vmatprep.subr.bf16.mxu0 %v2504_v49  ;;  %1141 = vmatprep.subr.bf16.mxu1 %v2507_v50 }
  0x7b   :  { %1060 = vmatpush1.bf16.msra.mxu0 %v2502_v51  ;;  %1142 = vmatpush1.bf16.msra.mxu1 %v2505_v52  ;;  %v1175_v52 = vcombine.high %v1167_v40, %v1167_v40 }
  0x7c   :  { %1061 = vmatprep.subr.bf16.mxu0 %v2510_v53  ;;  %1143 = vmatprep.subr.bf16.mxu1 %v2513_v54  ;;  %v1176_v53 = vcombine.high %v1174_v42, %v1174_v42 }
  0x7f   :  { %1062 = vmatpush1.bf16.msra.mxu0 %v2508_v55  ;;  %1144 = vmatpush1.bf16.msra.mxu1 %v2511_v59 }
  0x80   :  { %2193 = vmatprep.subr.bf16.mxu0 %v2514_v60  ;;  %2215 = vmatprep.subr.bf16.mxu1 %v2515_v61  ;;  %v3185_v60 = vrot.slane %v2843_v28, %v2797_v58  ;;  %v3188_v61 = vrot.slane %v1526_v44, %v2797_v58  ;;  %v2549_v58 = vld [vmem:[%s3319_s5] sm:$0xff]  }
  0x82   :  { %1064 = vmatmul.mubr.bf16.vlgmr.msra.gmra.mrb[0].mxu0 %v184_v62  ;;  %1146 = vmatmul.mubr.bf16.vlgmr.msra.gmra.mrb[0].mxu1 %v184_v62  ;;  %v1542_v28 = vcombine.high %v3188_v61, %v3188_v61  ;;  %v1549_v44 = vpack.c.bf16 %v3188_v61, %v3188_v61 }
  0x83   :  { %2194 = vmatpush3.bf16.msra.mxu0 %v2516_v63  ;;  %2216 = vmatpush3.bf16.msra.mxu1 %v2517_v0 }
  0x84   :  { %2195 = vmatprep.subr.bf16.mxu0 %v2518_v1  ;;  %2217 = vmatprep.subr.bf16.mxu1 %v2519_v48 }
  0x87   :  { %2196 = vmatpush3.bf16.msra.mxu0 %v2520_v2  ;;  %2218 = vmatpush3.bf16.msra.mxu1 %v2521_v3 }
  0x88   :  { %2197 = vmatprep.subr.bf16.mxu0 %v2522_v4  ;;  %2219 = vmatprep.subr.bf16.mxu1 %v2523_v5 }
  0x8b   :  { %2198 = vmatpush3.bf16.msra.mxu0 %v2524_v6  ;;  %2220 = vmatpush3.bf16.msra.mxu1 %v2525_v7  ;;  %v1541_v7 = vcombine.high %v3185_v60, %v3185_v60 }
  0x8c   :  { %2199 = vmatprep.subr.bf16.mxu0 %v2526_v8  ;;  %2221 = vmatprep.subr.bf16.mxu1 %v2527_v9 }
  0x8f   :  { %2200 = vmatpush3.bf16.msra.mxu0 %v2528_v10  ;;  %2222 = vmatpush3.bf16.msra.mxu1 %v2529_v11  ;;  %v2550_v10 = vld [vmem:[%s3319_s5 + $0x80] sm:$0xff]  }
  0x90   :  { %2201 = vmatprep.subr.bf16.mxu0 %v2530_v12  ;;  %2223 = vmatprep.subr.bf16.mxu1 %v2531_v13  ;;  %v2551_v13 = vld [vmem:[%s3319_s5 + $0x48] sm:$0xff]  }
  0x93   :  { %2202 = vmatpush3.bf16.msra.mxu0 %v2532_v14  ;;  %2224 = vmatpush3.bf16.msra.mxu1 %v2533_v15  ;;  %v2552_v14 = vld [vmem:[%s3319_s5 + $0xc8] sm:$0xff]   ;;  %v1548_v15 = vpack.c.bf16 %v1541_v7, %v1541_v7 }
  0x94   :  { %2203 = vmatprep.subr.bf16.mxu0 %v2534_v16  ;;  %2225 = vmatprep.subr.bf16.mxu1 %v2535_v17  ;;  %v1550_v16 = vpack.c.bf16 %v1542_v28, %v1542_v28  ;;  %v2553_v17 = vld [vmem:[%s3319_s5 + $0x8] sm:$0xff]  }
  0x97   :  { %2204 = vmatpush3.bf16.msra.mxu0 %v2536_v18  ;;  %2226 = vmatpush3.bf16.msra.mxu1 %v2537_v19  ;;  %v2554_v18 = vld [vmem:[%s3319_s5 + $0x88] sm:$0xff]   ;;  %v2555_v19 = vld [vmem:[%s3319_s5 + $0x50] sm:$0xff]  }
  0x98   :  { %2205 = vmatprep.subr.bf16.mxu0 %v2539_v20  ;;  %2227 = vmatprep.subr.bf16.mxu1 %v2540_v21  ;;  %v2556_v20 = vld [vmem:[%s3319_s5 + $0xd0] sm:$0xff]  }
  0x99   :  { %v2557_v21 = vld [vmem:[%s3319_s5 + $0x10] sm:$0xff]  }
  0x9b   :  { %2206 = vmatpush3.bf16.msra.mxu0 %v2541_v22  ;;  %2228 = vmatpush3.bf16.msra.mxu1 %v2542_v23  ;;  %v2558_v22 = vld [vmem:[%s3319_s5 + $0x90] sm:$0xff]   ;;  %v2559_v23 = vld [vmem:[%s3319_s5 + $0x58] sm:$0xff]  }
  0x9c   :  { %2207 = vmatprep.subr.bf16.mxu0 %v2543_v24  ;;  %2229 = vmatprep.subr.bf16.mxu1 %v2544_v25  ;;  %v2560_v24 = vld [vmem:[%s3319_s5 + $0xd8] sm:$0xff]  }
  0x9d   :  { %v2561_v25 = vld [vmem:[%s3319_s5 + $0x18] sm:$0xff]  }
  0x9f   :  { %2208 = vmatpush3.bf16.msra.mxu0 %v2545_v26  ;;  %2230 = vmatpush3.bf16.msra.mxu1 %v2546_v27  ;;  %v2562_v26 = vld [vmem:[%s3319_s5 + $0x98] sm:$0xff]   ;;  %v2563_v27 = vld [vmem:[%s3319_s5 + $0x60] sm:$0xff]  }
  0xa0   :  { %2237 = vmatprep.subr.bf16.mxu0 %v2547_v29  ;;  %2259 = vmatprep.subr.bf16.mxu1 %v2548_v30  ;;  %v2564_v29 = vld [vmem:[%s3319_s5 + $0xe0] sm:$0xff]  }
  0xa1   :  { %v2565_v30 = vld [vmem:[%s3319_s5 + $0x20] sm:$0xff]  }
 0x155   :  { %v1065_v46 = vpop.f32.mrb[0].mxu0  ;;  %v1147_v47 = vpop.f32.mrb[0].mxu1 }
 0x156   :  { %v2306_v49 = vadd.f32 %v1065_v46, %v337_v39  ;;  %v2308_v50 = vadd.f32 %v1147_v47, %v345_v41  ;;  %v1067_v51 = vpop.f32.mrb[1].mxu0  ;;  %v1149_v56 = vpop.f32.mrb[1].mxu1  ;;  %v2574_v39 = vld [vmem:[%s3319_s5 + $0xb0] sm:$0xff]   ;;  %v2576_v41 = vld [vmem:[%s3319_s5 + $0xf8] sm:$0xff]   ;;  %v1905_v46 = vld [vmem:[%s3321_s8] sm:$0xff] }
 0x157   :  { %v2307_v57 = vadd.f32 %v1067_v51, %v341_v43  ;;  %v2309_v54 = vadd.f32 %v1149_v56, %v349_v45  ;;  %v1069_v55 = vpop.f32.mrb[2].mxu0  ;;  %v1151_v59 = vpop.f32.mrb[2].mxu1  ;;  %v2578_v43 = vld [vmem:[%s3319_s5 + $0xb8] sm:$0xff]   ;;  %v1547_v45 = vpack.c.bf16 %v3185_v60, %v3185_v60  ;;  %v1906_v47 = vld [vmem:[%s3321_s8 + $0x8] sm:$0xff]  ;;  %v1907_v51 = vld [vmem:[%s3321_s8 + $0x10] sm:$0xff] }
 0x158   :  { %v1154_v62 = vmax.f32 %v2306_v49, 0.0  ;;  %v1156_v63 = vmax.f32 %v2308_v50, 0.0  ;;  %v1070_v0 = vpop.f32.mrb[3].mxu0  ;;  %v1152_v1 = vpop.f32.mrb[3].mxu1  ;;  %v2301_v49 = vpack.c.bf16 %v1906_v47, %v1905_v46  ;;  %v2581_v50 = vmov 0.0|0.0  }
 0x159   :  { %v1155_v48 = vmax.f32 %v2307_v57, 0.0  ;;  %v1157_v2 = vmax.f32 %v2309_v54, 0.0  ;;  %v1909_v57 = vld [vmem:[%s3321_s8 + $0x20] sm:$0xff] }
 0x15a   :  { %v1181_v3 = vmul.f32 %v1167_v40, %v1154_v62  ;;  %v1183_v4 = vmul.f32 %v1174_v42, %v1156_v63  ;;  %v2575_v40 = vld [vmem:[%s3319_s5 + $0x78] sm:$0xff]  }
 0x15b   :  { %v1182_v5 = vmul.f32 %v1175_v52, %v1155_v48  ;;  %v1184_v6 = vmul.f32 %v1176_v53, %v1157_v2  ;;  %v2577_v42 = vld [vmem:[%s3319_s5 + $0x38] sm:$0xff]   ;;  %v2582_v53 = vmov 0.0  }
 0x15c   :  { %v1185_v11 = vpack.c.bf16 %v1181_v3, %v1181_v3  ;;  %v1187_v12 = vpack.c.bf16 %v1183_v4, %v1183_v4  ;;  %v1908_v52 = vld [vmem:[%s3321_s8 + $0x18] sm:$0xff] }
 0x15d   :  { %v1186_v8 = vpack.c.bf16 %v1182_v5, %v1182_v5  ;;  %v1188_v9 = vpack.c.bf16 %v1184_v6, %v1184_v6  ;;  %v2304_v56 = vpack.c.bf16 %v1908_v52, %v1907_v51 }
 0x15f   :  { %1477 = vmatprep.mubr.bf16.mxu0 %v1186_v8  ;;  %1517 = vmatprep.mubr.bf16.mxu1 %v1188_v9 }
 0x160   :  { %1478 = vmatmul.mubr.bf16.vlgmr.msra.gmra.mrb[4].mxu0 %v1185_v11  ;;  %1518 = vmatmul.mubr.bf16.vlgmr.msra.gmra.mrb[4].mxu1 %v1187_v12 }
 0x161   :  { %2238 = vmatpush3.bf16.msra.mxu0 %v2549_v58  ;;  %2260 = vmatpush3.bf16.msra.mxu1 %v2550_v10  ;;  %v2189_v58 = vld [vmem:[%s3322_s6] ss:$0 sm:$0xff] }
 0x162   :  { %2239 = vmatprep.subr.bf16.mxu0 %v2551_v13  ;;  %2261 = vmatprep.subr.bf16.mxu1 %v2552_v14 }
 0x163   :  { %1839 = vmatprep.mubr.bf16.mxu0 %v1548_v15  ;;  %1879 = vmatprep.mubr.bf16.mxu1 %v1550_v16  ;;  %v2190_v15 = vld [vmem:[%s3323_s7] ss:$0 sm:$0xff] }
 0x165   :  { %2240 = vmatpush3.bf16.msra.mxu0 %v2553_v17  ;;  %2262 = vmatpush3.bf16.msra.mxu1 %v2554_v18  ;;  %v2191_v18 = vld [vmem:[%s3324_s9] ss:$0 sm:$0xff] }
 0x166   :  { %2241 = vmatprep.subr.bf16.mxu0 %v2555_v19  ;;  %2263 = vmatprep.subr.bf16.mxu1 %v2556_v20 }
 0x169   :  { %2242 = vmatpush3.bf16.msra.mxu0 %v2557_v21  ;;  %2264 = vmatpush3.bf16.msra.mxu1 %v2558_v22 }
 0x16a   :  { %2243 = vmatprep.subr.bf16.mxu0 %v2559_v23  ;;  %2265 = vmatprep.subr.bf16.mxu1 %v2560_v24 }
 0x16d   :  { %2244 = vmatpush3.bf16.msra.mxu0 %v2561_v25  ;;  %2266 = vmatpush3.bf16.msra.mxu1 %v2562_v26 }
 0x16e   :  { %2245 = vmatprep.subr.bf16.mxu0 %v2563_v27  ;;  %2267 = vmatprep.subr.bf16.mxu1 %v2564_v29 }
 0x171   :  { %2246 = vmatpush3.bf16.msra.mxu0 %v2565_v30  ;;  %2268 = vmatpush3.bf16.msra.mxu1 %v2566_v31 }
 0x172   :  { %2247 = vmatprep.subr.bf16.mxu0 %v2567_v32  ;;  %2269 = vmatprep.subr.bf16.mxu1 %v2568_v33 }
 0x175   :  { %2248 = vmatpush3.bf16.msra.mxu0 %v2569_v34  ;;  %2270 = vmatpush3.bf16.msra.mxu1 %v2570_v35 }
 0x176   :  { %2249 = vmatprep.subr.bf16.mxu0 %v2571_v36  ;;  %2271 = vmatprep.subr.bf16.mxu1 %v2572_v37 }
 0x179   :  { %2250 = vmatpush3.bf16.msra.mxu0 %v2573_v38  ;;  %2272 = vmatpush3.bf16.msra.mxu1 %v2574_v39 }
 0x17a   :  { %2251 = vmatprep.subr.bf16.mxu0 %v2575_v40  ;;  %2273 = vmatprep.subr.bf16.mxu1 %v2576_v41 }
 0x17d   :  { %2252 = vmatpush3.bf16.msra.mxu0 %v2577_v42  ;;  %2274 = vmatpush3.bf16.msra.mxu1 %v2578_v43 }
 0x17e   :  { %2300 = vmatprep.subr.bf16.mxu0 %v2581_v50 }
 0x180   :  { %1840 = vmatmul.mubr.bf16.vlgmr.msra.gmra.mrb[8].mxu0 %v1547_v45  ;;  %1880 = vmatmul.mubr.bf16.vlgmr.msra.gmra.mrb[8].mxu1 %v1549_v44 }
 0x181   :  { %2302 = vmatpush3.bf16.msra.mxu0 %v2301_v49  ;;  %2297 = vmatprep.mubr.msk.f32.mxu0 %vm2583_vm0, %v2582_v53 }
 0x182   :  { %2303 = vmatprep.subr.bf16.mxu0 %v2581_v50 }
 0x185   :  { %2305 = vmatpush3.bf16.msra.mxu0 %v2304_v56 }
 0x186   :  { %2295 = vmatprep.subr.mxu0 %v2582_v53 }
 0x189   :  { %2296 = vmatpush3.msra.mxu0 %v1909_v57 }
 0x233   :  { %v2209_v54 = vpop.f32.mrb[4].mxu0  ;;  %v2231_v55 = vpop.f32.mrb[4].mxu1 }
 0x234   :  { %v2210_v59 = vpop.f32.mrb[5].mxu0  ;;  %v2232_v60 = vpop.f32.mrb[5].mxu1 }
 0x235   :  { %v2211_v61 = vadd.f32 %v2210_v59, %v2209_v54  ;;  %v2233_v62 = vadd.f32 %v2232_v60, %v2231_v55  ;;  %v2212_v63 = vpop.f32.mrb[6].mxu0  ;;  %v2234_v0 = vpop.f32.mrb[6].mxu1 }
 0x236   :  { %v2213_v1 = vpop.f32.mrb[7].mxu0  ;;  %v2235_v48 = vpop.f32.mrb[7].mxu1 }
 0x237   :  { %v1520_v2 = vadd.f32 %v2233_v62, %v2211_v61 }
 0x239   :  { %v1887_v13 = vmul.f32 0.3, %v1520_v2 }
 0x253   :  { %v2253_v3 = vpop.f32.mrb[8].mxu0  ;;  %v2275_v4 = vpop.f32.mrb[8].mxu1 }
 0x254   :  { %v2254_v5 = vpop.f32.mrb[9].mxu0  ;;  %v2276_v6 = vpop.f32.mrb[9].mxu1 }
 0x255   :  { %v2255_v7 = vadd.f32 %v2254_v5, %v2253_v3  ;;  %v2277_v28 = vadd.f32 %v2276_v6, %v2275_v4  ;;  %v2256_v8 = vpop.f32.mrb[10].mxu0  ;;  %v2278_v9 = vpop.f32.mrb[10].mxu1 }
 0x256   :  { %v2257_v10 = vpop.f32.mrb[11].mxu0  ;;  %v2279_v11 = vpop.f32.mrb[11].mxu1 }
 0x257   :  { %v1882_v12 = vadd.f32 %v2277_v28, %v2255_v7 }
 0x259   :  { %v1895_v14 = vmul.f32 %v2189_v58, %v1882_v12 }
 0x25b   :  { %v1896_v16 = vadd.f32 %v1895_v14, %v1887_v13 }
 0x25d   :  { %v1904_v17 = vadd.f32 %v2190_v15, %v1896_v16 }
 0x25f   :  { %2298 = vmatmul.mubr.msk.f32.vlgmr.msra.gmra.mrb[12].mxu0 %vm1917_vm1, %v1904_v17 }
 0x332   :  { %v1987_v19 = vpop.f32.mrb[12].mxu0 }
 0x333   :  { %v1988_v20 = vadd.f32 %v2191_v18, %v1987_v19  ;;  %v2299_v21 = vpop.f32.mrb[13].mxu0 }
 0x335   :  { %1992 = vst.msk [vmem:[%s3325_s10] sm:$0x3] %vm1991_vm2, %v1988_v20 }

</bundles_post_ra>
